<compile_context>
chip_gen: v6e
topology: v6e:2x2x1
jax: 0.10.0
libtpu: 0.0.40
codegen_flags: <defaults>
</compile_context>

<pallas_src>
import jax
import jax.numpy as jnp
from jax import lax
from jax.experimental import pallas as pl
from jax.experimental.pallas import tpu as pltpu


def _make_acoustic_rnn_kernel(num_layers, seq_len, hidden):
    H = hidden
    T = seq_len

    def kernel(x_ref, len_ref, *refs):
        n_gru = 4 * num_layers
        gru_refs = refs[:n_gru]
        (w_lin_ref, b_lin_ref, w_fc1_ref, b_fc1_ref,
         w_fc2_ref, b_fc2_ref) = refs[n_gru:n_gru + 6]
        o_ref, xg_ref, seq_ref = refs[n_gru + 6:]

        tile_b = x_ref.shape[1]
        len_col = len_ref[...]                            # [TILE_B, 1] int32

        h_last = jnp.zeros((tile_b, H), jnp.float32)
        for layer in range(num_layers):
            w_ih_ref, w_hh_ref, b_ih_ref, b_hh_ref = (
                gru_refs[4 * layer:4 * layer + 4])

            # Batched input projection for ALL timesteps of this layer:
            # one [T*TILE_B, D_in] @ [D_in, 3H] matmul instead of T tiny ones.
            inp = x_ref[...] if layer == 0 else seq_ref[...]
            d_in = inp.shape[-1]
            xg = jnp.dot(inp.reshape(T * tile_b, d_in), w_ih_ref[...],
                         preferred_element_type=jnp.float32) + b_ih_ref[...]
            xg_ref[...] = xg.reshape(T, tile_b, 3 * H)

            w_hh = w_hh_ref[...]
            b_hh = b_hh_ref[...]
            write_seq = layer < num_layers - 1            # last layer: only h

            def step(t, h, w_hh=w_hh, b_hh=b_hh, write_seq=write_seq):
                xg_t = xg_ref[t]                          # [TILE_B, 3H]
                hg = jnp.dot(h, w_hh,
                             preferred_element_type=jnp.float32) + b_hh
                # PyTorch gate order: r, z, n
                r = jax.nn.sigmoid(xg_t[:, 0:H] + hg[:, 0:H])
                z = jax.nn.sigmoid(xg_t[:, H:2 * H] + hg[:, H:2 * H])
                n = jnp.tanh(xg_t[:, 2 * H:3 * H] + r * hg[:, 2 * H:3 * H])
                h_new = (1.0 - z) * n + z * h
                # packed-sequence semantics: freeze h once t >= length[b]
                h_new = jnp.where(t < len_col, h_new, h)
                if write_seq:
                    seq_ref[t] = h_new
                return h_new

            h_last = lax.fori_loop(0, T, step,
                                   jnp.zeros((tile_b, H), jnp.float32),
                                   unroll=True)

        # encoded = tanh(linear(hidden[-1]))        (dropout p=0 -> identity)
        enc = jnp.tanh(jnp.dot(h_last, w_lin_ref[...],
                               preferred_element_type=jnp.float32)
                       + b_lin_ref[...])
        # intermediate = tanh(fc_1(encoded))
        mid = jnp.tanh(jnp.dot(enc, w_fc1_ref[...],
                               preferred_element_type=jnp.float32)
                       + b_fc1_ref[...])
        # prediction = fc_2(intermediate): width-1 head -> VPU mul + lane reduce
        pred = (jnp.sum(mid * w_fc2_ref[...], axis=-1, keepdims=True)
                + b_fc2_ref[0, 0])
        o_ref[...] = pred.astype(o_ref.dtype)

    return kernel


def acoustic_rnn_forward(x, lengths, params, *, num_layers, hidden, tile_b=8):
    """x: [B, T, audio_dim] f32 (batch_first); lengths: [B] int. Returns [B, 1]."""
    B, T, D = x.shape
    assert B % tile_b == 0, "pad the batch to a multiple of tile_b"

    # Time-major layout so the kernel indexes timesteps on the leading axis.
    x_tm = jnp.transpose(x, (1, 0, 2)).astype(jnp.float32)      # [T, B, D]
    len2d = lengths.reshape(B, 1).astype(jnp.int32)             # [B, 1]

    weights = []
    for l in range(num_layers):
        weights += [params[f"gru{l}_w_ih"], params[f"gru{l}_w_hh"],
                    params[f"gru{l}_b_ih"], params[f"gru{l}_b_hh"]]
    weights += [params["lin_w"], params["lin_b"],
                params["fc1_w"], params["fc1_b"], params["fc2_w"]]

    # Weights: full blocks, constant index_map -> loaded once, VMEM-resident.
    resident = lambda a: pl.BlockSpec(a.shape, lambda i: (0, 0))
    in_specs = ([pl.BlockSpec((T, tile_b, D), lambda i: (0, i, 0)),   # x stream
                 pl.BlockSpec((tile_b, 1), lambda i: (i, 0))]         # lengths
                + [resident(w) for w in weights]
                + [pl.BlockSpec(memory_space=pltpu.MemorySpace.SMEM)])  # fc_2 bias

    kernel = _make_acoustic_rnn_kernel(num_layers, T, hidden)
    return pl.pallas_call(
        kernel,
        out_shape=jax.ShapeDtypeStruct((B, 1), jnp.float32),
        grid=(B // tile_b,),
        in_specs=in_specs,
        out_specs=pl.BlockSpec((tile_b, 1), lambda i: (i, 0)),
        scratch_shapes=[
            pltpu.VMEM((T, tile_b, 3 * hidden), jnp.float32),  # input gates
            pltpu.VMEM((T, tile_b, hidden), jnp.float32),      # inter-layer seq
        ],
        compiler_params=pltpu.CompilerParams(
            dimension_semantics=("parallel",)),
    )(x_tm, len2d, *weights, params["fc2_b"])


def init_params(key, audio_dim, hidden, fc_hidden, num_layers):
    """Deterministic synthetic params; all weights stored transposed [in, out]."""
    keys = iter(jax.random.split(key, 4 * num_layers + 6))
    s = 0.2
    p = {}
    d_in = audio_dim
    for l in range(num_layers):
        p[f"gru{l}_w_ih"] = s * jax.random.normal(next(keys), (d_in, 3 * hidden), jnp.float32)
        p[f"gru{l}_w_hh"] = s * jax.random.normal(next(keys), (hidden, 3 * hidden), jnp.float32)
        p[f"gru{l}_b_ih"] = s * jax.random.normal(next(keys), (1, 3 * hidden), jnp.float32)
        p[f"gru{l}_b_hh"] = s * jax.random.normal(next(keys), (1, 3 * hidden), jnp.float32)
        d_in = hidden
    p["lin_w"] = s * jax.random.normal(next(keys), (hidden, fc_hidden), jnp.float32)
    p["lin_b"] = s * jax.random.normal(next(keys), (1, fc_hidden), jnp.float32)
    p["fc1_w"] = s * jax.random.normal(next(keys), (fc_hidden, fc_hidden), jnp.float32)
    p["fc1_b"] = s * jax.random.normal(next(keys), (1, fc_hidden), jnp.float32)
    p["fc2_w"] = s * jax.random.normal(next(keys), (1, fc_hidden), jnp.float32)  # row form
    p["fc2_b"] = s * jax.random.normal(next(keys), (1, 1), jnp.float32)
    return p


def acoustic_rnn_ref(x, lengths, params, *, num_layers, hidden):
    """Pure-JAX reference of the same forward pass (masked GRU, f32)."""
    HI = jax.lax.Precision.HIGHEST
    B, T, _ = x.shape
    H = hidden
    seq = x
    h = jnp.zeros((B, H), jnp.float32)
    for l in range(num_layers):
        w_ih, w_hh = params[f"gru{l}_w_ih"], params[f"gru{l}_w_hh"]
        b_ih, b_hh = params[f"gru{l}_b_ih"], params[f"gru{l}_b_hh"]
        h = jnp.zeros((B, H), jnp.float32)
        outs = []
        for t in range(T):
            xg = jnp.dot(seq[:, t, :], w_ih, precision=HI) + b_ih
            hg = jnp.dot(h, w_hh, precision=HI) + b_hh
            r = jax.nn.sigmoid(xg[:, :H] + hg[:, :H])
            z = jax.nn.sigmoid(xg[:, H:2 * H] + hg[:, H:2 * H])
            n = jnp.tanh(xg[:, 2 * H:] + r * hg[:, 2 * H:])
            h_new = (1.0 - z) * n + z * h
            h = jnp.where((t < lengths)[:, None], h_new, h)
            outs.append(h)
        seq = jnp.stack(outs, axis=1)
    enc = jnp.tanh(jnp.dot(h, params["lin_w"], precision=HI) + params["lin_b"])
    mid = jnp.tanh(jnp.dot(enc, params["fc1_w"], precision=HI) + params["fc1_b"])
    return (jnp.sum(mid * params["fc2_w"], axis=-1, keepdims=True)
            + params["fc2_b"][0, 0])


if __name__ == "__main__":
    key = jax.random.PRNGKey(0)
    k_x, k_len, k_p = jax.random.split(key, 3)

    B, T = 16, 12
    AUDIO_DIM, GRU_HIDDEN, FC_HIDDEN, NUM_LAYERS = 16, 32, 32, 2
    TILE_B = 8

    x = jax.random.normal(k_x, (B, T, AUDIO_DIM), jnp.float32)
    lengths = jax.random.randint(k_len, (B,), 1, T + 1).astype(jnp.int32)
    params = init_params(k_p, AUDIO_DIM, GRU_HIDDEN, FC_HIDDEN, NUM_LAYERS)

    out = acoustic_rnn_forward(x, lengths, params,
                               num_layers=NUM_LAYERS, hidden=GRU_HIDDEN,
                               tile_b=TILE_B)
    out = jax.block_until_ready(out)

    ref = acoustic_rnn_ref(x, lengths, params,
                           num_layers=NUM_LAYERS, hidden=GRU_HIDDEN)
    assert out.shape == (B, 1), out.shape
    # Tolerance covers possible MXU f32 pass-decomposition differences between
    # the in-kernel matmuls and the HIGHEST-precision XLA reference; structural
    # bugs (gate order, masking, layer plumbing) produce errors >> 1e-2.
    assert jnp.allclose(out, ref, atol=2e-2, rtol=2e-2), (out, ref)

    print("KERNEL_OK")
</pallas_src>

<mosaic_0001>
module attributes {stable_mosaic.version = 11 : i64} {
  func.func @kernel(%arg0: i32, %arg1: memref<12x8x16xf32, #tpu.memory_space<vmem>>, %arg2: memref<8x1xi32, #tpu.memory_space<vmem>>, %arg3: memref<16x96xf32, #tpu.memory_space<vmem>>, %arg4: memref<32x96xf32, #tpu.memory_space<vmem>>, %arg5: memref<1x96xf32, #tpu.memory_space<vmem>>, %arg6: memref<1x96xf32, #tpu.memory_space<vmem>>, %arg7: memref<32x96xf32, #tpu.memory_space<vmem>>, %arg8: memref<32x96xf32, #tpu.memory_space<vmem>>, %arg9: memref<1x96xf32, #tpu.memory_space<vmem>>, %arg10: memref<1x96xf32, #tpu.memory_space<vmem>>, %arg11: memref<32x32xf32, #tpu.memory_space<vmem>>, %arg12: memref<1x32xf32, #tpu.memory_space<vmem>>, %arg13: memref<32x32xf32, #tpu.memory_space<vmem>>, %arg14: memref<1x32xf32, #tpu.memory_space<vmem>>, %arg15: memref<1x32xf32, #tpu.memory_space<vmem>>, %arg16: memref<1x1xf32, #tpu.memory_space<smem>>, %arg17: memref<8x1xf32, #tpu.memory_space<vmem>>, %arg18: memref<12x8x96xf32, #tpu.memory_space<vmem>>, %arg19: memref<12x8x32xf32, #tpu.memory_space<vmem>>) attributes {dimension_semantics = [#tpu.dimension_semantics<parallel>], iteration_bounds = array<i64: 2>, scalar_prefetch = 0 : i64, scratch_operands = 2 : i64, tpu.core_type = #tpu.core_type<tc>, window_params = [{transform_indices = @transform_0, window_bounds = array<i64: 12, 8, 16>}, {transform_indices = @transform_1, window_bounds = array<i64: 8, 1>}, {pipeline_mode = #tpu.pipeline_mode<synchronous>, transform_indices = @transform_2, window_bounds = array<i64: 16, 96>}, {pipeline_mode = #tpu.pipeline_mode<synchronous>, transform_indices = @transform_3, window_bounds = array<i64: 32, 96>}, {pipeline_mode = #tpu.pipeline_mode<synchronous>, transform_indices = @transform_4, window_bounds = array<i64: 1, 96>}, {pipeline_mode = #tpu.pipeline_mode<synchronous>, transform_indices = @transform_5, window_bounds = array<i64: 1, 96>}, {pipeline_mode = #tpu.pipeline_mode<synchronous>, transform_indices = @transform_6, window_bounds = array<i64: 32, 96>}, {pipeline_mode = #tpu.pipeline_mode<synchronous>, transform_indices = @transform_7, window_bounds = array<i64: 32, 96>}, {pipeline_mode = #tpu.pipeline_mode<synchronous>, transform_indices = @transform_8, window_bounds = array<i64: 1, 96>}, {pipeline_mode = #tpu.pipeline_mode<synchronous>, transform_indices = @transform_9, window_bounds = array<i64: 1, 96>}, {pipeline_mode = #tpu.pipeline_mode<synchronous>, transform_indices = @transform_10, window_bounds = array<i64: 32, 32>}, {pipeline_mode = #tpu.pipeline_mode<synchronous>, transform_indices = @transform_11, window_bounds = array<i64: 1, 32>}, {pipeline_mode = #tpu.pipeline_mode<synchronous>, transform_indices = @transform_12, window_bounds = array<i64: 32, 32>}, {pipeline_mode = #tpu.pipeline_mode<synchronous>, transform_indices = @transform_13, window_bounds = array<i64: 1, 32>}, {pipeline_mode = #tpu.pipeline_mode<synchronous>, transform_indices = @transform_14, window_bounds = array<i64: 1, 32>}, {transform_indices = @transform_15, window_bounds = array<i64: 1, 1>}, {transform_indices = @transform_16, window_bounds = array<i64: 8, 1>}]} {
    %c0 = arith.constant 0 : index
    %c0_0 = arith.constant 0 : index
    %0 = vector.load %arg2[%c0, %c0_0] : memref<8x1xi32, #tpu.memory_space<vmem>>, vector<8x1xi32>
    %c0_1 = arith.constant 0 : index
    %c0_2 = arith.constant 0 : index
    %c0_3 = arith.constant 0 : index
    %1 = vector.load %arg1[%c0_1, %c0_2, %c0_3] : memref<12x8x16xf32, #tpu.memory_space<vmem>>, vector<12x8x16xf32>
    %2 = vector.shape_cast %1 : vector<12x8x16xf32> to vector<96x16xf32>
    %c0_4 = arith.constant 0 : index
    %c0_5 = arith.constant 0 : index
    %3 = vector.load %arg3[%c0_4, %c0_5] : memref<16x96xf32, #tpu.memory_space<vmem>>, vector<16x96xf32>
    %cst = arith.constant dense<0.000000e+00> : vector<96x96xf32>
    %4 = tpu.matmul %2, %3, %cst {dimension_numbers = #tpu.dot_dimension_numbers<[1], [0], [0], [1], [0, 0, 1, 1], [], []>} : vector<96x16xf32>, vector<16x96xf32>, vector<96x96xf32> -> vector<96x96xf32>
    %c0_6 = arith.constant 0 : index
    %c0_7 = arith.constant 0 : index
    %5 = vector.load %arg5[%c0_6, %c0_7] : memref<1x96xf32, #tpu.memory_space<vmem>>, vector<1x96xf32>
    %6 = vector.broadcast %5 : vector<1x96xf32> to vector<96x96xf32>
    %7 = arith.addf %4, %6 : vector<96x96xf32>
    %8 = vector.shape_cast %7 : vector<96x96xf32> to vector<12x8x96xf32>
    %c0_8 = arith.constant 0 : index
    %c0_9 = arith.constant 0 : index
    %c0_10 = arith.constant 0 : index
    %9 = vector.load %arg18[%c0_8, %c0_9, %c0_10] : memref<12x8x96xf32, #tpu.memory_space<vmem>>, vector<12x8x96xf32>
    tpu.vector_store %arg18[%c0_8, %c0_9, %c0_10], %8 {strides = array<i32>} : memref<12x8x96xf32, #tpu.memory_space<vmem>>, vector<12x8x96xf32>,
    %c0_11 = arith.constant 0 : index
    %c0_12 = arith.constant 0 : index
    %10 = vector.load %arg4[%c0_11, %c0_12] : memref<32x96xf32, #tpu.memory_space<vmem>>, vector<32x96xf32>
    %c0_13 = arith.constant 0 : index
    %c0_14 = arith.constant 0 : index
    %11 = vector.load %arg6[%c0_13, %c0_14] : memref<1x96xf32, #tpu.memory_space<vmem>>, vector<1x96xf32>
    %cst_15 = arith.constant 0.000000e+00 : f32
    %12 = vector.broadcast %cst_15 : f32 to vector<8x32xf32>
    %c0_i32 = arith.constant 0 : i32
    %13 = arith.index_cast %c0_i32 : i32 to index
    %c0_16 = arith.constant 0 : index
    %c0_17 = arith.constant 0 : index
    %14 = vector.load %arg18[%13, %c0_16, %c0_17] : memref<12x8x96xf32, #tpu.memory_space<vmem>>, vector<1x8x96xf32>
    %15 = vector.shape_cast %14 : vector<1x8x96xf32> to vector<8x96xf32>
    %cst_18 = arith.constant dense<0.000000e+00> : vector<8x96xf32>
    %16 = tpu.matmul %12, %10, %cst_18 {dimension_numbers = #tpu.dot_dimension_numbers<[1], [0], [0], [1], [0, 0, 1, 1], [], []>} : vector<8x32xf32>, vector<32x96xf32>, vector<8x96xf32> -> vector<8x96xf32>
    %17 = vector.broadcast %11 : vector<1x96xf32> to vector<8x96xf32>
    %18 = arith.addf %16, %17 : vector<8x96xf32>
    %19 = vector.extract_strided_slice %15 {offsets = [0, 0], sizes = [8, 32], strides = [1, 1]} : vector<8x96xf32> to vector<8x32xf32>
    %20 = vector.extract_strided_slice %18 {offsets = [0, 0], sizes = [8, 32], strides = [1, 1]} : vector<8x96xf32> to vector<8x32xf32>
    %21 = arith.addf %19, %20 : vector<8x32xf32>
    %22 = arith.negf %21 : vector<8x32xf32>
    %23 = math.exp %22 : vector<8x32xf32>
    %cst_19 = arith.constant 1.000000e+00 : f32
    %24 = vector.broadcast %cst_19 : f32 to vector<8x32xf32>
    %25 = arith.addf %24, %23 : vector<8x32xf32>
    %26 = arith.divf %24, %25 : vector<8x32xf32>
    %27 = vector.extract_strided_slice %15 {offsets = [0, 32], sizes = [8, 32], strides = [1, 1]} : vector<8x96xf32> to vector<8x32xf32>
    %28 = vector.extract_strided_slice %18 {offsets = [0, 32], sizes = [8, 32], strides = [1, 1]} : vector<8x96xf32> to vector<8x32xf32>
    %29 = arith.addf %27, %28 : vector<8x32xf32>
    %30 = arith.negf %29 : vector<8x32xf32>
    %31 = math.exp %30 : vector<8x32xf32>
    %cst_20 = arith.constant 1.000000e+00 : f32
    %32 = vector.broadcast %cst_20 : f32 to vector<8x32xf32>
    %33 = arith.addf %32, %31 : vector<8x32xf32>
    %34 = arith.divf %32, %33 : vector<8x32xf32>
    %35 = vector.extract_strided_slice %15 {offsets = [0, 64], sizes = [8, 32], strides = [1, 1]} : vector<8x96xf32> to vector<8x32xf32>
    %36 = vector.extract_strided_slice %18 {offsets = [0, 64], sizes = [8, 32], strides = [1, 1]} : vector<8x96xf32> to vector<8x32xf32>
    %37 = arith.mulf %26, %36 : vector<8x32xf32>
    %38 = arith.addf %35, %37 : vector<8x32xf32>
    %39 = math.tanh %38 : vector<8x32xf32>
    %cst_21 = arith.constant 1.000000e+00 : f32
    %40 = vector.broadcast %cst_21 : f32 to vector<8x32xf32>
    %41 = arith.subf %40, %34 : vector<8x32xf32>
    %42 = arith.mulf %41, %39 : vector<8x32xf32>
    %43 = arith.mulf %34, %12 : vector<8x32xf32>
    %44 = arith.addf %42, %43 : vector<8x32xf32>
    %45 = vector.broadcast %c0_i32 : i32 to vector<8x1xi32>
    %46 = arith.cmpi slt, %45, %0 : vector<8x1xi32>
    %47 = vector.shape_cast %46 : vector<8x1xi1> to vector<8x1xi1>
    %48 = vector.broadcast %47 : vector<8x1xi1> to vector<8x32xi1>
    %49 = arith.select %48, %44, %12 : vector<8x32xi1>, vector<8x32xf32>
    %50 = arith.index_cast %c0_i32 : i32 to index
    %c0_22 = arith.constant 0 : index
    %c0_23 = arith.constant 0 : index
    %51 = vector.load %arg19[%50, %c0_22, %c0_23] : memref<12x8x32xf32, #tpu.memory_space<vmem>>, vector<1x8x32xf32>
    %52 = vector.shape_cast %51 : vector<1x8x32xf32> to vector<8x32xf32>
    %53 = vector.shape_cast %49 : vector<8x32xf32> to vector<1x8x32xf32>
    tpu.vector_store %arg19[%50, %c0_22, %c0_23], %53 {strides = array<i32>} : memref<12x8x32xf32, #tpu.memory_space<vmem>>, vector<1x8x32xf32>,
    %c1_i32 = arith.constant 1 : i32
    %54 = arith.index_cast %c1_i32 : i32 to index
    %c0_24 = arith.constant 0 : index
    %c0_25 = arith.constant 0 : index
    %55 = vector.load %arg18[%54, %c0_24, %c0_25] : memref<12x8x96xf32, #tpu.memory_space<vmem>>, vector<1x8x96xf32>
    %56 = vector.shape_cast %55 : vector<1x8x96xf32> to vector<8x96xf32>
    %cst_26 = arith.constant dense<0.000000e+00> : vector<8x96xf32>
    %57 = tpu.matmul %49, %10, %cst_26 {dimension_numbers = #tpu.dot_dimension_numbers<[1], [0], [0], [1], [0, 0, 1, 1], [], []>} : vector<8x32xf32>, vector<32x96xf32>, vector<8x96xf32> -> vector<8x96xf32>
    %58 = vector.broadcast %11 : vector<1x96xf32> to vector<8x96xf32>
    %59 = arith.addf %57, %58 : vector<8x96xf32>
    %60 = vector.extract_strided_slice %56 {offsets = [0, 0], sizes = [8, 32], strides = [1, 1]} : vector<8x96xf32> to vector<8x32xf32>
    %61 = vector.extract_strided_slice %59 {offsets = [0, 0], sizes = [8, 32], strides = [1, 1]} : vector<8x96xf32> to vector<8x32xf32>
    %62 = arith.addf %60, %61 : vector<8x32xf32>
    %63 = arith.negf %62 : vector<8x32xf32>
    %64 = math.exp %63 : vector<8x32xf32>
    %cst_27 = arith.constant 1.000000e+00 : f32
    %65 = vector.broadcast %cst_27 : f32 to vector<8x32xf32>
    %66 = arith.addf %65, %64 : vector<8x32xf32>
    %67 = arith.divf %65, %66 : vector<8x32xf32>
    %68 = vector.extract_strided_slice %56 {offsets = [0, 32], sizes = [8, 32], strides = [1, 1]} : vector<8x96xf32> to vector<8x32xf32>
    %69 = vector.extract_strided_slice %59 {offsets = [0, 32], sizes = [8, 32], strides = [1, 1]} : vector<8x96xf32> to vector<8x32xf32>
    %70 = arith.addf %68, %69 : vector<8x32xf32>
    %71 = arith.negf %70 : vector<8x32xf32>
    %72 = math.exp %71 : vector<8x32xf32>
    %cst_28 = arith.constant 1.000000e+00 : f32
    %73 = vector.broadcast %cst_28 : f32 to vector<8x32xf32>
    %74 = arith.addf %73, %72 : vector<8x32xf32>
    %75 = arith.divf %73, %74 : vector<8x32xf32>
    %76 = vector.extract_strided_slice %56 {offsets = [0, 64], sizes = [8, 32], strides = [1, 1]} : vector<8x96xf32> to vector<8x32xf32>
    %77 = vector.extract_strided_slice %59 {offsets = [0, 64], sizes = [8, 32], strides = [1, 1]} : vector<8x96xf32> to vector<8x32xf32>
    %78 = arith.mulf %67, %77 : vector<8x32xf32>
    %79 = arith.addf %76, %78 : vector<8x32xf32>
    %80 = math.tanh %79 : vector<8x32xf32>
    %cst_29 = arith.constant 1.000000e+00 : f32
    %81 = vector.broadcast %cst_29 : f32 to vector<8x32xf32>
    %82 = arith.subf %81, %75 : vector<8x32xf32>
    %83 = arith.mulf %82, %80 : vector<8x32xf32>
    %84 = arith.mulf %75, %49 : vector<8x32xf32>
    %85 = arith.addf %83, %84 : vector<8x32xf32>
    %86 = vector.broadcast %c1_i32 : i32 to vector<8x1xi32>
    %87 = arith.cmpi slt, %86, %0 : vector<8x1xi32>
    %88 = vector.shape_cast %87 : vector<8x1xi1> to vector<8x1xi1>
    %89 = vector.broadcast %88 : vector<8x1xi1> to vector<8x32xi1>
    %90 = arith.select %89, %85, %49 : vector<8x32xi1>, vector<8x32xf32>
    %91 = arith.index_cast %c1_i32 : i32 to index
    %c0_30 = arith.constant 0 : index
    %c0_31 = arith.constant 0 : index
    %92 = vector.load %arg19[%91, %c0_30, %c0_31] : memref<12x8x32xf32, #tpu.memory_space<vmem>>, vector<1x8x32xf32>
    %93 = vector.shape_cast %92 : vector<1x8x32xf32> to vector<8x32xf32>
    %94 = vector.shape_cast %90 : vector<8x32xf32> to vector<1x8x32xf32>
    tpu.vector_store %arg19[%91, %c0_30, %c0_31], %94 {strides = array<i32>} : memref<12x8x32xf32, #tpu.memory_space<vmem>>, vector<1x8x32xf32>,
    %c2_i32 = arith.constant 2 : i32
    %95 = arith.index_cast %c2_i32 : i32 to index
    %c0_32 = arith.constant 0 : index
    %c0_33 = arith.constant 0 : index
    %96 = vector.load %arg18[%95, %c0_32, %c0_33] : memref<12x8x96xf32, #tpu.memory_space<vmem>>, vector<1x8x96xf32>
    %97 = vector.shape_cast %96 : vector<1x8x96xf32> to vector<8x96xf32>
    %cst_34 = arith.constant dense<0.000000e+00> : vector<8x96xf32>
    %98 = tpu.matmul %90, %10, %cst_34 {dimension_numbers = #tpu.dot_dimension_numbers<[1], [0], [0], [1], [0, 0, 1, 1], [], []>} : vector<8x32xf32>, vector<32x96xf32>, vector<8x96xf32> -> vector<8x96xf32>
    %99 = vector.broadcast %11 : vector<1x96xf32> to vector<8x96xf32>
    %100 = arith.addf %98, %99 : vector<8x96xf32>
    %101 = vector.extract_strided_slice %97 {offsets = [0, 0], sizes = [8, 32], strides = [1, 1]} : vector<8x96xf32> to vector<8x32xf32>
    %102 = vector.extract_strided_slice %100 {offsets = [0, 0], sizes = [8, 32], strides = [1, 1]} : vector<8x96xf32> to vector<8x32xf32>
    %103 = arith.addf %101, %102 : vector<8x32xf32>
    %104 = arith.negf %103 : vector<8x32xf32>
    %105 = math.exp %104 : vector<8x32xf32>
    %cst_35 = arith.constant 1.000000e+00 : f32
    %106 = vector.broadcast %cst_35 : f32 to vector<8x32xf32>
    %107 = arith.addf %106, %105 : vector<8x32xf32>
    %108 = arith.divf %106, %107 : vector<8x32xf32>
    %109 = vector.extract_strided_slice %97 {offsets = [0, 32], sizes = [8, 32], strides = [1, 1]} : vector<8x96xf32> to vector<8x32xf32>
    %110 = vector.extract_strided_slice %100 {offsets = [0, 32], sizes = [8, 32], strides = [1, 1]} : vector<8x96xf32> to vector<8x32xf32>
    %111 = arith.addf %109, %110 : vector<8x32xf32>
    %112 = arith.negf %111 : vector<8x32xf32>
    %113 = math.exp %112 : vector<8x32xf32>
    %cst_36 = arith.constant 1.000000e+00 : f32
    %114 = vector.broadcast %cst_36 : f32 to vector<8x32xf32>
    %115 = arith.addf %114, %113 : vector<8x32xf32>
    %116 = arith.divf %114, %115 : vector<8x32xf32>
    %117 = vector.extract_strided_slice %97 {offsets = [0, 64], sizes = [8, 32], strides = [1, 1]} : vector<8x96xf32> to vector<8x32xf32>
    %118 = vector.extract_strided_slice %100 {offsets = [0, 64], sizes = [8, 32], strides = [1, 1]} : vector<8x96xf32> to vector<8x32xf32>
    %119 = arith.mulf %108, %118 : vector<8x32xf32>
    %120 = arith.addf %117, %119 : vector<8x32xf32>
    %121 = math.tanh %120 : vector<8x32xf32>
    %cst_37 = arith.constant 1.000000e+00 : f32
    %122 = vector.broadcast %cst_37 : f32 to vector<8x32xf32>
    %123 = arith.subf %122, %116 : vector<8x32xf32>
    %124 = arith.mulf %123, %121 : vector<8x32xf32>
    %125 = arith.mulf %116, %90 : vector<8x32xf32>
    %126 = arith.addf %124, %125 : vector<8x32xf32>
    %127 = vector.broadcast %c2_i32 : i32 to vector<8x1xi32>
    %128 = arith.cmpi slt, %127, %0 : vector<8x1xi32>
    %129 = vector.shape_cast %128 : vector<8x1xi1> to vector<8x1xi1>
    %130 = vector.broadcast %129 : vector<8x1xi1> to vector<8x32xi1>
    %131 = arith.select %130, %126, %90 : vector<8x32xi1>, vector<8x32xf32>
    %132 = arith.index_cast %c2_i32 : i32 to index
    %c0_38 = arith.constant 0 : index
    %c0_39 = arith.constant 0 : index
    %133 = vector.load %arg19[%132, %c0_38, %c0_39] : memref<12x8x32xf32, #tpu.memory_space<vmem>>, vector<1x8x32xf32>
    %134 = vector.shape_cast %133 : vector<1x8x32xf32> to vector<8x32xf32>
    %135 = vector.shape_cast %131 : vector<8x32xf32> to vector<1x8x32xf32>
    tpu.vector_store %arg19[%132, %c0_38, %c0_39], %135 {strides = array<i32>} : memref<12x8x32xf32, #tpu.memory_space<vmem>>, vector<1x8x32xf32>,
    %c3_i32 = arith.constant 3 : i32
    %136 = arith.index_cast %c3_i32 : i32 to index
    %c0_40 = arith.constant 0 : index
    %c0_41 = arith.constant 0 : index
    %137 = vector.load %arg18[%136, %c0_40, %c0_41] : memref<12x8x96xf32, #tpu.memory_space<vmem>>, vector<1x8x96xf32>
    %138 = vector.shape_cast %137 : vector<1x8x96xf32> to vector<8x96xf32>
    %cst_42 = arith.constant dense<0.000000e+00> : vector<8x96xf32>
    %139 = tpu.matmul %131, %10, %cst_42 {dimension_numbers = #tpu.dot_dimension_numbers<[1], [0], [0], [1], [0, 0, 1, 1], [], []>} : vector<8x32xf32>, vector<32x96xf32>, vector<8x96xf32> -> vector<8x96xf32>
    %140 = vector.broadcast %11 : vector<1x96xf32> to vector<8x96xf32>
    %141 = arith.addf %139, %140 : vector<8x96xf32>
    %142 = vector.extract_strided_slice %138 {offsets = [0, 0], sizes = [8, 32], strides = [1, 1]} : vector<8x96xf32> to vector<8x32xf32>
    %143 = vector.extract_strided_slice %141 {offsets = [0, 0], sizes = [8, 32], strides = [1, 1]} : vector<8x96xf32> to vector<8x32xf32>
    %144 = arith.addf %142, %143 : vector<8x32xf32>
    %145 = arith.negf %144 : vector<8x32xf32>
    %146 = math.exp %145 : vector<8x32xf32>
    %cst_43 = arith.constant 1.000000e+00 : f32
    %147 = vector.broadcast %cst_43 : f32 to vector<8x32xf32>
    %148 = arith.addf %147, %146 : vector<8x32xf32>
    %149 = arith.divf %147, %148 : vector<8x32xf32>
    %150 = vector.extract_strided_slice %138 {offsets = [0, 32], sizes = [8, 32], strides = [1, 1]} : vector<8x96xf32> to vector<8x32xf32>
    %151 = vector.extract_strided_slice %141 {offsets = [0, 32], sizes = [8, 32], strides = [1, 1]} : vector<8x96xf32> to vector<8x32xf32>
    %152 = arith.addf %150, %151 : vector<8x32xf32>
    %153 = arith.negf %152 : vector<8x32xf32>
    %154 = math.exp %153 : vector<8x32xf32>
    %cst_44 = arith.constant 1.000000e+00 : f32
    %155 = vector.broadcast %cst_44 : f32 to vector<8x32xf32>
    %156 = arith.addf %155, %154 : vector<8x32xf32>
    %157 = arith.divf %155, %156 : vector<8x32xf32>
    %158 = vector.extract_strided_slice %138 {offsets = [0, 64], sizes = [8, 32], strides = [1, 1]} : vector<8x96xf32> to vector<8x32xf32>
    %159 = vector.extract_strided_slice %141 {offsets = [0, 64], sizes = [8, 32], strides = [1, 1]} : vector<8x96xf32> to vector<8x32xf32>
    %160 = arith.mulf %149, %159 : vector<8x32xf32>
    %161 = arith.addf %158, %160 : vector<8x32xf32>
    %162 = math.tanh %161 : vector<8x32xf32>
    %cst_45 = arith.constant 1.000000e+00 : f32
    %163 = vector.broadcast %cst_45 : f32 to vector<8x32xf32>
    %164 = arith.subf %163, %157 : vector<8x32xf32>
    %165 = arith.mulf %164, %162 : vector<8x32xf32>
    %166 = arith.mulf %157, %131 : vector<8x32xf32>
    %167 = arith.addf %165, %166 : vector<8x32xf32>
    %168 = vector.broadcast %c3_i32 : i32 to vector<8x1xi32>
    %169 = arith.cmpi slt, %168, %0 : vector<8x1xi32>
    %170 = vector.shape_cast %169 : vector<8x1xi1> to vector<8x1xi1>
    %171 = vector.broadcast %170 : vector<8x1xi1> to vector<8x32xi1>
    %172 = arith.select %171, %167, %131 : vector<8x32xi1>, vector<8x32xf32>
    %173 = arith.index_cast %c3_i32 : i32 to index
    %c0_46 = arith.constant 0 : index
    %c0_47 = arith.constant 0 : index
    %174 = vector.load %arg19[%173, %c0_46, %c0_47] : memref<12x8x32xf32, #tpu.memory_space<vmem>>, vector<1x8x32xf32>
    %175 = vector.shape_cast %174 : vector<1x8x32xf32> to vector<8x32xf32>
    %176 = vector.shape_cast %172 : vector<8x32xf32> to vector<1x8x32xf32>
    tpu.vector_store %arg19[%173, %c0_46, %c0_47], %176 {strides = array<i32>} : memref<12x8x32xf32, #tpu.memory_space<vmem>>, vector<1x8x32xf32>,
    %c4_i32 = arith.constant 4 : i32
    %177 = arith.index_cast %c4_i32 : i32 to index
    %c0_48 = arith.constant 0 : index
    %c0_49 = arith.constant 0 : index
    %178 = vector.load %arg18[%177, %c0_48, %c0_49] : memref<12x8x96xf32, #tpu.memory_space<vmem>>, vector<1x8x96xf32>
    %179 = vector.shape_cast %178 : vector<1x8x96xf32> to vector<8x96xf32>
    %cst_50 = arith.constant dense<0.000000e+00> : vector<8x96xf32>
    %180 = tpu.matmul %172, %10, %cst_50 {dimension_numbers = #tpu.dot_dimension_numbers<[1], [0], [0], [1], [0, 0, 1, 1], [], []>} : vector<8x32xf32>, vector<32x96xf32>, vector<8x96xf32> -> vector<8x96xf32>
    %181 = vector.broadcast %11 : vector<1x96xf32> to vector<8x96xf32>
    %182 = arith.addf %180, %181 : vector<8x96xf32>
    %183 = vector.extract_strided_slice %179 {offsets = [0, 0], sizes = [8, 32], strides = [1, 1]} : vector<8x96xf32> to vector<8x32xf32>
    %184 = vector.extract_strided_slice %182 {offsets = [0, 0], sizes = [8, 32], strides = [1, 1]} : vector<8x96xf32> to vector<8x32xf32>
    %185 = arith.addf %183, %184 : vector<8x32xf32>
    %186 = arith.negf %185 : vector<8x32xf32>
    %187 = math.exp %186 : vector<8x32xf32>
    %cst_51 = arith.constant 1.000000e+00 : f32
    %188 = vector.broadcast %cst_51 : f32 to vector<8x32xf32>
    %189 = arith.addf %188, %187 : vector<8x32xf32>
    %190 = arith.divf %188, %189 : vector<8x32xf32>
    %191 = vector.extract_strided_slice %179 {offsets = [0, 32], sizes = [8, 32], strides = [1, 1]} : vector<8x96xf32> to vector<8x32xf32>
    %192 = vector.extract_strided_slice %182 {offsets = [0, 32], sizes = [8, 32], strides = [1, 1]} : vector<8x96xf32> to vector<8x32xf32>
    %193 = arith.addf %191, %192 : vector<8x32xf32>
    %194 = arith.negf %193 : vector<8x32xf32>
    %195 = math.exp %194 : vector<8x32xf32>
    %cst_52 = arith.constant 1.000000e+00 : f32
    %196 = vector.broadcast %cst_52 : f32 to vector<8x32xf32>
    %197 = arith.addf %196, %195 : vector<8x32xf32>
    %198 = arith.divf %196, %197 : vector<8x32xf32>
    %199 = vector.extract_strided_slice %179 {offsets = [0, 64], sizes = [8, 32], strides = [1, 1]} : vector<8x96xf32> to vector<8x32xf32>
    %200 = vector.extract_strided_slice %182 {offsets = [0, 64], sizes = [8, 32], strides = [1, 1]} : vector<8x96xf32> to vector<8x32xf32>
    %201 = arith.mulf %190, %200 : vector<8x32xf32>
    %202 = arith.addf %199, %201 : vector<8x32xf32>
    %203 = math.tanh %202 : vector<8x32xf32>
    %cst_53 = arith.constant 1.000000e+00 : f32
    %204 = vector.broadcast %cst_53 : f32 to vector<8x32xf32>
    %205 = arith.subf %204, %198 : vector<8x32xf32>
    %206 = arith.mulf %205, %203 : vector<8x32xf32>
    %207 = arith.mulf %198, %172 : vector<8x32xf32>
    %208 = arith.addf %206, %207 : vector<8x32xf32>
    %209 = vector.broadcast %c4_i32 : i32 to vector<8x1xi32>
    %210 = arith.cmpi slt, %209, %0 : vector<8x1xi32>
    %211 = vector.shape_cast %210 : vector<8x1xi1> to vector<8x1xi1>
    %212 = vector.broadcast %211 : vector<8x1xi1> to vector<8x32xi1>
    %213 = arith.select %212, %208, %172 : vector<8x32xi1>, vector<8x32xf32>
    %214 = arith.index_cast %c4_i32 : i32 to index
    %c0_54 = arith.constant 0 : index
    %c0_55 = arith.constant 0 : index
    %215 = vector.load %arg19[%214, %c0_54, %c0_55] : memref<12x8x32xf32, #tpu.memory_space<vmem>>, vector<1x8x32xf32>
    %216 = vector.shape_cast %215 : vector<1x8x32xf32> to vector<8x32xf32>
    %217 = vector.shape_cast %213 : vector<8x32xf32> to vector<1x8x32xf32>
    tpu.vector_store %arg19[%214, %c0_54, %c0_55], %217 {strides = array<i32>} : memref<12x8x32xf32, #tpu.memory_space<vmem>>, vector<1x8x32xf32>,
    %c5_i32 = arith.constant 5 : i32
    %218 = arith.index_cast %c5_i32 : i32 to index
    %c0_56 = arith.constant 0 : index
    %c0_57 = arith.constant 0 : index
    %219 = vector.load %arg18[%218, %c0_56, %c0_57] : memref<12x8x96xf32, #tpu.memory_space<vmem>>, vector<1x8x96xf32>
    %220 = vector.shape_cast %219 : vector<1x8x96xf32> to vector<8x96xf32>
    %cst_58 = arith.constant dense<0.000000e+00> : vector<8x96xf32>
    %221 = tpu.matmul %213, %10, %cst_58 {dimension_numbers = #tpu.dot_dimension_numbers<[1], [0], [0], [1], [0, 0, 1, 1], [], []>} : vector<8x32xf32>, vector<32x96xf32>, vector<8x96xf32> -> vector<8x96xf32>
    %222 = vector.broadcast %11 : vector<1x96xf32> to vector<8x96xf32>
    %223 = arith.addf %221, %222 : vector<8x96xf32>
    %224 = vector.extract_strided_slice %220 {offsets = [0, 0], sizes = [8, 32], strides = [1, 1]} : vector<8x96xf32> to vector<8x32xf32>
    %225 = vector.extract_strided_slice %223 {offsets = [0, 0], sizes = [8, 32], strides = [1, 1]} : vector<8x96xf32> to vector<8x32xf32>
    %226 = arith.addf %224, %225 : vector<8x32xf32>
    %227 = arith.negf %226 : vector<8x32xf32>
    %228 = math.exp %227 : vector<8x32xf32>
    %cst_59 = arith.constant 1.000000e+00 : f32
    %229 = vector.broadcast %cst_59 : f32 to vector<8x32xf32>
    %230 = arith.addf %229, %228 : vector<8x32xf32>
    %231 = arith.divf %229, %230 : vector<8x32xf32>
    %232 = vector.extract_strided_slice %220 {offsets = [0, 32], sizes = [8, 32], strides = [1, 1]} : vector<8x96xf32> to vector<8x32xf32>
    %233 = vector.extract_strided_slice %223 {offsets = [0, 32], sizes = [8, 32], strides = [1, 1]} : vector<8x96xf32> to vector<8x32xf32>
    %234 = arith.addf %232, %233 : vector<8x32xf32>
    %235 = arith.negf %234 : vector<8x32xf32>
    %236 = math.exp %235 : vector<8x32xf32>
    %cst_60 = arith.constant 1.000000e+00 : f32
    %237 = vector.broadcast %cst_60 : f32 to vector<8x32xf32>
    %238 = arith.addf %237, %236 : vector<8x32xf32>
    %239 = arith.divf %237, %238 : vector<8x32xf32>
    %240 = vector.extract_strided_slice %220 {offsets = [0, 64], sizes = [8, 32], strides = [1, 1]} : vector<8x96xf32> to vector<8x32xf32>
    %241 = vector.extract_strided_slice %223 {offsets = [0, 64], sizes = [8, 32], strides = [1, 1]} : vector<8x96xf32> to vector<8x32xf32>
    %242 = arith.mulf %231, %241 : vector<8x32xf32>
    %243 = arith.addf %240, %242 : vector<8x32xf32>
    %244 = math.tanh %243 : vector<8x32xf32>
    %cst_61 = arith.constant 1.000000e+00 : f32
    %245 = vector.broadcast %cst_61 : f32 to vector<8x32xf32>
    %246 = arith.subf %245, %239 : vector<8x32xf32>
    %247 = arith.mulf %246, %244 : vector<8x32xf32>
    %248 = arith.mulf %239, %213 : vector<8x32xf32>
    %249 = arith.addf %247, %248 : vector<8x32xf32>
    %250 = vector.broadcast %c5_i32 : i32 to vector<8x1xi32>
    %251 = arith.cmpi slt, %250, %0 : vector<8x1xi32>
    %252 = vector.shape_cast %251 : vector<8x1xi1> to vector<8x1xi1>
    %253 = vector.broadcast %252 : vector<8x1xi1> to vector<8x32xi1>
    %254 = arith.select %253, %249, %213 : vector<8x32xi1>, vector<8x32xf32>
    %255 = arith.index_cast %c5_i32 : i32 to index
    %c0_62 = arith.constant 0 : index
    %c0_63 = arith.constant 0 : index
    %256 = vector.load %arg19[%255, %c0_62, %c0_63] : memref<12x8x32xf32, #tpu.memory_space<vmem>>, vector<1x8x32xf32>
    %257 = vector.shape_cast %256 : vector<1x8x32xf32> to vector<8x32xf32>
    %258 = vector.shape_cast %254 : vector<8x32xf32> to vector<1x8x32xf32>
    tpu.vector_store %arg19[%255, %c0_62, %c0_63], %258 {strides = array<i32>} : memref<12x8x32xf32, #tpu.memory_space<vmem>>, vector<1x8x32xf32>,
    %c6_i32 = arith.constant 6 : i32
    %259 = arith.index_cast %c6_i32 : i32 to index
    %c0_64 = arith.constant 0 : index
    %c0_65 = arith.constant 0 : index
    %260 = vector.load %arg18[%259, %c0_64, %c0_65] : memref<12x8x96xf32, #tpu.memory_space<vmem>>, vector<1x8x96xf32>
    %261 = vector.shape_cast %260 : vector<1x8x96xf32> to vector<8x96xf32>
    %cst_66 = arith.constant dense<0.000000e+00> : vector<8x96xf32>
    %262 = tpu.matmul %254, %10, %cst_66 {dimension_numbers = #tpu.dot_dimension_numbers<[1], [0], [0], [1], [0, 0, 1, 1], [], []>} : vector<8x32xf32>, vector<32x96xf32>, vector<8x96xf32> -> vector<8x96xf32>
    %263 = vector.broadcast %11 : vector<1x96xf32> to vector<8x96xf32>
    %264 = arith.addf %262, %263 : vector<8x96xf32>
    %265 = vector.extract_strided_slice %261 {offsets = [0, 0], sizes = [8, 32], strides = [1, 1]} : vector<8x96xf32> to vector<8x32xf32>
    %266 = vector.extract_strided_slice %264 {offsets = [0, 0], sizes = [8, 32], strides = [1, 1]} : vector<8x96xf32> to vector<8x32xf32>
    %267 = arith.addf %265, %266 : vector<8x32xf32>
    %268 = arith.negf %267 : vector<8x32xf32>
    %269 = math.exp %268 : vector<8x32xf32>
    %cst_67 = arith.constant 1.000000e+00 : f32
    %270 = vector.broadcast %cst_67 : f32 to vector<8x32xf32>
    %271 = arith.addf %270, %269 : vector<8x32xf32>
    %272 = arith.divf %270, %271 : vector<8x32xf32>
    %273 = vector.extract_strided_slice %261 {offsets = [0, 32], sizes = [8, 32], strides = [1, 1]} : vector<8x96xf32> to vector<8x32xf32>
    %274 = vector.extract_strided_slice %264 {offsets = [0, 32], sizes = [8, 32], strides = [1, 1]} : vector<8x96xf32> to vector<8x32xf32>
    %275 = arith.addf %273, %274 : vector<8x32xf32>
    %276 = arith.negf %275 : vector<8x32xf32>
    %277 = math.exp %276 : vector<8x32xf32>
    %cst_68 = arith.constant 1.000000e+00 : f32
    %278 = vector.broadcast %cst_68 : f32 to vector<8x32xf32>
    %279 = arith.addf %278, %277 : vector<8x32xf32>
    %280 = arith.divf %278, %279 : vector<8x32xf32>
    %281 = vector.extract_strided_slice %261 {offsets = [0, 64], sizes = [8, 32], strides = [1, 1]} : vector<8x96xf32> to vector<8x32xf32>
    %282 = vector.extract_strided_slice %264 {offsets = [0, 64], sizes = [8, 32], strides = [1, 1]} : vector<8x96xf32> to vector<8x32xf32>
    %283 = arith.mulf %272, %282 : vector<8x32xf32>
    %284 = arith.addf %281, %283 : vector<8x32xf32>
    %285 = math.tanh %284 : vector<8x32xf32>
    %cst_69 = arith.constant 1.000000e+00 : f32
    %286 = vector.broadcast %cst_69 : f32 to vector<8x32xf32>
    %287 = arith.subf %286, %280 : vector<8x32xf32>
    %288 = arith.mulf %287, %285 : vector<8x32xf32>
    %289 = arith.mulf %280, %254 : vector<8x32xf32>
    %290 = arith.addf %288, %289 : vector<8x32xf32>
    %291 = vector.broadcast %c6_i32 : i32 to vector<8x1xi32>
    %292 = arith.cmpi slt, %291, %0 : vector<8x1xi32>
    %293 = vector.shape_cast %292 : vector<8x1xi1> to vector<8x1xi1>
    %294 = vector.broadcast %293 : vector<8x1xi1> to vector<8x32xi1>
    %295 = arith.select %294, %290, %254 : vector<8x32xi1>, vector<8x32xf32>
    %296 = arith.index_cast %c6_i32 : i32 to index
    %c0_70 = arith.constant 0 : index
    %c0_71 = arith.constant 0 : index
    %297 = vector.load %arg19[%296, %c0_70, %c0_71] : memref<12x8x32xf32, #tpu.memory_space<vmem>>, vector<1x8x32xf32>
    %298 = vector.shape_cast %297 : vector<1x8x32xf32> to vector<8x32xf32>
    %299 = vector.shape_cast %295 : vector<8x32xf32> to vector<1x8x32xf32>
    tpu.vector_store %arg19[%296, %c0_70, %c0_71], %299 {strides = array<i32>} : memref<12x8x32xf32, #tpu.memory_space<vmem>>, vector<1x8x32xf32>,
    %c7_i32 = arith.constant 7 : i32
    %300 = arith.index_cast %c7_i32 : i32 to index
    %c0_72 = arith.constant 0 : index
    %c0_73 = arith.constant 0 : index
    %301 = vector.load %arg18[%300, %c0_72, %c0_73] : memref<12x8x96xf32, #tpu.memory_space<vmem>>, vector<1x8x96xf32>
    %302 = vector.shape_cast %301 : vector<1x8x96xf32> to vector<8x96xf32>
    %cst_74 = arith.constant dense<0.000000e+00> : vector<8x96xf32>
    %303 = tpu.matmul %295, %10, %cst_74 {dimension_numbers = #tpu.dot_dimension_numbers<[1], [0], [0], [1], [0, 0, 1, 1], [], []>} : vector<8x32xf32>, vector<32x96xf32>, vector<8x96xf32> -> vector<8x96xf32>
    %304 = vector.broadcast %11 : vector<1x96xf32> to vector<8x96xf32>
    %305 = arith.addf %303, %304 : vector<8x96xf32>
    %306 = vector.extract_strided_slice %302 {offsets = [0, 0], sizes = [8, 32], strides = [1, 1]} : vector<8x96xf32> to vector<8x32xf32>
    %307 = vector.extract_strided_slice %305 {offsets = [0, 0], sizes = [8, 32], strides = [1, 1]} : vector<8x96xf32> to vector<8x32xf32>
    %308 = arith.addf %306, %307 : vector<8x32xf32>
    %309 = arith.negf %308 : vector<8x32xf32>
    %310 = math.exp %309 : vector<8x32xf32>
    %cst_75 = arith.constant 1.000000e+00 : f32
    %311 = vector.broadcast %cst_75 : f32 to vector<8x32xf32>
    %312 = arith.addf %311, %310 : vector<8x32xf32>
    %313 = arith.divf %311, %312 : vector<8x32xf32>
    %314 = vector.extract_strided_slice %302 {offsets = [0, 32], sizes = [8, 32], strides = [1, 1]} : vector<8x96xf32> to vector<8x32xf32>
    %315 = vector.extract_strided_slice %305 {offsets = [0, 32], sizes = [8, 32], strides = [1, 1]} : vector<8x96xf32> to vector<8x32xf32>
    %316 = arith.addf %314, %315 : vector<8x32xf32>
    %317 = arith.negf %316 : vector<8x32xf32>
    %318 = math.exp %317 : vector<8x32xf32>
    %cst_76 = arith.constant 1.000000e+00 : f32
    %319 = vector.broadcast %cst_76 : f32 to vector<8x32xf32>
    %320 = arith.addf %319, %318 : vector<8x32xf32>
    %321 = arith.divf %319, %320 : vector<8x32xf32>
    %322 = vector.extract_strided_slice %302 {offsets = [0, 64], sizes = [8, 32], strides = [1, 1]} : vector<8x96xf32> to vector<8x32xf32>
    %323 = vector.extract_strided_slice %305 {offsets = [0, 64], sizes = [8, 32], strides = [1, 1]} : vector<8x96xf32> to vector<8x32xf32>
    %324 = arith.mulf %313, %323 : vector<8x32xf32>
    %325 = arith.addf %322, %324 : vector<8x32xf32>
    %326 = math.tanh %325 : vector<8x32xf32>
    %cst_77 = arith.constant 1.000000e+00 : f32
    %327 = vector.broadcast %cst_77 : f32 to vector<8x32xf32>
    %328 = arith.subf %327, %321 : vector<8x32xf32>
    %329 = arith.mulf %328, %326 : vector<8x32xf32>
    %330 = arith.mulf %321, %295 : vector<8x32xf32>
    %331 = arith.addf %329, %330 : vector<8x32xf32>
    %332 = vector.broadcast %c7_i32 : i32 to vector<8x1xi32>
    %333 = arith.cmpi slt, %332, %0 : vector<8x1xi32>
    %334 = vector.shape_cast %333 : vector<8x1xi1> to vector<8x1xi1>
    %335 = vector.broadcast %334 : vector<8x1xi1> to vector<8x32xi1>
    %336 = arith.select %335, %331, %295 : vector<8x32xi1>, vector<8x32xf32>
    %337 = arith.index_cast %c7_i32 : i32 to index
    %c0_78 = arith.constant 0 : index
    %c0_79 = arith.constant 0 : index
    %338 = vector.load %arg19[%337, %c0_78, %c0_79] : memref<12x8x32xf32, #tpu.memory_space<vmem>>, vector<1x8x32xf32>
    %339 = vector.shape_cast %338 : vector<1x8x32xf32> to vector<8x32xf32>
    %340 = vector.shape_cast %336 : vector<8x32xf32> to vector<1x8x32xf32>
    tpu.vector_store %arg19[%337, %c0_78, %c0_79], %340 {strides = array<i32>} : memref<12x8x32xf32, #tpu.memory_space<vmem>>, vector<1x8x32xf32>,
    %c8_i32 = arith.constant 8 : i32
    %341 = arith.index_cast %c8_i32 : i32 to index
    %c0_80 = arith.constant 0 : index
    %c0_81 = arith.constant 0 : index
    %342 = vector.load %arg18[%341, %c0_80, %c0_81] : memref<12x8x96xf32, #tpu.memory_space<vmem>>, vector<1x8x96xf32>
    %343 = vector.shape_cast %342 : vector<1x8x96xf32> to vector<8x96xf32>
    %cst_82 = arith.constant dense<0.000000e+00> : vector<8x96xf32>
    %344 = tpu.matmul %336, %10, %cst_82 {dimension_numbers = #tpu.dot_dimension_numbers<[1], [0], [0], [1], [0, 0, 1, 1], [], []>} : vector<8x32xf32>, vector<32x96xf32>, vector<8x96xf32> -> vector<8x96xf32>
    %345 = vector.broadcast %11 : vector<1x96xf32> to vector<8x96xf32>
    %346 = arith.addf %344, %345 : vector<8x96xf32>
    %347 = vector.extract_strided_slice %343 {offsets = [0, 0], sizes = [8, 32], strides = [1, 1]} : vector<8x96xf32> to vector<8x32xf32>
    %348 = vector.extract_strided_slice %346 {offsets = [0, 0], sizes = [8, 32], strides = [1, 1]} : vector<8x96xf32> to vector<8x32xf32>
    %349 = arith.addf %347, %348 : vector<8x32xf32>
    %350 = arith.negf %349 : vector<8x32xf32>
    %351 = math.exp %350 : vector<8x32xf32>
    %cst_83 = arith.constant 1.000000e+00 : f32
    %352 = vector.broadcast %cst_83 : f32 to vector<8x32xf32>
    %353 = arith.addf %352, %351 : vector<8x32xf32>
    %354 = arith.divf %352, %353 : vector<8x32xf32>
    %355 = vector.extract_strided_slice %343 {offsets = [0, 32], sizes = [8, 32], strides = [1, 1]} : vector<8x96xf32> to vector<8x32xf32>
    %356 = vector.extract_strided_slice %346 {offsets = [0, 32], sizes = [8, 32], strides = [1, 1]} : vector<8x96xf32> to vector<8x32xf32>
    %357 = arith.addf %355, %356 : vector<8x32xf32>
    %358 = arith.negf %357 : vector<8x32xf32>
    %359 = math.exp %358 : vector<8x32xf32>
    %cst_84 = arith.constant 1.000000e+00 : f32
    %360 = vector.broadcast %cst_84 : f32 to vector<8x32xf32>
    %361 = arith.addf %360, %359 : vector<8x32xf32>
    %362 = arith.divf %360, %361 : vector<8x32xf32>
    %363 = vector.extract_strided_slice %343 {offsets = [0, 64], sizes = [8, 32], strides = [1, 1]} : vector<8x96xf32> to vector<8x32xf32>
    %364 = vector.extract_strided_slice %346 {offsets = [0, 64], sizes = [8, 32], strides = [1, 1]} : vector<8x96xf32> to vector<8x32xf32>
    %365 = arith.mulf %354, %364 : vector<8x32xf32>
    %366 = arith.addf %363, %365 : vector<8x32xf32>
    %367 = math.tanh %366 : vector<8x32xf32>
    %cst_85 = arith.constant 1.000000e+00 : f32
    %368 = vector.broadcast %cst_85 : f32 to vector<8x32xf32>
    %369 = arith.subf %368, %362 : vector<8x32xf32>
    %370 = arith.mulf %369, %367 : vector<8x32xf32>
    %371 = arith.mulf %362, %336 : vector<8x32xf32>
    %372 = arith.addf %370, %371 : vector<8x32xf32>
    %373 = vector.broadcast %c8_i32 : i32 to vector<8x1xi32>
    %374 = arith.cmpi slt, %373, %0 : vector<8x1xi32>
    %375 = vector.shape_cast %374 : vector<8x1xi1> to vector<8x1xi1>
    %376 = vector.broadcast %375 : vector<8x1xi1> to vector<8x32xi1>
    %377 = arith.select %376, %372, %336 : vector<8x32xi1>, vector<8x32xf32>
    %378 = arith.index_cast %c8_i32 : i32 to index
    %c0_86 = arith.constant 0 : index
    %c0_87 = arith.constant 0 : index
    %379 = vector.load %arg19[%378, %c0_86, %c0_87] : memref<12x8x32xf32, #tpu.memory_space<vmem>>, vector<1x8x32xf32>
    %380 = vector.shape_cast %379 : vector<1x8x32xf32> to vector<8x32xf32>
    %381 = vector.shape_cast %377 : vector<8x32xf32> to vector<1x8x32xf32>
    tpu.vector_store %arg19[%378, %c0_86, %c0_87], %381 {strides = array<i32>} : memref<12x8x32xf32, #tpu.memory_space<vmem>>, vector<1x8x32xf32>,
    %c9_i32 = arith.constant 9 : i32
    %382 = arith.index_cast %c9_i32 : i32 to index
    %c0_88 = arith.constant 0 : index
    %c0_89 = arith.constant 0 : index
    %383 = vector.load %arg18[%382, %c0_88, %c0_89] : memref<12x8x96xf32, #tpu.memory_space<vmem>>, vector<1x8x96xf32>
    %384 = vector.shape_cast %383 : vector<1x8x96xf32> to vector<8x96xf32>
    %cst_90 = arith.constant dense<0.000000e+00> : vector<8x96xf32>
    %385 = tpu.matmul %377, %10, %cst_90 {dimension_numbers = #tpu.dot_dimension_numbers<[1], [0], [0], [1], [0, 0, 1, 1], [], []>} : vector<8x32xf32>, vector<32x96xf32>, vector<8x96xf32> -> vector<8x96xf32>
    %386 = vector.broadcast %11 : vector<1x96xf32> to vector<8x96xf32>
    %387 = arith.addf %385, %386 : vector<8x96xf32>
    %388 = vector.extract_strided_slice %384 {offsets = [0, 0], sizes = [8, 32], strides = [1, 1]} : vector<8x96xf32> to vector<8x32xf32>
    %389 = vector.extract_strided_slice %387 {offsets = [0, 0], sizes = [8, 32], strides = [1, 1]} : vector<8x96xf32> to vector<8x32xf32>
    %390 = arith.addf %388, %389 : vector<8x32xf32>
    %391 = arith.negf %390 : vector<8x32xf32>
    %392 = math.exp %391 : vector<8x32xf32>
    %cst_91 = arith.constant 1.000000e+00 : f32
    %393 = vector.broadcast %cst_91 : f32 to vector<8x32xf32>
    %394 = arith.addf %393, %392 : vector<8x32xf32>
    %395 = arith.divf %393, %394 : vector<8x32xf32>
    %396 = vector.extract_strided_slice %384 {offsets = [0, 32], sizes = [8, 32], strides = [1, 1]} : vector<8x96xf32> to vector<8x32xf32>
    %397 = vector.extract_strided_slice %387 {offsets = [0, 32], sizes = [8, 32], strides = [1, 1]} : vector<8x96xf32> to vector<8x32xf32>
    %398 = arith.addf %396, %397 : vector<8x32xf32>
    %399 = arith.negf %398 : vector<8x32xf32>
    %400 = math.exp %399 : vector<8x32xf32>
    %cst_92 = arith.constant 1.000000e+00 : f32
    %401 = vector.broadcast %cst_92 : f32 to vector<8x32xf32>
    %402 = arith.addf %401, %400 : vector<8x32xf32>
    %403 = arith.divf %401, %402 : vector<8x32xf32>
    %404 = vector.extract_strided_slice %384 {offsets = [0, 64], sizes = [8, 32], strides = [1, 1]} : vector<8x96xf32> to vector<8x32xf32>
    %405 = vector.extract_strided_slice %387 {offsets = [0, 64], sizes = [8, 32], strides = [1, 1]} : vector<8x96xf32> to vector<8x32xf32>
    %406 = arith.mulf %395, %405 : vector<8x32xf32>
    %407 = arith.addf %404, %406 : vector<8x32xf32>
    %408 = math.tanh %407 : vector<8x32xf32>
    %cst_93 = arith.constant 1.000000e+00 : f32
    %409 = vector.broadcast %cst_93 : f32 to vector<8x32xf32>
    %410 = arith.subf %409, %403 : vector<8x32xf32>
    %411 = arith.mulf %410, %408 : vector<8x32xf32>
    %412 = arith.mulf %403, %377 : vector<8x32xf32>
    %413 = arith.addf %411, %412 : vector<8x32xf32>
    %414 = vector.broadcast %c9_i32 : i32 to vector<8x1xi32>
    %415 = arith.cmpi slt, %414, %0 : vector<8x1xi32>
    %416 = vector.shape_cast %415 : vector<8x1xi1> to vector<8x1xi1>
    %417 = vector.broadcast %416 : vector<8x1xi1> to vector<8x32xi1>
    %418 = arith.select %417, %413, %377 : vector<8x32xi1>, vector<8x32xf32>
    %419 = arith.index_cast %c9_i32 : i32 to index
    %c0_94 = arith.constant 0 : index
    %c0_95 = arith.constant 0 : index
    %420 = vector.load %arg19[%419, %c0_94, %c0_95] : memref<12x8x32xf32, #tpu.memory_space<vmem>>, vector<1x8x32xf32>
    %421 = vector.shape_cast %420 : vector<1x8x32xf32> to vector<8x32xf32>
    %422 = vector.shape_cast %418 : vector<8x32xf32> to vector<1x8x32xf32>
    tpu.vector_store %arg19[%419, %c0_94, %c0_95], %422 {strides = array<i32>} : memref<12x8x32xf32, #tpu.memory_space<vmem>>, vector<1x8x32xf32>,
    %c10_i32 = arith.constant 10 : i32
    %423 = arith.index_cast %c10_i32 : i32 to index
    %c0_96 = arith.constant 0 : index
    %c0_97 = arith.constant 0 : index
    %424 = vector.load %arg18[%423, %c0_96, %c0_97] : memref<12x8x96xf32, #tpu.memory_space<vmem>>, vector<1x8x96xf32>
    %425 = vector.shape_cast %424 : vector<1x8x96xf32> to vector<8x96xf32>
    %cst_98 = arith.constant dense<0.000000e+00> : vector<8x96xf32>
    %426 = tpu.matmul %418, %10, %cst_98 {dimension_numbers = #tpu.dot_dimension_numbers<[1], [0], [0], [1], [0, 0, 1, 1], [], []>} : vector<8x32xf32>, vector<32x96xf32>, vector<8x96xf32> -> vector<8x96xf32>
    %427 = vector.broadcast %11 : vector<1x96xf32> to vector<8x96xf32>
    %428 = arith.addf %426, %427 : vector<8x96xf32>
    %429 = vector.extract_strided_slice %425 {offsets = [0, 0], sizes = [8, 32], strides = [1, 1]} : vector<8x96xf32> to vector<8x32xf32>
    %430 = vector.extract_strided_slice %428 {offsets = [0, 0], sizes = [8, 32], strides = [1, 1]} : vector<8x96xf32> to vector<8x32xf32>
    %431 = arith.addf %429, %430 : vector<8x32xf32>
    %432 = arith.negf %431 : vector<8x32xf32>
    %433 = math.exp %432 : vector<8x32xf32>
    %cst_99 = arith.constant 1.000000e+00 : f32
    %434 = vector.broadcast %cst_99 : f32 to vector<8x32xf32>
    %435 = arith.addf %434, %433 : vector<8x32xf32>
    %436 = arith.divf %434, %435 : vector<8x32xf32>
    %437 = vector.extract_strided_slice %425 {offsets = [0, 32], sizes = [8, 32], strides = [1, 1]} : vector<8x96xf32> to vector<8x32xf32>
    %438 = vector.extract_strided_slice %428 {offsets = [0, 32], sizes = [8, 32], strides = [1, 1]} : vector<8x96xf32> to vector<8x32xf32>
    %439 = arith.addf %437, %438 : vector<8x32xf32>
    %440 = arith.negf %439 : vector<8x32xf32>
    %441 = math.exp %440 : vector<8x32xf32>
    %cst_100 = arith.constant 1.000000e+00 : f32
    %442 = vector.broadcast %cst_100 : f32 to vector<8x32xf32>
    %443 = arith.addf %442, %441 : vector<8x32xf32>
    %444 = arith.divf %442, %443 : vector<8x32xf32>
    %445 = vector.extract_strided_slice %425 {offsets = [0, 64], sizes = [8, 32], strides = [1, 1]} : vector<8x96xf32> to vector<8x32xf32>
    %446 = vector.extract_strided_slice %428 {offsets = [0, 64], sizes = [8, 32], strides = [1, 1]} : vector<8x96xf32> to vector<8x32xf32>
    %447 = arith.mulf %436, %446 : vector<8x32xf32>
    %448 = arith.addf %445, %447 : vector<8x32xf32>
    %449 = math.tanh %448 : vector<8x32xf32>
    %cst_101 = arith.constant 1.000000e+00 : f32
    %450 = vector.broadcast %cst_101 : f32 to vector<8x32xf32>
    %451 = arith.subf %450, %444 : vector<8x32xf32>
    %452 = arith.mulf %451, %449 : vector<8x32xf32>
    %453 = arith.mulf %444, %418 : vector<8x32xf32>
    %454 = arith.addf %452, %453 : vector<8x32xf32>
    %455 = vector.broadcast %c10_i32 : i32 to vector<8x1xi32>
    %456 = arith.cmpi slt, %455, %0 : vector<8x1xi32>
    %457 = vector.shape_cast %456 : vector<8x1xi1> to vector<8x1xi1>
    %458 = vector.broadcast %457 : vector<8x1xi1> to vector<8x32xi1>
    %459 = arith.select %458, %454, %418 : vector<8x32xi1>, vector<8x32xf32>
    %460 = arith.index_cast %c10_i32 : i32 to index
    %c0_102 = arith.constant 0 : index
    %c0_103 = arith.constant 0 : index
    %461 = vector.load %arg19[%460, %c0_102, %c0_103] : memref<12x8x32xf32, #tpu.memory_space<vmem>>, vector<1x8x32xf32>
    %462 = vector.shape_cast %461 : vector<1x8x32xf32> to vector<8x32xf32>
    %463 = vector.shape_cast %459 : vector<8x32xf32> to vector<1x8x32xf32>
    tpu.vector_store %arg19[%460, %c0_102, %c0_103], %463 {strides = array<i32>} : memref<12x8x32xf32, #tpu.memory_space<vmem>>, vector<1x8x32xf32>,
    %c11_i32 = arith.constant 11 : i32
    %464 = arith.index_cast %c11_i32 : i32 to index
    %c0_104 = arith.constant 0 : index
    %c0_105 = arith.constant 0 : index
    %465 = vector.load %arg18[%464, %c0_104, %c0_105] : memref<12x8x96xf32, #tpu.memory_space<vmem>>, vector<1x8x96xf32>
    %466 = vector.shape_cast %465 : vector<1x8x96xf32> to vector<8x96xf32>
    %cst_106 = arith.constant dense<0.000000e+00> : vector<8x96xf32>
    %467 = tpu.matmul %459, %10, %cst_106 {dimension_numbers = #tpu.dot_dimension_numbers<[1], [0], [0], [1], [0, 0, 1, 1], [], []>} : vector<8x32xf32>, vector<32x96xf32>, vector<8x96xf32> -> vector<8x96xf32>
    %468 = vector.broadcast %11 : vector<1x96xf32> to vector<8x96xf32>
    %469 = arith.addf %467, %468 : vector<8x96xf32>
    %470 = vector.extract_strided_slice %466 {offsets = [0, 0], sizes = [8, 32], strides = [1, 1]} : vector<8x96xf32> to vector<8x32xf32>
    %471 = vector.extract_strided_slice %469 {offsets = [0, 0], sizes = [8, 32], strides = [1, 1]} : vector<8x96xf32> to vector<8x32xf32>
    %472 = arith.addf %470, %471 : vector<8x32xf32>
    %473 = arith.negf %472 : vector<8x32xf32>
    %474 = math.exp %473 : vector<8x32xf32>
    %cst_107 = arith.constant 1.000000e+00 : f32
    %475 = vector.broadcast %cst_107 : f32 to vector<8x32xf32>
    %476 = arith.addf %475, %474 : vector<8x32xf32>
    %477 = arith.divf %475, %476 : vector<8x32xf32>
    %478 = vector.extract_strided_slice %466 {offsets = [0, 32], sizes = [8, 32], strides = [1, 1]} : vector<8x96xf32> to vector<8x32xf32>
    %479 = vector.extract_strided_slice %469 {offsets = [0, 32], sizes = [8, 32], strides = [1, 1]} : vector<8x96xf32> to vector<8x32xf32>
    %480 = arith.addf %478, %479 : vector<8x32xf32>
    %481 = arith.negf %480 : vector<8x32xf32>
    %482 = math.exp %481 : vector<8x32xf32>
    %cst_108 = arith.constant 1.000000e+00 : f32
    %483 = vector.broadcast %cst_108 : f32 to vector<8x32xf32>
    %484 = arith.addf %483, %482 : vector<8x32xf32>
    %485 = arith.divf %483, %484 : vector<8x32xf32>
    %486 = vector.extract_strided_slice %466 {offsets = [0, 64], sizes = [8, 32], strides = [1, 1]} : vector<8x96xf32> to vector<8x32xf32>
    %487 = vector.extract_strided_slice %469 {offsets = [0, 64], sizes = [8, 32], strides = [1, 1]} : vector<8x96xf32> to vector<8x32xf32>
    %488 = arith.mulf %477, %487 : vector<8x32xf32>
    %489 = arith.addf %486, %488 : vector<8x32xf32>
    %490 = math.tanh %489 : vector<8x32xf32>
    %cst_109 = arith.constant 1.000000e+00 : f32
    %491 = vector.broadcast %cst_109 : f32 to vector<8x32xf32>
    %492 = arith.subf %491, %485 : vector<8x32xf32>
    %493 = arith.mulf %492, %490 : vector<8x32xf32>
    %494 = arith.mulf %485, %459 : vector<8x32xf32>
    %495 = arith.addf %493, %494 : vector<8x32xf32>
    %496 = vector.broadcast %c11_i32 : i32 to vector<8x1xi32>
    %497 = arith.cmpi slt, %496, %0 : vector<8x1xi32>
    %498 = vector.shape_cast %497 : vector<8x1xi1> to vector<8x1xi1>
    %499 = vector.broadcast %498 : vector<8x1xi1> to vector<8x32xi1>
    %500 = arith.select %499, %495, %459 : vector<8x32xi1>, vector<8x32xf32>
    %501 = arith.index_cast %c11_i32 : i32 to index
    %c0_110 = arith.constant 0 : index
    %c0_111 = arith.constant 0 : index
    %502 = vector.load %arg19[%501, %c0_110, %c0_111] : memref<12x8x32xf32, #tpu.memory_space<vmem>>, vector<1x8x32xf32>
    %503 = vector.shape_cast %502 : vector<1x8x32xf32> to vector<8x32xf32>
    %504 = vector.shape_cast %500 : vector<8x32xf32> to vector<1x8x32xf32>
    tpu.vector_store %arg19[%501, %c0_110, %c0_111], %504 {strides = array<i32>} : memref<12x8x32xf32, #tpu.memory_space<vmem>>, vector<1x8x32xf32>,
    %c12_i32 = arith.constant 12 : i32
    %c0_112 = arith.constant 0 : index
    %c0_113 = arith.constant 0 : index
    %c0_114 = arith.constant 0 : index
    %505 = vector.load %arg19[%c0_112, %c0_113, %c0_114] : memref<12x8x32xf32, #tpu.memory_space<vmem>>, vector<12x8x32xf32>
    %506 = vector.shape_cast %505 : vector<12x8x32xf32> to vector<96x32xf32>
    %c0_115 = arith.constant 0 : index
    %c0_116 = arith.constant 0 : index
    %507 = vector.load %arg7[%c0_115, %c0_116] : memref<32x96xf32, #tpu.memory_space<vmem>>, vector<32x96xf32>
    %cst_117 = arith.constant dense<0.000000e+00> : vector<96x96xf32>
    %508 = tpu.matmul %506, %507, %cst_117 {dimension_numbers = #tpu.dot_dimension_numbers<[1], [0], [0], [1], [0, 0, 1, 1], [], []>} : vector<96x32xf32>, vector<32x96xf32>, vector<96x96xf32> -> vector<96x96xf32>
    %c0_118 = arith.constant 0 : index
    %c0_119 = arith.constant 0 : index
    %509 = vector.load %arg9[%c0_118, %c0_119] : memref<1x96xf32, #tpu.memory_space<vmem>>, vector<1x96xf32>
    %510 = vector.broadcast %509 : vector<1x96xf32> to vector<96x96xf32>
    %511 = arith.addf %508, %510 : vector<96x96xf32>
    %512 = vector.shape_cast %511 : vector<96x96xf32> to vector<12x8x96xf32>
    %c0_120 = arith.constant 0 : index
    %c0_121 = arith.constant 0 : index
    %c0_122 = arith.constant 0 : index
    %513 = vector.load %arg18[%c0_120, %c0_121, %c0_122] : memref<12x8x96xf32, #tpu.memory_space<vmem>>, vector<12x8x96xf32>
    tpu.vector_store %arg18[%c0_120, %c0_121, %c0_122], %512 {strides = array<i32>} : memref<12x8x96xf32, #tpu.memory_space<vmem>>, vector<12x8x96xf32>,
    %c0_123 = arith.constant 0 : index
    %c0_124 = arith.constant 0 : index
    %514 = vector.load %arg8[%c0_123, %c0_124] : memref<32x96xf32, #tpu.memory_space<vmem>>, vector<32x96xf32>
    %c0_125 = arith.constant 0 : index
    %c0_126 = arith.constant 0 : index
    %515 = vector.load %arg10[%c0_125, %c0_126] : memref<1x96xf32, #tpu.memory_space<vmem>>, vector<1x96xf32>
    %cst_127 = arith.constant 0.000000e+00 : f32
    %516 = vector.broadcast %cst_127 : f32 to vector<8x32xf32>
    %c0_i32_128 = arith.constant 0 : i32
    %517 = arith.index_cast %c0_i32_128 : i32 to index
    %c0_129 = arith.constant 0 : index
    %c0_130 = arith.constant 0 : index
    %518 = vector.load %arg18[%517, %c0_129, %c0_130] : memref<12x8x96xf32, #tpu.memory_space<vmem>>, vector<1x8x96xf32>
    %519 = vector.shape_cast %518 : vector<1x8x96xf32> to vector<8x96xf32>
    %cst_131 = arith.constant dense<0.000000e+00> : vector<8x96xf32>
    %520 = tpu.matmul %516, %514, %cst_131 {dimension_numbers = #tpu.dot_dimension_numbers<[1], [0], [0], [1], [0, 0, 1, 1], [], []>} : vector<8x32xf32>, vector<32x96xf32>, vector<8x96xf32> -> vector<8x96xf32>
    %521 = vector.broadcast %515 : vector<1x96xf32> to vector<8x96xf32>
    %522 = arith.addf %520, %521 : vector<8x96xf32>
    %523 = vector.extract_strided_slice %519 {offsets = [0, 0], sizes = [8, 32], strides = [1, 1]} : vector<8x96xf32> to vector<8x32xf32>
    %524 = vector.extract_strided_slice %522 {offsets = [0, 0], sizes = [8, 32], strides = [1, 1]} : vector<8x96xf32> to vector<8x32xf32>
    %525 = arith.addf %523, %524 : vector<8x32xf32>
    %526 = arith.negf %525 : vector<8x32xf32>
    %527 = math.exp %526 : vector<8x32xf32>
    %cst_132 = arith.constant 1.000000e+00 : f32
    %528 = vector.broadcast %cst_132 : f32 to vector<8x32xf32>
    %529 = arith.addf %528, %527 : vector<8x32xf32>
    %530 = arith.divf %528, %529 : vector<8x32xf32>
    %531 = vector.extract_strided_slice %519 {offsets = [0, 32], sizes = [8, 32], strides = [1, 1]} : vector<8x96xf32> to vector<8x32xf32>
    %532 = vector.extract_strided_slice %522 {offsets = [0, 32], sizes = [8, 32], strides = [1, 1]} : vector<8x96xf32> to vector<8x32xf32>
    %533 = arith.addf %531, %532 : vector<8x32xf32>
    %534 = arith.negf %533 : vector<8x32xf32>
    %535 = math.exp %534 : vector<8x32xf32>
    %cst_133 = arith.constant 1.000000e+00 : f32
    %536 = vector.broadcast %cst_133 : f32 to vector<8x32xf32>
    %537 = arith.addf %536, %535 : vector<8x32xf32>
    %538 = arith.divf %536, %537 : vector<8x32xf32>
    %539 = vector.extract_strided_slice %519 {offsets = [0, 64], sizes = [8, 32], strides = [1, 1]} : vector<8x96xf32> to vector<8x32xf32>
    %540 = vector.extract_strided_slice %522 {offsets = [0, 64], sizes = [8, 32], strides = [1, 1]} : vector<8x96xf32> to vector<8x32xf32>
    %541 = arith.mulf %530, %540 : vector<8x32xf32>
    %542 = arith.addf %539, %541 : vector<8x32xf32>
    %543 = math.tanh %542 : vector<8x32xf32>
    %cst_134 = arith.constant 1.000000e+00 : f32
    %544 = vector.broadcast %cst_134 : f32 to vector<8x32xf32>
    %545 = arith.subf %544, %538 : vector<8x32xf32>
    %546 = arith.mulf %545, %543 : vector<8x32xf32>
    %547 = arith.mulf %538, %516 : vector<8x32xf32>
    %548 = arith.addf %546, %547 : vector<8x32xf32>
    %549 = vector.broadcast %c0_i32_128 : i32 to vector<8x1xi32>
    %550 = arith.cmpi slt, %549, %0 : vector<8x1xi32>
    %551 = vector.shape_cast %550 : vector<8x1xi1> to vector<8x1xi1>
    %552 = vector.broadcast %551 : vector<8x1xi1> to vector<8x32xi1>
    %553 = arith.select %552, %548, %516 : vector<8x32xi1>, vector<8x32xf32>
    %c1_i32_135 = arith.constant 1 : i32
    %554 = arith.index_cast %c1_i32_135 : i32 to index
    %c0_136 = arith.constant 0 : index
    %c0_137 = arith.constant 0 : index
    %555 = vector.load %arg18[%554, %c0_136, %c0_137] : memref<12x8x96xf32, #tpu.memory_space<vmem>>, vector<1x8x96xf32>
    %556 = vector.shape_cast %555 : vector<1x8x96xf32> to vector<8x96xf32>
    %cst_138 = arith.constant dense<0.000000e+00> : vector<8x96xf32>
    %557 = tpu.matmul %553, %514, %cst_138 {dimension_numbers = #tpu.dot_dimension_numbers<[1], [0], [0], [1], [0, 0, 1, 1], [], []>} : vector<8x32xf32>, vector<32x96xf32>, vector<8x96xf32> -> vector<8x96xf32>
    %558 = vector.broadcast %515 : vector<1x96xf32> to vector<8x96xf32>
    %559 = arith.addf %557, %558 : vector<8x96xf32>
    %560 = vector.extract_strided_slice %556 {offsets = [0, 0], sizes = [8, 32], strides = [1, 1]} : vector<8x96xf32> to vector<8x32xf32>
    %561 = vector.extract_strided_slice %559 {offsets = [0, 0], sizes = [8, 32], strides = [1, 1]} : vector<8x96xf32> to vector<8x32xf32>
    %562 = arith.addf %560, %561 : vector<8x32xf32>
    %563 = arith.negf %562 : vector<8x32xf32>
    %564 = math.exp %563 : vector<8x32xf32>
    %cst_139 = arith.constant 1.000000e+00 : f32
    %565 = vector.broadcast %cst_139 : f32 to vector<8x32xf32>
    %566 = arith.addf %565, %564 : vector<8x32xf32>
    %567 = arith.divf %565, %566 : vector<8x32xf32>
    %568 = vector.extract_strided_slice %556 {offsets = [0, 32], sizes = [8, 32], strides = [1, 1]} : vector<8x96xf32> to vector<8x32xf32>
    %569 = vector.extract_strided_slice %559 {offsets = [0, 32], sizes = [8, 32], strides = [1, 1]} : vector<8x96xf32> to vector<8x32xf32>
    %570 = arith.addf %568, %569 : vector<8x32xf32>
    %571 = arith.negf %570 : vector<8x32xf32>
    %572 = math.exp %571 : vector<8x32xf32>
    %cst_140 = arith.constant 1.000000e+00 : f32
    %573 = vector.broadcast %cst_140 : f32 to vector<8x32xf32>
    %574 = arith.addf %573, %572 : vector<8x32xf32>
    %575 = arith.divf %573, %574 : vector<8x32xf32>
    %576 = vector.extract_strided_slice %556 {offsets = [0, 64], sizes = [8, 32], strides = [1, 1]} : vector<8x96xf32> to vector<8x32xf32>
    %577 = vector.extract_strided_slice %559 {offsets = [0, 64], sizes = [8, 32], strides = [1, 1]} : vector<8x96xf32> to vector<8x32xf32>
    %578 = arith.mulf %567, %577 : vector<8x32xf32>
    %579 = arith.addf %576, %578 : vector<8x32xf32>
    %580 = math.tanh %579 : vector<8x32xf32>
    %cst_141 = arith.constant 1.000000e+00 : f32
    %581 = vector.broadcast %cst_141 : f32 to vector<8x32xf32>
    %582 = arith.subf %581, %575 : vector<8x32xf32>
    %583 = arith.mulf %582, %580 : vector<8x32xf32>
    %584 = arith.mulf %575, %553 : vector<8x32xf32>
    %585 = arith.addf %583, %584 : vector<8x32xf32>
    %586 = vector.broadcast %c1_i32_135 : i32 to vector<8x1xi32>
    %587 = arith.cmpi slt, %586, %0 : vector<8x1xi32>
    %588 = vector.shape_cast %587 : vector<8x1xi1> to vector<8x1xi1>
    %589 = vector.broadcast %588 : vector<8x1xi1> to vector<8x32xi1>
    %590 = arith.select %589, %585, %553 : vector<8x32xi1>, vector<8x32xf32>
    %c2_i32_142 = arith.constant 2 : i32
    %591 = arith.index_cast %c2_i32_142 : i32 to index
    %c0_143 = arith.constant 0 : index
    %c0_144 = arith.constant 0 : index
    %592 = vector.load %arg18[%591, %c0_143, %c0_144] : memref<12x8x96xf32, #tpu.memory_space<vmem>>, vector<1x8x96xf32>
    %593 = vector.shape_cast %592 : vector<1x8x96xf32> to vector<8x96xf32>
    %cst_145 = arith.constant dense<0.000000e+00> : vector<8x96xf32>
    %594 = tpu.matmul %590, %514, %cst_145 {dimension_numbers = #tpu.dot_dimension_numbers<[1], [0], [0], [1], [0, 0, 1, 1], [], []>} : vector<8x32xf32>, vector<32x96xf32>, vector<8x96xf32> -> vector<8x96xf32>
    %595 = vector.broadcast %515 : vector<1x96xf32> to vector<8x96xf32>
    %596 = arith.addf %594, %595 : vector<8x96xf32>
    %597 = vector.extract_strided_slice %593 {offsets = [0, 0], sizes = [8, 32], strides = [1, 1]} : vector<8x96xf32> to vector<8x32xf32>
    %598 = vector.extract_strided_slice %596 {offsets = [0, 0], sizes = [8, 32], strides = [1, 1]} : vector<8x96xf32> to vector<8x32xf32>
    %599 = arith.addf %597, %598 : vector<8x32xf32>
    %600 = arith.negf %599 : vector<8x32xf32>
    %601 = math.exp %600 : vector<8x32xf32>
    %cst_146 = arith.constant 1.000000e+00 : f32
    %602 = vector.broadcast %cst_146 : f32 to vector<8x32xf32>
    %603 = arith.addf %602, %601 : vector<8x32xf32>
    %604 = arith.divf %602, %603 : vector<8x32xf32>
    %605 = vector.extract_strided_slice %593 {offsets = [0, 32], sizes = [8, 32], strides = [1, 1]} : vector<8x96xf32> to vector<8x32xf32>
    %606 = vector.extract_strided_slice %596 {offsets = [0, 32], sizes = [8, 32], strides = [1, 1]} : vector<8x96xf32> to vector<8x32xf32>
    %607 = arith.addf %605, %606 : vector<8x32xf32>
    %608 = arith.negf %607 : vector<8x32xf32>
    %609 = math.exp %608 : vector<8x32xf32>
    %cst_147 = arith.constant 1.000000e+00 : f32
    %610 = vector.broadcast %cst_147 : f32 to vector<8x32xf32>
    %611 = arith.addf %610, %609 : vector<8x32xf32>
    %612 = arith.divf %610, %611 : vector<8x32xf32>
    %613 = vector.extract_strided_slice %593 {offsets = [0, 64], sizes = [8, 32], strides = [1, 1]} : vector<8x96xf32> to vector<8x32xf32>
    %614 = vector.extract_strided_slice %596 {offsets = [0, 64], sizes = [8, 32], strides = [1, 1]} : vector<8x96xf32> to vector<8x32xf32>
    %615 = arith.mulf %604, %614 : vector<8x32xf32>
    %616 = arith.addf %613, %615 : vector<8x32xf32>
    %617 = math.tanh %616 : vector<8x32xf32>
    %cst_148 = arith.constant 1.000000e+00 : f32
    %618 = vector.broadcast %cst_148 : f32 to vector<8x32xf32>
    %619 = arith.subf %618, %612 : vector<8x32xf32>
    %620 = arith.mulf %619, %617 : vector<8x32xf32>
    %621 = arith.mulf %612, %590 : vector<8x32xf32>
    %622 = arith.addf %620, %621 : vector<8x32xf32>
    %623 = vector.broadcast %c2_i32_142 : i32 to vector<8x1xi32>
    %624 = arith.cmpi slt, %623, %0 : vector<8x1xi32>
    %625 = vector.shape_cast %624 : vector<8x1xi1> to vector<8x1xi1>
    %626 = vector.broadcast %625 : vector<8x1xi1> to vector<8x32xi1>
    %627 = arith.select %626, %622, %590 : vector<8x32xi1>, vector<8x32xf32>
    %c3_i32_149 = arith.constant 3 : i32
    %628 = arith.index_cast %c3_i32_149 : i32 to index
    %c0_150 = arith.constant 0 : index
    %c0_151 = arith.constant 0 : index
    %629 = vector.load %arg18[%628, %c0_150, %c0_151] : memref<12x8x96xf32, #tpu.memory_space<vmem>>, vector<1x8x96xf32>
    %630 = vector.shape_cast %629 : vector<1x8x96xf32> to vector<8x96xf32>
    %cst_152 = arith.constant dense<0.000000e+00> : vector<8x96xf32>
    %631 = tpu.matmul %627, %514, %cst_152 {dimension_numbers = #tpu.dot_dimension_numbers<[1], [0], [0], [1], [0, 0, 1, 1], [], []>} : vector<8x32xf32>, vector<32x96xf32>, vector<8x96xf32> -> vector<8x96xf32>
    %632 = vector.broadcast %515 : vector<1x96xf32> to vector<8x96xf32>
    %633 = arith.addf %631, %632 : vector<8x96xf32>
    %634 = vector.extract_strided_slice %630 {offsets = [0, 0], sizes = [8, 32], strides = [1, 1]} : vector<8x96xf32> to vector<8x32xf32>
    %635 = vector.extract_strided_slice %633 {offsets = [0, 0], sizes = [8, 32], strides = [1, 1]} : vector<8x96xf32> to vector<8x32xf32>
    %636 = arith.addf %634, %635 : vector<8x32xf32>
    %637 = arith.negf %636 : vector<8x32xf32>
    %638 = math.exp %637 : vector<8x32xf32>
    %cst_153 = arith.constant 1.000000e+00 : f32
    %639 = vector.broadcast %cst_153 : f32 to vector<8x32xf32>
    %640 = arith.addf %639, %638 : vector<8x32xf32>
    %641 = arith.divf %639, %640 : vector<8x32xf32>
    %642 = vector.extract_strided_slice %630 {offsets = [0, 32], sizes = [8, 32], strides = [1, 1]} : vector<8x96xf32> to vector<8x32xf32>
    %643 = vector.extract_strided_slice %633 {offsets = [0, 32], sizes = [8, 32], strides = [1, 1]} : vector<8x96xf32> to vector<8x32xf32>
    %644 = arith.addf %642, %643 : vector<8x32xf32>
    %645 = arith.negf %644 : vector<8x32xf32>
    %646 = math.exp %645 : vector<8x32xf32>
    %cst_154 = arith.constant 1.000000e+00 : f32
    %647 = vector.broadcast %cst_154 : f32 to vector<8x32xf32>
    %648 = arith.addf %647, %646 : vector<8x32xf32>
    %649 = arith.divf %647, %648 : vector<8x32xf32>
    %650 = vector.extract_strided_slice %630 {offsets = [0, 64], sizes = [8, 32], strides = [1, 1]} : vector<8x96xf32> to vector<8x32xf32>
    %651 = vector.extract_strided_slice %633 {offsets = [0, 64], sizes = [8, 32], strides = [1, 1]} : vector<8x96xf32> to vector<8x32xf32>
    %652 = arith.mulf %641, %651 : vector<8x32xf32>
    %653 = arith.addf %650, %652 : vector<8x32xf32>
    %654 = math.tanh %653 : vector<8x32xf32>
    %cst_155 = arith.constant 1.000000e+00 : f32
    %655 = vector.broadcast %cst_155 : f32 to vector<8x32xf32>
    %656 = arith.subf %655, %649 : vector<8x32xf32>
    %657 = arith.mulf %656, %654 : vector<8x32xf32>
    %658 = arith.mulf %649, %627 : vector<8x32xf32>
    %659 = arith.addf %657, %658 : vector<8x32xf32>
    %660 = vector.broadcast %c3_i32_149 : i32 to vector<8x1xi32>
    %661 = arith.cmpi slt, %660, %0 : vector<8x1xi32>
    %662 = vector.shape_cast %661 : vector<8x1xi1> to vector<8x1xi1>
    %663 = vector.broadcast %662 : vector<8x1xi1> to vector<8x32xi1>
    %664 = arith.select %663, %659, %627 : vector<8x32xi1>, vector<8x32xf32>
    %c4_i32_156 = arith.constant 4 : i32
    %665 = arith.index_cast %c4_i32_156 : i32 to index
    %c0_157 = arith.constant 0 : index
    %c0_158 = arith.constant 0 : index
    %666 = vector.load %arg18[%665, %c0_157, %c0_158] : memref<12x8x96xf32, #tpu.memory_space<vmem>>, vector<1x8x96xf32>
    %667 = vector.shape_cast %666 : vector<1x8x96xf32> to vector<8x96xf32>
    %cst_159 = arith.constant dense<0.000000e+00> : vector<8x96xf32>
    %668 = tpu.matmul %664, %514, %cst_159 {dimension_numbers = #tpu.dot_dimension_numbers<[1], [0], [0], [1], [0, 0, 1, 1], [], []>} : vector<8x32xf32>, vector<32x96xf32>, vector<8x96xf32> -> vector<8x96xf32>
    %669 = vector.broadcast %515 : vector<1x96xf32> to vector<8x96xf32>
    %670 = arith.addf %668, %669 : vector<8x96xf32>
    %671 = vector.extract_strided_slice %667 {offsets = [0, 0], sizes = [8, 32], strides = [1, 1]} : vector<8x96xf32> to vector<8x32xf32>
    %672 = vector.extract_strided_slice %670 {offsets = [0, 0], sizes = [8, 32], strides = [1, 1]} : vector<8x96xf32> to vector<8x32xf32>
    %673 = arith.addf %671, %672 : vector<8x32xf32>
    %674 = arith.negf %673 : vector<8x32xf32>
    %675 = math.exp %674 : vector<8x32xf32>
    %cst_160 = arith.constant 1.000000e+00 : f32
    %676 = vector.broadcast %cst_160 : f32 to vector<8x32xf32>
    %677 = arith.addf %676, %675 : vector<8x32xf32>
    %678 = arith.divf %676, %677 : vector<8x32xf32>
    %679 = vector.extract_strided_slice %667 {offsets = [0, 32], sizes = [8, 32], strides = [1, 1]} : vector<8x96xf32> to vector<8x32xf32>
    %680 = vector.extract_strided_slice %670 {offsets = [0, 32], sizes = [8, 32], strides = [1, 1]} : vector<8x96xf32> to vector<8x32xf32>
    %681 = arith.addf %679, %680 : vector<8x32xf32>
    %682 = arith.negf %681 : vector<8x32xf32>
    %683 = math.exp %682 : vector<8x32xf32>
    %cst_161 = arith.constant 1.000000e+00 : f32
    %684 = vector.broadcast %cst_161 : f32 to vector<8x32xf32>
    %685 = arith.addf %684, %683 : vector<8x32xf32>
    %686 = arith.divf %684, %685 : vector<8x32xf32>
    %687 = vector.extract_strided_slice %667 {offsets = [0, 64], sizes = [8, 32], strides = [1, 1]} : vector<8x96xf32> to vector<8x32xf32>
    %688 = vector.extract_strided_slice %670 {offsets = [0, 64], sizes = [8, 32], strides = [1, 1]} : vector<8x96xf32> to vector<8x32xf32>
    %689 = arith.mulf %678, %688 : vector<8x32xf32>
    %690 = arith.addf %687, %689 : vector<8x32xf32>
    %691 = math.tanh %690 : vector<8x32xf32>
    %cst_162 = arith.constant 1.000000e+00 : f32
    %692 = vector.broadcast %cst_162 : f32 to vector<8x32xf32>
    %693 = arith.subf %692, %686 : vector<8x32xf32>
    %694 = arith.mulf %693, %691 : vector<8x32xf32>
    %695 = arith.mulf %686, %664 : vector<8x32xf32>
    %696 = arith.addf %694, %695 : vector<8x32xf32>
    %697 = vector.broadcast %c4_i32_156 : i32 to vector<8x1xi32>
    %698 = arith.cmpi slt, %697, %0 : vector<8x1xi32>
    %699 = vector.shape_cast %698 : vector<8x1xi1> to vector<8x1xi1>
    %700 = vector.broadcast %699 : vector<8x1xi1> to vector<8x32xi1>
    %701 = arith.select %700, %696, %664 : vector<8x32xi1>, vector<8x32xf32>
    %c5_i32_163 = arith.constant 5 : i32
    %702 = arith.index_cast %c5_i32_163 : i32 to index
    %c0_164 = arith.constant 0 : index
    %c0_165 = arith.constant 0 : index
    %703 = vector.load %arg18[%702, %c0_164, %c0_165] : memref<12x8x96xf32, #tpu.memory_space<vmem>>, vector<1x8x96xf32>
    %704 = vector.shape_cast %703 : vector<1x8x96xf32> to vector<8x96xf32>
    %cst_166 = arith.constant dense<0.000000e+00> : vector<8x96xf32>
    %705 = tpu.matmul %701, %514, %cst_166 {dimension_numbers = #tpu.dot_dimension_numbers<[1], [0], [0], [1], [0, 0, 1, 1], [], []>} : vector<8x32xf32>, vector<32x96xf32>, vector<8x96xf32> -> vector<8x96xf32>
    %706 = vector.broadcast %515 : vector<1x96xf32> to vector<8x96xf32>
    %707 = arith.addf %705, %706 : vector<8x96xf32>
    %708 = vector.extract_strided_slice %704 {offsets = [0, 0], sizes = [8, 32], strides = [1, 1]} : vector<8x96xf32> to vector<8x32xf32>
    %709 = vector.extract_strided_slice %707 {offsets = [0, 0], sizes = [8, 32], strides = [1, 1]} : vector<8x96xf32> to vector<8x32xf32>
    %710 = arith.addf %708, %709 : vector<8x32xf32>
    %711 = arith.negf %710 : vector<8x32xf32>
    %712 = math.exp %711 : vector<8x32xf32>
    %cst_167 = arith.constant 1.000000e+00 : f32
    %713 = vector.broadcast %cst_167 : f32 to vector<8x32xf32>
    %714 = arith.addf %713, %712 : vector<8x32xf32>
    %715 = arith.divf %713, %714 : vector<8x32xf32>
    %716 = vector.extract_strided_slice %704 {offsets = [0, 32], sizes = [8, 32], strides = [1, 1]} : vector<8x96xf32> to vector<8x32xf32>
    %717 = vector.extract_strided_slice %707 {offsets = [0, 32], sizes = [8, 32], strides = [1, 1]} : vector<8x96xf32> to vector<8x32xf32>
    %718 = arith.addf %716, %717 : vector<8x32xf32>
    %719 = arith.negf %718 : vector<8x32xf32>
    %720 = math.exp %719 : vector<8x32xf32>
    %cst_168 = arith.constant 1.000000e+00 : f32
    %721 = vector.broadcast %cst_168 : f32 to vector<8x32xf32>
    %722 = arith.addf %721, %720 : vector<8x32xf32>
    %723 = arith.divf %721, %722 : vector<8x32xf32>
    %724 = vector.extract_strided_slice %704 {offsets = [0, 64], sizes = [8, 32], strides = [1, 1]} : vector<8x96xf32> to vector<8x32xf32>
    %725 = vector.extract_strided_slice %707 {offsets = [0, 64], sizes = [8, 32], strides = [1, 1]} : vector<8x96xf32> to vector<8x32xf32>
    %726 = arith.mulf %715, %725 : vector<8x32xf32>
    %727 = arith.addf %724, %726 : vector<8x32xf32>
    %728 = math.tanh %727 : vector<8x32xf32>
    %cst_169 = arith.constant 1.000000e+00 : f32
    %729 = vector.broadcast %cst_169 : f32 to vector<8x32xf32>
    %730 = arith.subf %729, %723 : vector<8x32xf32>
    %731 = arith.mulf %730, %728 : vector<8x32xf32>
    %732 = arith.mulf %723, %701 : vector<8x32xf32>
    %733 = arith.addf %731, %732 : vector<8x32xf32>
    %734 = vector.broadcast %c5_i32_163 : i32 to vector<8x1xi32>
    %735 = arith.cmpi slt, %734, %0 : vector<8x1xi32>
    %736 = vector.shape_cast %735 : vector<8x1xi1> to vector<8x1xi1>
    %737 = vector.broadcast %736 : vector<8x1xi1> to vector<8x32xi1>
    %738 = arith.select %737, %733, %701 : vector<8x32xi1>, vector<8x32xf32>
    %c6_i32_170 = arith.constant 6 : i32
    %739 = arith.index_cast %c6_i32_170 : i32 to index
    %c0_171 = arith.constant 0 : index
    %c0_172 = arith.constant 0 : index
    %740 = vector.load %arg18[%739, %c0_171, %c0_172] : memref<12x8x96xf32, #tpu.memory_space<vmem>>, vector<1x8x96xf32>
    %741 = vector.shape_cast %740 : vector<1x8x96xf32> to vector<8x96xf32>
    %cst_173 = arith.constant dense<0.000000e+00> : vector<8x96xf32>
    %742 = tpu.matmul %738, %514, %cst_173 {dimension_numbers = #tpu.dot_dimension_numbers<[1], [0], [0], [1], [0, 0, 1, 1], [], []>} : vector<8x32xf32>, vector<32x96xf32>, vector<8x96xf32> -> vector<8x96xf32>
    %743 = vector.broadcast %515 : vector<1x96xf32> to vector<8x96xf32>
    %744 = arith.addf %742, %743 : vector<8x96xf32>
    %745 = vector.extract_strided_slice %741 {offsets = [0, 0], sizes = [8, 32], strides = [1, 1]} : vector<8x96xf32> to vector<8x32xf32>
    %746 = vector.extract_strided_slice %744 {offsets = [0, 0], sizes = [8, 32], strides = [1, 1]} : vector<8x96xf32> to vector<8x32xf32>
    %747 = arith.addf %745, %746 : vector<8x32xf32>
    %748 = arith.negf %747 : vector<8x32xf32>
    %749 = math.exp %748 : vector<8x32xf32>
    %cst_174 = arith.constant 1.000000e+00 : f32
    %750 = vector.broadcast %cst_174 : f32 to vector<8x32xf32>
    %751 = arith.addf %750, %749 : vector<8x32xf32>
    %752 = arith.divf %750, %751 : vector<8x32xf32>
    %753 = vector.extract_strided_slice %741 {offsets = [0, 32], sizes = [8, 32], strides = [1, 1]} : vector<8x96xf32> to vector<8x32xf32>
    %754 = vector.extract_strided_slice %744 {offsets = [0, 32], sizes = [8, 32], strides = [1, 1]} : vector<8x96xf32> to vector<8x32xf32>
    %755 = arith.addf %753, %754 : vector<8x32xf32>
    %756 = arith.negf %755 : vector<8x32xf32>
    %757 = math.exp %756 : vector<8x32xf32>
    %cst_175 = arith.constant 1.000000e+00 : f32
    %758 = vector.broadcast %cst_175 : f32 to vector<8x32xf32>
    %759 = arith.addf %758, %757 : vector<8x32xf32>
    %760 = arith.divf %758, %759 : vector<8x32xf32>
    %761 = vector.extract_strided_slice %741 {offsets = [0, 64], sizes = [8, 32], strides = [1, 1]} : vector<8x96xf32> to vector<8x32xf32>
    %762 = vector.extract_strided_slice %744 {offsets = [0, 64], sizes = [8, 32], strides = [1, 1]} : vector<8x96xf32> to vector<8x32xf32>
    %763 = arith.mulf %752, %762 : vector<8x32xf32>
    %764 = arith.addf %761, %763 : vector<8x32xf32>
    %765 = math.tanh %764 : vector<8x32xf32>
    %cst_176 = arith.constant 1.000000e+00 : f32
    %766 = vector.broadcast %cst_176 : f32 to vector<8x32xf32>
    %767 = arith.subf %766, %760 : vector<8x32xf32>
    %768 = arith.mulf %767, %765 : vector<8x32xf32>
    %769 = arith.mulf %760, %738 : vector<8x32xf32>
    %770 = arith.addf %768, %769 : vector<8x32xf32>
    %771 = vector.broadcast %c6_i32_170 : i32 to vector<8x1xi32>
    %772 = arith.cmpi slt, %771, %0 : vector<8x1xi32>
    %773 = vector.shape_cast %772 : vector<8x1xi1> to vector<8x1xi1>
    %774 = vector.broadcast %773 : vector<8x1xi1> to vector<8x32xi1>
    %775 = arith.select %774, %770, %738 : vector<8x32xi1>, vector<8x32xf32>
    %c7_i32_177 = arith.constant 7 : i32
    %776 = arith.index_cast %c7_i32_177 : i32 to index
    %c0_178 = arith.constant 0 : index
    %c0_179 = arith.constant 0 : index
    %777 = vector.load %arg18[%776, %c0_178, %c0_179] : memref<12x8x96xf32, #tpu.memory_space<vmem>>, vector<1x8x96xf32>
    %778 = vector.shape_cast %777 : vector<1x8x96xf32> to vector<8x96xf32>
    %cst_180 = arith.constant dense<0.000000e+00> : vector<8x96xf32>
    %779 = tpu.matmul %775, %514, %cst_180 {dimension_numbers = #tpu.dot_dimension_numbers<[1], [0], [0], [1], [0, 0, 1, 1], [], []>} : vector<8x32xf32>, vector<32x96xf32>, vector<8x96xf32> -> vector<8x96xf32>
    %780 = vector.broadcast %515 : vector<1x96xf32> to vector<8x96xf32>
    %781 = arith.addf %779, %780 : vector<8x96xf32>
    %782 = vector.extract_strided_slice %778 {offsets = [0, 0], sizes = [8, 32], strides = [1, 1]} : vector<8x96xf32> to vector<8x32xf32>
    %783 = vector.extract_strided_slice %781 {offsets = [0, 0], sizes = [8, 32], strides = [1, 1]} : vector<8x96xf32> to vector<8x32xf32>
    %784 = arith.addf %782, %783 : vector<8x32xf32>
    %785 = arith.negf %784 : vector<8x32xf32>
    %786 = math.exp %785 : vector<8x32xf32>
    %cst_181 = arith.constant 1.000000e+00 : f32
    %787 = vector.broadcast %cst_181 : f32 to vector<8x32xf32>
    %788 = arith.addf %787, %786 : vector<8x32xf32>
    %789 = arith.divf %787, %788 : vector<8x32xf32>
    %790 = vector.extract_strided_slice %778 {offsets = [0, 32], sizes = [8, 32], strides = [1, 1]} : vector<8x96xf32> to vector<8x32xf32>
    %791 = vector.extract_strided_slice %781 {offsets = [0, 32], sizes = [8, 32], strides = [1, 1]} : vector<8x96xf32> to vector<8x32xf32>
    %792 = arith.addf %790, %791 : vector<8x32xf32>
    %793 = arith.negf %792 : vector<8x32xf32>
    %794 = math.exp %793 : vector<8x32xf32>
    %cst_182 = arith.constant 1.000000e+00 : f32
    %795 = vector.broadcast %cst_182 : f32 to vector<8x32xf32>
    %796 = arith.addf %795, %794 : vector<8x32xf32>
    %797 = arith.divf %795, %796 : vector<8x32xf32>
    %798 = vector.extract_strided_slice %778 {offsets = [0, 64], sizes = [8, 32], strides = [1, 1]} : vector<8x96xf32> to vector<8x32xf32>
    %799 = vector.extract_strided_slice %781 {offsets = [0, 64], sizes = [8, 32], strides = [1, 1]} : vector<8x96xf32> to vector<8x32xf32>
    %800 = arith.mulf %789, %799 : vector<8x32xf32>
    %801 = arith.addf %798, %800 : vector<8x32xf32>
    %802 = math.tanh %801 : vector<8x32xf32>
    %cst_183 = arith.constant 1.000000e+00 : f32
    %803 = vector.broadcast %cst_183 : f32 to vector<8x32xf32>
    %804 = arith.subf %803, %797 : vector<8x32xf32>
    %805 = arith.mulf %804, %802 : vector<8x32xf32>
    %806 = arith.mulf %797, %775 : vector<8x32xf32>
    %807 = arith.addf %805, %806 : vector<8x32xf32>
    %808 = vector.broadcast %c7_i32_177 : i32 to vector<8x1xi32>
    %809 = arith.cmpi slt, %808, %0 : vector<8x1xi32>
    %810 = vector.shape_cast %809 : vector<8x1xi1> to vector<8x1xi1>
    %811 = vector.broadcast %810 : vector<8x1xi1> to vector<8x32xi1>
    %812 = arith.select %811, %807, %775 : vector<8x32xi1>, vector<8x32xf32>
    %c8_i32_184 = arith.constant 8 : i32
    %813 = arith.index_cast %c8_i32_184 : i32 to index
    %c0_185 = arith.constant 0 : index
    %c0_186 = arith.constant 0 : index
    %814 = vector.load %arg18[%813, %c0_185, %c0_186] : memref<12x8x96xf32, #tpu.memory_space<vmem>>, vector<1x8x96xf32>
    %815 = vector.shape_cast %814 : vector<1x8x96xf32> to vector<8x96xf32>
    %cst_187 = arith.constant dense<0.000000e+00> : vector<8x96xf32>
    %816 = tpu.matmul %812, %514, %cst_187 {dimension_numbers = #tpu.dot_dimension_numbers<[1], [0], [0], [1], [0, 0, 1, 1], [], []>} : vector<8x32xf32>, vector<32x96xf32>, vector<8x96xf32> -> vector<8x96xf32>
    %817 = vector.broadcast %515 : vector<1x96xf32> to vector<8x96xf32>
    %818 = arith.addf %816, %817 : vector<8x96xf32>
    %819 = vector.extract_strided_slice %815 {offsets = [0, 0], sizes = [8, 32], strides = [1, 1]} : vector<8x96xf32> to vector<8x32xf32>
    %820 = vector.extract_strided_slice %818 {offsets = [0, 0], sizes = [8, 32], strides = [1, 1]} : vector<8x96xf32> to vector<8x32xf32>
    %821 = arith.addf %819, %820 : vector<8x32xf32>
    %822 = arith.negf %821 : vector<8x32xf32>
    %823 = math.exp %822 : vector<8x32xf32>
    %cst_188 = arith.constant 1.000000e+00 : f32
    %824 = vector.broadcast %cst_188 : f32 to vector<8x32xf32>
    %825 = arith.addf %824, %823 : vector<8x32xf32>
    %826 = arith.divf %824, %825 : vector<8x32xf32>
    %827 = vector.extract_strided_slice %815 {offsets = [0, 32], sizes = [8, 32], strides = [1, 1]} : vector<8x96xf32> to vector<8x32xf32>
    %828 = vector.extract_strided_slice %818 {offsets = [0, 32], sizes = [8, 32], strides = [1, 1]} : vector<8x96xf32> to vector<8x32xf32>
    %829 = arith.addf %827, %828 : vector<8x32xf32>
    %830 = arith.negf %829 : vector<8x32xf32>
    %831 = math.exp %830 : vector<8x32xf32>
    %cst_189 = arith.constant 1.000000e+00 : f32
    %832 = vector.broadcast %cst_189 : f32 to vector<8x32xf32>
    %833 = arith.addf %832, %831 : vector<8x32xf32>
    %834 = arith.divf %832, %833 : vector<8x32xf32>
    %835 = vector.extract_strided_slice %815 {offsets = [0, 64], sizes = [8, 32], strides = [1, 1]} : vector<8x96xf32> to vector<8x32xf32>
    %836 = vector.extract_strided_slice %818 {offsets = [0, 64], sizes = [8, 32], strides = [1, 1]} : vector<8x96xf32> to vector<8x32xf32>
    %837 = arith.mulf %826, %836 : vector<8x32xf32>
    %838 = arith.addf %835, %837 : vector<8x32xf32>
    %839 = math.tanh %838 : vector<8x32xf32>
    %cst_190 = arith.constant 1.000000e+00 : f32
    %840 = vector.broadcast %cst_190 : f32 to vector<8x32xf32>
    %841 = arith.subf %840, %834 : vector<8x32xf32>
    %842 = arith.mulf %841, %839 : vector<8x32xf32>
    %843 = arith.mulf %834, %812 : vector<8x32xf32>
    %844 = arith.addf %842, %843 : vector<8x32xf32>
    %845 = vector.broadcast %c8_i32_184 : i32 to vector<8x1xi32>
    %846 = arith.cmpi slt, %845, %0 : vector<8x1xi32>
    %847 = vector.shape_cast %846 : vector<8x1xi1> to vector<8x1xi1>
    %848 = vector.broadcast %847 : vector<8x1xi1> to vector<8x32xi1>
    %849 = arith.select %848, %844, %812 : vector<8x32xi1>, vector<8x32xf32>
    %c9_i32_191 = arith.constant 9 : i32
    %850 = arith.index_cast %c9_i32_191 : i32 to index
    %c0_192 = arith.constant 0 : index
    %c0_193 = arith.constant 0 : index
    %851 = vector.load %arg18[%850, %c0_192, %c0_193] : memref<12x8x96xf32, #tpu.memory_space<vmem>>, vector<1x8x96xf32>
    %852 = vector.shape_cast %851 : vector<1x8x96xf32> to vector<8x96xf32>
    %cst_194 = arith.constant dense<0.000000e+00> : vector<8x96xf32>
    %853 = tpu.matmul %849, %514, %cst_194 {dimension_numbers = #tpu.dot_dimension_numbers<[1], [0], [0], [1], [0, 0, 1, 1], [], []>} : vector<8x32xf32>, vector<32x96xf32>, vector<8x96xf32> -> vector<8x96xf32>
    %854 = vector.broadcast %515 : vector<1x96xf32> to vector<8x96xf32>
    %855 = arith.addf %853, %854 : vector<8x96xf32>
    %856 = vector.extract_strided_slice %852 {offsets = [0, 0], sizes = [8, 32], strides = [1, 1]} : vector<8x96xf32> to vector<8x32xf32>
    %857 = vector.extract_strided_slice %855 {offsets = [0, 0], sizes = [8, 32], strides = [1, 1]} : vector<8x96xf32> to vector<8x32xf32>
    %858 = arith.addf %856, %857 : vector<8x32xf32>
    %859 = arith.negf %858 : vector<8x32xf32>
    %860 = math.exp %859 : vector<8x32xf32>
    %cst_195 = arith.constant 1.000000e+00 : f32
    %861 = vector.broadcast %cst_195 : f32 to vector<8x32xf32>
    %862 = arith.addf %861, %860 : vector<8x32xf32>
    %863 = arith.divf %861, %862 : vector<8x32xf32>
    %864 = vector.extract_strided_slice %852 {offsets = [0, 32], sizes = [8, 32], strides = [1, 1]} : vector<8x96xf32> to vector<8x32xf32>
    %865 = vector.extract_strided_slice %855 {offsets = [0, 32], sizes = [8, 32], strides = [1, 1]} : vector<8x96xf32> to vector<8x32xf32>
    %866 = arith.addf %864, %865 : vector<8x32xf32>
    %867 = arith.negf %866 : vector<8x32xf32>
    %868 = math.exp %867 : vector<8x32xf32>
    %cst_196 = arith.constant 1.000000e+00 : f32
    %869 = vector.broadcast %cst_196 : f32 to vector<8x32xf32>
    %870 = arith.addf %869, %868 : vector<8x32xf32>
    %871 = arith.divf %869, %870 : vector<8x32xf32>
    %872 = vector.extract_strided_slice %852 {offsets = [0, 64], sizes = [8, 32], strides = [1, 1]} : vector<8x96xf32> to vector<8x32xf32>
    %873 = vector.extract_strided_slice %855 {offsets = [0, 64], sizes = [8, 32], strides = [1, 1]} : vector<8x96xf32> to vector<8x32xf32>
    %874 = arith.mulf %863, %873 : vector<8x32xf32>
    %875 = arith.addf %872, %874 : vector<8x32xf32>
    %876 = math.tanh %875 : vector<8x32xf32>
    %cst_197 = arith.constant 1.000000e+00 : f32
    %877 = vector.broadcast %cst_197 : f32 to vector<8x32xf32>
    %878 = arith.subf %877, %871 : vector<8x32xf32>
    %879 = arith.mulf %878, %876 : vector<8x32xf32>
    %880 = arith.mulf %871, %849 : vector<8x32xf32>
    %881 = arith.addf %879, %880 : vector<8x32xf32>
    %882 = vector.broadcast %c9_i32_191 : i32 to vector<8x1xi32>
    %883 = arith.cmpi slt, %882, %0 : vector<8x1xi32>
    %884 = vector.shape_cast %883 : vector<8x1xi1> to vector<8x1xi1>
    %885 = vector.broadcast %884 : vector<8x1xi1> to vector<8x32xi1>
    %886 = arith.select %885, %881, %849 : vector<8x32xi1>, vector<8x32xf32>
    %c10_i32_198 = arith.constant 10 : i32
    %887 = arith.index_cast %c10_i32_198 : i32 to index
    %c0_199 = arith.constant 0 : index
    %c0_200 = arith.constant 0 : index
    %888 = vector.load %arg18[%887, %c0_199, %c0_200] : memref<12x8x96xf32, #tpu.memory_space<vmem>>, vector<1x8x96xf32>
    %889 = vector.shape_cast %888 : vector<1x8x96xf32> to vector<8x96xf32>
    %cst_201 = arith.constant dense<0.000000e+00> : vector<8x96xf32>
    %890 = tpu.matmul %886, %514, %cst_201 {dimension_numbers = #tpu.dot_dimension_numbers<[1], [0], [0], [1], [0, 0, 1, 1], [], []>} : vector<8x32xf32>, vector<32x96xf32>, vector<8x96xf32> -> vector<8x96xf32>
    %891 = vector.broadcast %515 : vector<1x96xf32> to vector<8x96xf32>
    %892 = arith.addf %890, %891 : vector<8x96xf32>
    %893 = vector.extract_strided_slice %889 {offsets = [0, 0], sizes = [8, 32], strides = [1, 1]} : vector<8x96xf32> to vector<8x32xf32>
    %894 = vector.extract_strided_slice %892 {offsets = [0, 0], sizes = [8, 32], strides = [1, 1]} : vector<8x96xf32> to vector<8x32xf32>
    %895 = arith.addf %893, %894 : vector<8x32xf32>
    %896 = arith.negf %895 : vector<8x32xf32>
    %897 = math.exp %896 : vector<8x32xf32>
    %cst_202 = arith.constant 1.000000e+00 : f32
    %898 = vector.broadcast %cst_202 : f32 to vector<8x32xf32>
    %899 = arith.addf %898, %897 : vector<8x32xf32>
    %900 = arith.divf %898, %899 : vector<8x32xf32>
    %901 = vector.extract_strided_slice %889 {offsets = [0, 32], sizes = [8, 32], strides = [1, 1]} : vector<8x96xf32> to vector<8x32xf32>
    %902 = vector.extract_strided_slice %892 {offsets = [0, 32], sizes = [8, 32], strides = [1, 1]} : vector<8x96xf32> to vector<8x32xf32>
    %903 = arith.addf %901, %902 : vector<8x32xf32>
    %904 = arith.negf %903 : vector<8x32xf32>
    %905 = math.exp %904 : vector<8x32xf32>
    %cst_203 = arith.constant 1.000000e+00 : f32
    %906 = vector.broadcast %cst_203 : f32 to vector<8x32xf32>
    %907 = arith.addf %906, %905 : vector<8x32xf32>
    %908 = arith.divf %906, %907 : vector<8x32xf32>
    %909 = vector.extract_strided_slice %889 {offsets = [0, 64], sizes = [8, 32], strides = [1, 1]} : vector<8x96xf32> to vector<8x32xf32>
    %910 = vector.extract_strided_slice %892 {offsets = [0, 64], sizes = [8, 32], strides = [1, 1]} : vector<8x96xf32> to vector<8x32xf32>
    %911 = arith.mulf %900, %910 : vector<8x32xf32>
    %912 = arith.addf %909, %911 : vector<8x32xf32>
    %913 = math.tanh %912 : vector<8x32xf32>
    %cst_204 = arith.constant 1.000000e+00 : f32
    %914 = vector.broadcast %cst_204 : f32 to vector<8x32xf32>
    %915 = arith.subf %914, %908 : vector<8x32xf32>
    %916 = arith.mulf %915, %913 : vector<8x32xf32>
    %917 = arith.mulf %908, %886 : vector<8x32xf32>
    %918 = arith.addf %916, %917 : vector<8x32xf32>
    %919 = vector.broadcast %c10_i32_198 : i32 to vector<8x1xi32>
    %920 = arith.cmpi slt, %919, %0 : vector<8x1xi32>
    %921 = vector.shape_cast %920 : vector<8x1xi1> to vector<8x1xi1>
    %922 = vector.broadcast %921 : vector<8x1xi1> to vector<8x32xi1>
    %923 = arith.select %922, %918, %886 : vector<8x32xi1>, vector<8x32xf32>
    %c11_i32_205 = arith.constant 11 : i32
    %924 = arith.index_cast %c11_i32_205 : i32 to index
    %c0_206 = arith.constant 0 : index
    %c0_207 = arith.constant 0 : index
    %925 = vector.load %arg18[%924, %c0_206, %c0_207] : memref<12x8x96xf32, #tpu.memory_space<vmem>>, vector<1x8x96xf32>
    %926 = vector.shape_cast %925 : vector<1x8x96xf32> to vector<8x96xf32>
    %cst_208 = arith.constant dense<0.000000e+00> : vector<8x96xf32>
    %927 = tpu.matmul %923, %514, %cst_208 {dimension_numbers = #tpu.dot_dimension_numbers<[1], [0], [0], [1], [0, 0, 1, 1], [], []>} : vector<8x32xf32>, vector<32x96xf32>, vector<8x96xf32> -> vector<8x96xf32>
    %928 = vector.broadcast %515 : vector<1x96xf32> to vector<8x96xf32>
    %929 = arith.addf %927, %928 : vector<8x96xf32>
    %930 = vector.extract_strided_slice %926 {offsets = [0, 0], sizes = [8, 32], strides = [1, 1]} : vector<8x96xf32> to vector<8x32xf32>
    %931 = vector.extract_strided_slice %929 {offsets = [0, 0], sizes = [8, 32], strides = [1, 1]} : vector<8x96xf32> to vector<8x32xf32>
    %932 = arith.addf %930, %931 : vector<8x32xf32>
    %933 = arith.negf %932 : vector<8x32xf32>
    %934 = math.exp %933 : vector<8x32xf32>
    %cst_209 = arith.constant 1.000000e+00 : f32
    %935 = vector.broadcast %cst_209 : f32 to vector<8x32xf32>
    %936 = arith.addf %935, %934 : vector<8x32xf32>
    %937 = arith.divf %935, %936 : vector<8x32xf32>
    %938 = vector.extract_strided_slice %926 {offsets = [0, 32], sizes = [8, 32], strides = [1, 1]} : vector<8x96xf32> to vector<8x32xf32>
    %939 = vector.extract_strided_slice %929 {offsets = [0, 32], sizes = [8, 32], strides = [1, 1]} : vector<8x96xf32> to vector<8x32xf32>
    %940 = arith.addf %938, %939 : vector<8x32xf32>
    %941 = arith.negf %940 : vector<8x32xf32>
    %942 = math.exp %941 : vector<8x32xf32>
    %cst_210 = arith.constant 1.000000e+00 : f32
    %943 = vector.broadcast %cst_210 : f32 to vector<8x32xf32>
    %944 = arith.addf %943, %942 : vector<8x32xf32>
    %945 = arith.divf %943, %944 : vector<8x32xf32>
    %946 = vector.extract_strided_slice %926 {offsets = [0, 64], sizes = [8, 32], strides = [1, 1]} : vector<8x96xf32> to vector<8x32xf32>
    %947 = vector.extract_strided_slice %929 {offsets = [0, 64], sizes = [8, 32], strides = [1, 1]} : vector<8x96xf32> to vector<8x32xf32>
    %948 = arith.mulf %937, %947 : vector<8x32xf32>
    %949 = arith.addf %946, %948 : vector<8x32xf32>
    %950 = math.tanh %949 : vector<8x32xf32>
    %cst_211 = arith.constant 1.000000e+00 : f32
    %951 = vector.broadcast %cst_211 : f32 to vector<8x32xf32>
    %952 = arith.subf %951, %945 : vector<8x32xf32>
    %953 = arith.mulf %952, %950 : vector<8x32xf32>
    %954 = arith.mulf %945, %923 : vector<8x32xf32>
    %955 = arith.addf %953, %954 : vector<8x32xf32>
    %956 = vector.broadcast %c11_i32_205 : i32 to vector<8x1xi32>
    %957 = arith.cmpi slt, %956, %0 : vector<8x1xi32>
    %958 = vector.shape_cast %957 : vector<8x1xi1> to vector<8x1xi1>
    %959 = vector.broadcast %958 : vector<8x1xi1> to vector<8x32xi1>
    %960 = arith.select %959, %955, %923 : vector<8x32xi1>, vector<8x32xf32>
    %c12_i32_212 = arith.constant 12 : i32
    %c0_213 = arith.constant 0 : index
    %c0_214 = arith.constant 0 : index
    %961 = vector.load %arg11[%c0_213, %c0_214] : memref<32x32xf32, #tpu.memory_space<vmem>>, vector<32x32xf32>
    %cst_215 = arith.constant dense<0.000000e+00> : vector<8x32xf32>
    %962 = tpu.matmul %960, %961, %cst_215 {dimension_numbers = #tpu.dot_dimension_numbers<[1], [0], [0], [1], [0, 0, 1, 1], [], []>} : vector<8x32xf32>, vector<32x32xf32>, vector<8x32xf32> -> vector<8x32xf32>
    %c0_216 = arith.constant 0 : index
    %c0_217 = arith.constant 0 : index
    %963 = vector.load %arg12[%c0_216, %c0_217] : memref<1x32xf32, #tpu.memory_space<vmem>>, vector<1x32xf32>
    %964 = vector.broadcast %963 : vector<1x32xf32> to vector<8x32xf32>
    %965 = arith.addf %962, %964 : vector<8x32xf32>
    %966 = math.tanh %965 : vector<8x32xf32>
    %c0_218 = arith.constant 0 : index
    %c0_219 = arith.constant 0 : index
    %967 = vector.load %arg13[%c0_218, %c0_219] : memref<32x32xf32, #tpu.memory_space<vmem>>, vector<32x32xf32>
    %cst_220 = arith.constant dense<0.000000e+00> : vector<8x32xf32>
    %968 = tpu.matmul %966, %967, %cst_220 {dimension_numbers = #tpu.dot_dimension_numbers<[1], [0], [0], [1], [0, 0, 1, 1], [], []>} : vector<8x32xf32>, vector<32x32xf32>, vector<8x32xf32> -> vector<8x32xf32>
    %c0_221 = arith.constant 0 : index
    %c0_222 = arith.constant 0 : index
    %969 = vector.load %arg14[%c0_221, %c0_222] : memref<1x32xf32, #tpu.memory_space<vmem>>, vector<1x32xf32>
    %970 = vector.broadcast %969 : vector<1x32xf32> to vector<8x32xf32>
    %971 = arith.addf %968, %970 : vector<8x32xf32>
    %972 = math.tanh %971 : vector<8x32xf32>
    %c0_223 = arith.constant 0 : index
    %c0_224 = arith.constant 0 : index
    %973 = vector.load %arg15[%c0_223, %c0_224] : memref<1x32xf32, #tpu.memory_space<vmem>>, vector<1x32xf32>
    %974 = vector.broadcast %973 : vector<1x32xf32> to vector<8x32xf32>
    %975 = arith.mulf %972, %974 : vector<8x32xf32>
    %cst_225 = arith.constant dense<0.000000e+00> : vector<8xf32>
    %976 = vector.multi_reduction <add>, %975, %cst_225 [1] : vector<8x32xf32> to vector<8xf32>
    %977 = vector.shape_cast %976 : vector<8xf32> to vector<8x1xf32>
    %c0_226 = arith.constant 0 : index
    %c0_227 = arith.constant 0 : index
    %978 = memref.load %arg16[%c0_226, %c0_227] : memref<1x1xf32, #tpu.memory_space<smem>>
    %979 = vector.broadcast %978 : f32 to vector<8x1xf32>
    %980 = arith.addf %977, %979 : vector<8x1xf32>
    %c0_228 = arith.constant 0 : index
    %c0_229 = arith.constant 0 : index
    %981 = vector.load %arg17[%c0_228, %c0_229] : memref<8x1xf32, #tpu.memory_space<vmem>>, vector<8x1xf32>
    tpu.vector_store %arg17[%c0_228, %c0_229], %980 {strides = array<i32>} : memref<8x1xf32, #tpu.memory_space<vmem>>, vector<8x1xf32>,
    return
  }
  func.func @transform_0(%arg0: i32) -> (i32, i32, i32) {
    %c0_i32 = arith.constant 0 : i32
    %c0_i32_0 = arith.constant 0 : i32
    %c0_i32_1 = arith.constant 0 : i32
    return %c0_i32, %arg0, %c0_i32_0 : i32, i32, i32
  }
  func.func @transform_1(%arg0: i32) -> (i32, i32) {
    %c0_i32 = arith.constant 0 : i32
    %c0_i32_0 = arith.constant 0 : i32
    return %arg0, %c0_i32 : i32, i32
  }
  func.func @transform_2(%arg0: i32) -> (i32, i32) {
    %c0_i32 = arith.constant 0 : i32
    %c0_i32_0 = arith.constant 0 : i32
    %c0_i32_1 = arith.constant 0 : i32
    return %c0_i32, %c0_i32_0 : i32, i32
  }
  func.func @transform_3(%arg0: i32) -> (i32, i32) {
    %c0_i32 = arith.constant 0 : i32
    %c0_i32_0 = arith.constant 0 : i32
    %c0_i32_1 = arith.constant 0 : i32
    return %c0_i32, %c0_i32_0 : i32, i32
  }
  func.func @transform_4(%arg0: i32) -> (i32, i32) {
    %c0_i32 = arith.constant 0 : i32
    %c0_i32_0 = arith.constant 0 : i32
    %c0_i32_1 = arith.constant 0 : i32
    return %c0_i32, %c0_i32_0 : i32, i32
  }
  func.func @transform_5(%arg0: i32) -> (i32, i32) {
    %c0_i32 = arith.constant 0 : i32
    %c0_i32_0 = arith.constant 0 : i32
    %c0_i32_1 = arith.constant 0 : i32
    return %c0_i32, %c0_i32_0 : i32, i32
  }
  func.func @transform_6(%arg0: i32) -> (i32, i32) {
    %c0_i32 = arith.constant 0 : i32
    %c0_i32_0 = arith.constant 0 : i32
    %c0_i32_1 = arith.constant 0 : i32
    return %c0_i32, %c0_i32_0 : i32, i32
  }
  func.func @transform_7(%arg0: i32) -> (i32, i32) {
    %c0_i32 = arith.constant 0 : i32
    %c0_i32_0 = arith.constant 0 : i32
    %c0_i32_1 = arith.constant 0 : i32
    return %c0_i32, %c0_i32_0 : i32, i32
  }
  func.func @transform_8(%arg0: i32) -> (i32, i32) {
    %c0_i32 = arith.constant 0 : i32
    %c0_i32_0 = arith.constant 0 : i32
    %c0_i32_1 = arith.constant 0 : i32
    return %c0_i32, %c0_i32_0 : i32, i32
  }
  func.func @transform_9(%arg0: i32) -> (i32, i32) {
    %c0_i32 = arith.constant 0 : i32
    %c0_i32_0 = arith.constant 0 : i32
    %c0_i32_1 = arith.constant 0 : i32
    return %c0_i32, %c0_i32_0 : i32, i32
  }
  func.func @transform_10(%arg0: i32) -> (i32, i32) {
    %c0_i32 = arith.constant 0 : i32
    %c0_i32_0 = arith.constant 0 : i32
    %c0_i32_1 = arith.constant 0 : i32
    return %c0_i32, %c0_i32_0 : i32, i32
  }
  func.func @transform_11(%arg0: i32) -> (i32, i32) {
    %c0_i32 = arith.constant 0 : i32
    %c0_i32_0 = arith.constant 0 : i32
    %c0_i32_1 = arith.constant 0 : i32
    return %c0_i32, %c0_i32_0 : i32, i32
  }
  func.func @transform_12(%arg0: i32) -> (i32, i32) {
    %c0_i32 = arith.constant 0 : i32
    %c0_i32_0 = arith.constant 0 : i32
    %c0_i32_1 = arith.constant 0 : i32
    return %c0_i32, %c0_i32_0 : i32, i32
  }
  func.func @transform_13(%arg0: i32) -> (i32, i32) {
    %c0_i32 = arith.constant 0 : i32
    %c0_i32_0 = arith.constant 0 : i32
    %c0_i32_1 = arith.constant 0 : i32
    return %c0_i32, %c0_i32_0 : i32, i32
  }
  func.func @transform_14(%arg0: i32) -> (i32, i32) {
    %c0_i32 = arith.constant 0 : i32
    %c0_i32_0 = arith.constant 0 : i32
    %c0_i32_1 = arith.constant 0 : i32
    return %c0_i32, %c0_i32_0 : i32, i32
  }
  func.func @transform_15(%arg0: i32) -> (i32, i32) {
    %c0_i32 = arith.constant 0 : i32
    %c0_i32_0 = arith.constant 0 : i32
    %c0_i32_1 = arith.constant 0 : i32
    return %c0_i32, %c0_i32_0 : i32, i32
  }
  func.func @transform_16(%arg0: i32) -> (i32, i32) {
    %c0_i32 = arith.constant 0 : i32
    %c0_i32_0 = arith.constant 0 : i32
    return %arg0, %c0_i32 : i32, i32
  }
}

</mosaic_0001>

<bundles_post_ra>
// kernel: tpu_custom_call.1
= control target key start
LH: loop header
LB: loop body
LE: loop exit
PB: predicated region body
PF: predicated region fallthrough
CT: control target
= control target key end

     0   :  { %s5991_s0 = inlined_call_operand.hbm [shape: f32[12,16,16], index: 0, kind: input, shape index: {}]   ;;  %s5992_s1 = inlined_call_operand.vmem [shape: s32[16,1], index: 1, kind: input, shape index: {}]   ;;  %s5993_s2 = inlined_call_operand.hbm [shape: f32[16,96], index: 2, kind: input, shape index: {}]   ;;  %s5994_s3 = inlined_call_operand.hbm [shape: f32[32,96], index: 3, kind: input, shape index: {}]   ;;  %s5995_s4 = inlined_call_operand.vmem [shape: f32[1,96], index: 4, kind: input, shape index: {}]   ;;  %s5996_s5 = inlined_call_operand.vmem [shape: f32[1,96], index: 5, kind: input, shape index: {}]   ;;  %s5997_s6 = inlined_call_operand.hbm [shape: f32[32,96], index: 6, kind: input, shape index: {}]   ;;  %s5998_s7 = inlined_call_operand.hbm [shape: f32[32,96], index: 7, kind: input, shape index: {}]   ;;  %s5999_s8 = inlined_call_operand.vmem [shape: f32[1,96], index: 8, kind: input, shape index: {}]   ;;  %s6000_s9 = inlined_call_operand.vmem [shape: f32[1,96], index: 9, kind: input, shape index: {}]   ;;  %s6001_s10 = inlined_call_operand.vmem [shape: f32[32,32], index: 10, kind: input, shape index: {}]   ;;  %s6002_s11 = inlined_call_operand.vmem [shape: f32[1,32], index: 11, kind: input, shape index: {}]   ;;  %s6003_s12 = inlined_call_operand.hbm [shape: f32[32,32], index: 12, kind: input, shape index: {}]   ;;  %s6004_s13 = inlined_call_operand.vmem [shape: f32[1,32], index: 13, kind: input, shape index: {}]   ;;  %s6005_s14 = inlined_call_operand.vmem [shape: f32[1,32], index: 14, kind: input, shape index: {}]   ;;  %s6006_s15 = inlined_call_operand.<no memory space> [shape: f32[1,1], index: 15, kind: input, shape index: {}]   ;;  %s6007_s16 = inlined_call_operand.vmem [shape: f32[16,1], index: 16, kind: output, shape index: {}]  }
   0x1   :  { %6014 = sst [smem:[#allocation19_spill]] %s5991_s0 }
   0x2   :  { %6015 = sst [smem:[#allocation20_spill]] %s5993_s2 }
   0x3   :  { %6016 = sst [smem:[#allocation21_spill]] %s5994_s3 }
   0x4   :  { %6017 = sst [smem:[#allocation22_spill]] %s5997_s6 }
   0x5   :  { %6018 = sst [smem:[#allocation23_spill]] %s6005_s14 }
   0x6   :  { %6019 = sst [smem:[#allocation24_spill]] %s6007_s16 }
   0x7   :  { %21 = sst [smem:[#allocation4]] %s6006_s15 }
   0x8   :  { %22 = vsyncpa [#allocation6], 0 }
   0x9   :  { %24 = vsyncpa [#allocation6 + $0x1], 0 }
   0xa   :  { %25 = vsyncpa [#allocation8], 0 }
   0xb   :  { %26 = vsyncpa [#allocation11], 0 }
   0xc   :  { %27 = vsyncpa [#allocation14], 0  ;;  %s5097_s23 = smov 0   ;;  %s5099_s24 = smov 0  }
   0xd   :  { %s5101_s25 = smov 0   ;;  %s5103_s26 = smov 0  }
   0xe LB: > { %s5116_s15 = sadd.s32 4294967295, %s4993_s26   ;;  %p53_p0 = scmp.ne.s32.totalorder %s4985_s24, %s4981_s23  ;;  %s4993_s26 = sphi %s5103_s26, %s6044_s26   ;;  %s4989_s25 = sphi %s5101_s25, %s6043_s25   ;;  %s4985_s24 = sphi %s5099_s24, %s6042_s24   ;;  %s4981_s23 = sphi %s5097_s23, %s6041_s23  }
   0xf   : > { %p6011_p1 = scmp.eq.s32.totalorder %s5116_s15, 0  ;;  %p3946_p2 = scmp.ge.s32.totalorder %s4993_s26, 1 }
  0x10   : > { %p410_p3 = scmp.lt.s32.totalorder %s4993_s26, 3  ;;  %s4995_s29 = smov [#allocation7]  }
  0x11   : > { %p5124_p4 = por %p6011_p1, %p53_p0  ;;  %s422_s30 = sshll.u32 %s4995_s29, 4  ;;  %s423_s30 = int_to_ptr.vmem [resolvable:$true] %s422_s30 }
  0x12   : > { %p5128_p5 = pnand %p3946_p2, %p410_p3  ;;  %s4996_s17 = smov [#allocation10]  }
  0x13   : > { %s6020_s27 = scalar_select %p5124_p4, 1, 0 }
  0x14   : > { %s6021_s28 = scalar_select %p5128_p5, 1, 0 }
  0x15   : > { %p4561_p6 = pneg %p5128_p5  ;;  %s454_s18 = sshll.u32 %s4996_s17, 4  ;;  %s455_s18 = int_to_ptr.vmem [resolvable:$true] %s454_s18 }
  0x16   : > { %s4997_s19 = smov [#allocation9]   ;;  %s4800_s22 = scalar_lea.vmem %s423_s30, 256 }
  0x17   : > { %p5136_p7 = pnand %p4561_p6, %p6011_p1  ;;  %s435_s20 = sshll.u32 %s4997_s19, 4  ;;  %s436_s20 = int_to_ptr.vmem [resolvable:$true] %s435_s20 }
  0x18   : > { %p4801_p9 = scmp.ne.s32.totalorder %s423_s30, %s4800_s22  ;;  %p4808_p12 = scmp.lt.s32.totalorder %s423_s30, %s423_s30 }
  0x19   : > { %p5142_p8 = pneg %p5136_p7  ;;  %p4809_p13 = scmp.lt.s32.totalorder %s4800_s22, %s4800_s22 }
  0x1b   : > { %p4803_p10 = pnand %p4801_p9, %p5142_p8  ;;  %p4810_p0 = por %p4809_p13, %p4808_p12 }
  0x1d   : > { %p4804_p11 = pneg %p4803_p10 }
  0x1f   : > { %p4811_p2 = pnand %p4810_p0, %p4804_p11 }
  0x21   : > { %4814 = shalt.err (!%p4811_p2)
}
  0x22   : > { %s6009_s23 = smov 128   ;;  %s6010_s29 = smov 8  }
  0x23   : > { %s6024_s2 = sld [smem:[#allocation20_spill]]  ;;  %s4826_s16 = scalar_lea.vmem %s455_s18, 512 }
  0x24   : > { %p4827_p3 = scmp.ne.s32.totalorder %s455_s18, %s4826_s16  ;;  %p4834_p10 = scmp.lt.s32.totalorder %s455_s18, %s455_s18 }
  0x25   : > { %p4835_p11 = scmp.lt.s32.totalorder %s4826_s16, %s4826_s16 }
  0x26   : > { %p4829_p6 = pnand %p4827_p3, %p5142_p8 }
  0x27   : > { %p4836_p12 = por %p4835_p11, %p4834_p10 }
  0x28   : > { %p4830_p9 = pneg %p4829_p6 }
  0x29   : > { %4564 = dma.hbm_to_vmem [thread:$0]  (!%p5136_p7), %s6024_s2, 256, %s423_s30, [#allocation8], %s6009_s23, %s6009_s23, %s6010_s29  }
  0x2a   : > { %p4837_p13 = pnand %p4836_p12, %p4830_p9 }
  0x2c   : > { %4840 = shalt.err (!%p4837_p13)
}
  0x2d   : > { %s6025_s6 = sld [smem:[#allocation22_spill]]  ;;  %s4852_s30 = scalar_lea.vmem %s436_s20, 512 }
  0x2e   : > { %p4853_p0 = scmp.ne.s32.totalorder %s436_s20, %s4852_s30  ;;  %p4860_p6 = scmp.lt.s32.totalorder %s436_s20, %s436_s20 }
  0x2f   : > { %p4861_p10 = scmp.lt.s32.totalorder %s4852_s30, %s4852_s30 }
  0x30   : > { %p4855_p2 = pnand %p4853_p0, %p5142_p8 }
  0x31   : > { %p4862_p9 = por %p4861_p10, %p4860_p6 }
  0x32   : > { %p4856_p3 = pneg %p4855_p2 }
  0x33   : > { %4570 = dma.hbm_to_vmem [thread:$0]  (!%p5136_p7), %s6025_s6, 512, %s455_s18, [#allocation11], %s6009_s23, %s6009_s23, %s6010_s29  }
  0x34   : > { %p4863_p11 = pnand %p4862_p9, %p4856_p3 }
  0x36   : > { %4866 = shalt.err (!%p4863_p11)
}
  0x37   : > { %s6026_s3 = sld [smem:[#allocation21_spill]]  ;;  %s5000_s18 = smov [#allocation12]  }
  0x38   : > { %s467_s17 = sshll.u32 %s5000_s18, 4  ;;  %s5001_s19 = smov [#allocation13]   ;;  %s468_s17 = int_to_ptr.vmem [resolvable:$true] %s467_s17 }
  0x39   : > { %s492_s22 = sshll.u32 %s5001_s19, 4  ;;  %s4878_s2 = scalar_lea.vmem %s468_s17, 512  ;;  %s493_s22 = int_to_ptr.vmem [resolvable:$true] %s492_s22 }
  0x3a   : > { %p4879_p12 = scmp.ne.s32.totalorder %s468_s17, %s4878_s2  ;;  %p4886_p2 = scmp.lt.s32.totalorder %s468_s17, %s468_s17 }
  0x3b   : > { %p4887_p3 = scmp.lt.s32.totalorder %s4878_s2, %s4878_s2 }
  0x3c   : > { %p4881_p13 = pnand %p4879_p12, %p5142_p8 }
  0x3d   : > { %4567 = dma.hbm_to_vmem [thread:$0]  (!%p5136_p7), %s6026_s3, 512, %s436_s20, [#allocation8], %s6009_s23, %s6009_s23, %s6010_s29  }
  0x3e   : > { %p4882_p0 = pneg %p4881_p13  ;;  %p4888_p6 = por %p4887_p3, %p4886_p2 }
  0x40   : > { %p4889_p10 = pnand %p4888_p6, %p4882_p0 }
  0x42   : > { %4892 = shalt.err (!%p4889_p10)
}
  0x43   : > { %4573 = dma.hbm_to_vmem [thread:$0]  (!%p5136_p7), %s5998_s7, 512, %s468_s17, [#allocation11], %s6009_s23, %s6009_s23, %s6010_s29  }
  0x44   : > { %s4904_s16 = scalar_lea.vmem %s493_s22, 512  ;;  %p4912_p13 = scmp.lt.s32.totalorder %s493_s22, %s493_s22 }
  0x45   : > { %p4905_p9 = scmp.ne.s32.totalorder %s493_s22, %s4904_s16  ;;  %p4913_p2 = scmp.lt.s32.totalorder %s4904_s16, %s4904_s16 }
  0x47   : > { %p4907_p11 = pnand %p4905_p9, %p5142_p8  ;;  %p4914_p0 = por %p4913_p2, %p4912_p13 }
  0x49   : > { %p4908_p12 = pneg %p4907_p11 }
  0x4b   : > { %p4915_p3 = pnand %p4914_p0, %p4908_p12 }
  0x4d   : > { %4918 = shalt.err (!%p4915_p3)
}
  0x4e   : > { %4576 = dma.hbm_to_vmem [thread:$0]  (!%p5136_p7), %s6003_s12, 512, %s493_s22, [#allocation14], %s6009_s23, %s6009_s23, %s6010_s29  }
  0x4f   : > { %s5197_s21 = sadd.s32 1, %s4993_s26   ;;  %s40_s18 = sadd.s32 1, %s4989_s25 }
  0x50   : > { %s37_s0 = ssub.s32 %s4993_s26, %s5197_s21  ;;  %p47_p6 = scmp.ne.s32.totalorder %s4989_s25, %s4985_s24 }
  0x51   : > { %p38_p8 = scmp.eq.s32.totalorder %s37_s0, 0  ;;  %p48_p10 = scmp.eq.s32.totalorder %s4993_s26, 0 }
  0x52   : > { %p4586_p9 = scmp.lt.s32.totalorder %s4993_s26, 2  ;;  %s515_s19 = sand.u32 1, %s4989_s25  }
  0x53   : > { %s5207_s17 = scalar_select %p38_p8, %s4989_s25, %s40_s18  }
  0x54   : > { %p49_p11 = por %p48_p10, %p47_p6  ;;  %s4537_s20 = smul.u32 96, %s515_s19 }
  0x55   : > { %s3953_s30 = sshll.u32 %s4993_s26, 7  ;;  %s6028_s14 = sld [smem:[#allocation19_spill]] }
  0x56   : > { %p5211_p12 = pnand %p4586_p9, %p49_p11  ;;  %s519_s0 = scalar_lea.vmem [#allocation5], %s4537_s20 }
  0x57   : > { %s525_s18 = sshll.u32 %s519_s0, 4  ;;  %s5222_s29 = scalar_lea.sflag [#allocation6], %s515_s19  ;;  %s5220_s18 = int_to_ptr.vmem [resolvable:$true] %s525_s18 }
  0x58   : > { %p4921_p13 = pneg %p5211_p12 }
  0x5b   : > { %s5218_s23 = scalar_lea.hbm %s6028_s14, %s3953_s30  ;;  %s4924_s30 = scalar_lea.hbm %s6028_s14, 3072 }
  0x5c   : > { %s4919_s26 = scalar_lea.hbm %s5218_s23, 1536  ;;  %p4925_p3 = scmp.lt.s32.totalorder %s5218_s23, %s6028_s14 }
  0x5d   : > { %p4920_p7 = scmp.ne.s32.totalorder %s5218_s23, %s4919_s26  ;;  %p4926_p8 = scmp.lt.s32.totalorder %s4924_s30, %s4919_s26 }
  0x5f   : > { %p4922_p2 = pnand %p4921_p13, %p4920_p7  ;;  %p4927_p6 = por %p4926_p8, %p4925_p3 }
  0x61   : > { %p4923_p0 = pneg %p4922_p2 }
  0x63   : > { %p4928_p10 = pnand %p4927_p6, %p4923_p0 }
  0x65   : > { %4931 = shalt.err (!%p4928_p10)
}
  0x66   : > { %s4932_s19 = scalar_lea.vmem %s5220_s18, 1536  ;;  %s5002_s20 = smov [#allocation5]  }
  0x67   : > { %p4933_p9 = scmp.ne.s32.totalorder %s5220_s18, %s4932_s19  ;;  %s4937_s0 = sshll.u32 %s5002_s20, 4  ;;  %s4938_s0 = int_to_ptr.vmem [resolvable:$false] %s4937_s0 }
  0x68   : > { %s4939_s3 = scalar_lea.vmem %s4938_s0, 3072  ;;  %p4940_p2 = scmp.lt.s32.totalorder %s5220_s18, %s4938_s0 }
  0x69   : > { %p4935_p11 = pnand %p4933_p9, %p4921_p13  ;;  %p4941_p1 = scmp.lt.s32.totalorder %s4939_s3, %s4932_s19 }
  0x6b   : > { %p4936_p7 = pneg %p4935_p11  ;;  %p4942_p4 = por %p4941_p1, %p4940_p2 }
  0x6d   : > { %p4943_p5 = pnand %p4942_p4, %p4936_p7 }
  0x6f   : > { %4946 = shalt.err (!%p4943_p5)
}
  0x70   : > { %s5003_s6 = smov 256   ;;  %s6029_s26 = smov 8  }
  0x71   : > { %s6030_s22 = smov 128   ;;  %p6031_p13 = scmp.ne.s32.totalorder %s6021_s28, 0 }
  0x72   : > { %4580 = dma.hbm_to_vmem [thread:$0]  (!%p5211_p12), %s5218_s23, 1536, %s5220_s18, %s5222_s29, %s5003_s6, %s6030_s22, %s6029_s26  }
  0x73   : > { %544 = sbr.rel (%p6031_p13) target bundleno = 16305 (0x3fb1), region = 84  ;;  %s546_s30 = sand.u32 (!%p6031_p13), 1, %s4985_s24  }
  0x74   : > { %s4538_s2 = smul.u32 (!%p6031_p13), 96, %s546_s30  ;;  %s547_s19 = scalar_lea.sflag (!%p6031_p13), [#allocation6], %s546_s30 }
  0x75   : > { %p6032_p1 = scmp.ne.s32.totalorder (!%p6031_p13), %s6020_s27, 0 }
  0x76   : > { %s5248_s20 = scalar_lea.vmem (!%p6031_p13), [#allocation5], %s4538_s2 }
  0x78   : > { %4964 = dma.done.wait (%p6032_p1), %s547_s19, 1536  }
  0x79   : > { %4966 = vsyncadd (%p6032_p1), %s547_s19, 4294965760  ;;  %p6033_p4 = scmp.eq.s32.totalorder %s5116_s15, 0 }
  0x7b   : > { %4968 = dma.done.wait (%p6033_p4), [#allocation8], 768   ;;  %p6034_p5 = pmov %p6033_p4 }
  0x7c   : > { %p6035_p12 = pmov %p6033_p4 }
  0x7d   : > { %4970 = vsyncadd (%p6034_p5), [#allocation8], 4294966528 }
  0x7e   : > { %4972 = dma.done.wait (%p6035_p12), [#allocation11], 1024   ;;  %p6036_p0 = pmov %p6033_p4 }
  0x80   : > { %4974 = vsyncadd (%p6036_p0), [#allocation11], 4294966272  ;;  %p6037_p3 = pmov %p6036_p0 }
  0x81   : > { %p6038_p8 = pmov %p6036_p0 }
  0x82   : > { %4976 = dma.done.wait (%p6037_p3), [#allocation14], 512  }
  0x83   : > { %4978 = vsyncadd (%p6038_p8), [#allocation14], 4294966784  ;;  %v5004_v0 = vmov 0.0   ;;  %vm5005_vm0 = vmmov 0   ;;  %v644_v1 = vld [vmem:[#allocation7 + $0x8] sm:$0xff]  ;;  %v643_v3 = vld [vmem:[#allocation7] sm:$0xff] }
  0x84   : > { %4225 = vmatprep.subr.mxu1 %v5004_v0  ;;  %4233 = vmatprep.mubr.msk.f32.mxu1 %vm5005_vm0, %v5004_v0  ;;  %v5269_v2 = vld [vmem:[#allocation9 + $0x18] sm:$0xff]  ;;  %v5272_v4 = vld [vmem:[#allocation9 + $0x10] sm:$0xff]  ;;  %vm652_vm1 = vcmask 130048   ;;  %v5278_v7 = vld [vmem:[#allocation9 + $0x8] sm:$0xff]  ;;  %vm814_vm2 = vcmask 785408   ;;  %s5006_s16 = smov 64  }
  0x85   : > { %4203 = vmatprep.subr.mxu0 %v644_v1  ;;  %4226 = vmatpush3.msra.mxu1 %v5269_v2  ;;  %v631_v5 = vld [vmem:[%s5248_s20] sm:$0xff]  ;;  %v632_v6 = vld [vmem:[%s5248_s20 + $0x8] sm:$0xff]  ;;  %v5283_v8 = vld [vmem:[#allocation9] sm:$0xff]  ;;  %p622_p6 = scmp.lt.s32.totalorder %s5116_s15, 1  ;;  %v5007_v24 = vmov 0   ;;  %s5008_s26 = smov 96  }
  0x86   : > { %4204 = vmatpush3.msra.mxu0 %v644_v1  ;;  %4227 = vmatprep.subr.mxu1 %v5004_v0  ;;  %v5312_v10 = vld [vmem:[%s5995_s4] ss:$0 sm:$0xff]  ;;  %vm839_vm5 = vcmask 261120   ;;  %v633_v54 = vld [vmem:[%s5248_s20 + $0x10] sm:$0xff]  ;;  %v634_v55 = vld [vmem:[%s5248_s20 + $0x18] sm:$0xff]  ;;  %s6039_s28 = sld [smem:[#allocation23_spill]] }
  0x87   : > { %4205 = vmatprep.subr.mxu0 %v643_v3  ;;  %4228 = vmatpush3.msra.mxu1 %v5272_v4  ;;  %v5318_v13 = vld [vmem:[%s5996_s5] ss:$0 sm:$0xff]  ;;  %s6046_s15 = smov (!%p622_p6, %s5116_s15), 1  ;;  %s3815_s23 = sld [smem:[#allocation4]] }
  0x88   : > { %4206 = vmatpush3.msra.mxu0 %v643_v3  ;;  %4207 = vmatprep.mubr.msk.f32.mxu0 %vm652_vm1, %v631_v5  ;;  %s3960_s18 = sshll.u32 %s6046_s15, 3  ;;  %s6040_s3 = sld [smem:[#allocation24_spill]] }
  0x89   : > { %4229 = vmatprep.subr.mxu1 %v5004_v0  ;;  %4208 = vmatmul.mubr.msk.f32.vlgmr.msra.gmra.mxu0 %vm652_vm1, %v632_v6  ;;  %s5335_s6 = scalar_lea.vmem %s5992_s1, %s3960_s18 }
  0x8a   : > { %4230 = vmatpush3.msra.mxu1 %v5278_v7  ;;  %4258 = vmatprep.subr.mxu0 %v5004_v0  ;;  %v5338_v23 = vld [vmem:[%s5335_s6] sm:$0xff] }
  0x8b   : > { %4231 = vmatprep.subr.mxu1 %v5004_v0  ;;  %4259 = vmatpush3.msra.mxu0 %v5269_v2  ;;  %vm939_vm3 = vcmp.gt.s32.totalorder %v5338_v23, 0  ;;  %vm1051_vm6 = vcmp.gt.s32.totalorder %v5338_v23, 1  ;;  %vm1164_vm8 = vcmp.gt.s32.totalorder %v5338_v23, 2  ;;  %vm1277_vm10 = vcmp.gt.s32.totalorder %v5338_v23, 3 }
  0x8c   : > { %4232 = vmatpush3.msra.mxu1 %v5283_v8  ;;  %4260 = vmatprep.subr.mxu0 %v5004_v0  ;;  %v940_v25 = vsel %vm939_vm3, 1, %v5007_v24  ;;  %v1052_v43 = vsel %vm1051_vm6, 1, %v5007_v24  ;;  %vm1390_vm12 = vcmp.gt.s32.totalorder %v5338_v23, 4  ;;  %vm1503_vm14 = vcmp.gt.s32.totalorder %v5338_v23, 5 }
  0x8d   : > { %4234 = vmatmul.mubr.f32.vlgmr.msra.gmra.mxu1 %v5004_v0  ;;  %4236 = vmatprep.subr.mxu1 %v5004_v0  ;;  %vm1729_vm6 = vcmp.gt.s32.totalorder %v5338_v23, 7 }
  0x8e   : > { %4237 = vmatpush3.msra.mxu1 %v5269_v2  ;;  %4244 = vmatprep.mubr.msk.f32.mxu1 %vm5005_vm0, %v5004_v0 }
  0x8f   : > { %4238 = vmatprep.subr.mxu1 %v5004_v0  ;;  %4261 = vmatpush3.msra.mxu0 %v5272_v4 }
  0x90   : > { %4239 = vmatpush3.msra.mxu1 %v5272_v4  ;;  %4262 = vmatprep.subr.mxu0 %v5004_v0 }
  0x91   : > { %4240 = vmatprep.subr.mxu1 %v5004_v0  ;;  %4263 = vmatpush3.msra.mxu0 %v5278_v7 }
  0x92   : > { %4241 = vmatpush3.msra.mxu1 %v5278_v7  ;;  %4264 = vmatprep.subr.mxu0 %v5004_v0 }
  0x93   : > { %4242 = vmatprep.subr.mxu1 %v5004_v0  ;;  %4265 = vmatpush3.msra.mxu0 %v5283_v8 }
  0x94   : > { %4243 = vmatpush3.msra.mxu1 %v5283_v8  ;;  %4280 = vmatprep.subr.mxu0 %v5004_v0 }
  0x95   : > { %4247 = vmatprep.subr.mxu1 %v5004_v0  ;;  %4637 = vset.pattern.permute.xlu1 %v5007_v24 }
  0x96   : > { %4638 = vset.pattern.permute.xlu0 %v5007_v24  ;;  %942 = vperm.xlu1 %4637, %v940_v25  }
  0x97   : > { %4210 = vmatprep.mubr.msk.f32.mxu0 %vm652_vm1, %v633_v54 }
  0x98   : > { %4211 = vmatmul.mubr.msk.f32.gmra.mxu0 %vm652_vm1, %v634_v55 }
 0x111   : > { %v5346_v32 = vpop.permute.xlu1 %942 }
 0x112   : > { %vm944_vm4 = vcmp.eq.s32.totalorder %v5346_v32, 1 }
 0x149   : > { %v4209_v9 = vpop.f32.mrf.mxu0 }
 0x14a   : > { %v761_v11 = vadd.f32 %v4209_v9, %v5312_v10 }
 0x14b   : > { %v755_v12 = vpop.f32.mrf.mxu0 }
 0x14c   : > { %816 = vst.msk [vmem:[#allocation2 + $0x8] sm:$0xff] %vm814_vm2, %v761_v11  ;;  %v756_v14 = vadd.f32 %v5312_v10, %v755_v12 }
 0x14d   : > { %v909_v15 = vpop.f32.mrf.mxu1 }
 0x14e   : > { %815 = vst.msk [vmem:[#allocation2] sm:$0xff] %vm814_vm2, %v756_v14  ;;  %v910_v16 = vadd.f32 %v5318_v13, %v909_v15 }
 0x14f   : > { %v4235_v17 = vpop.f32.mrf.mxu1 }
 0x150   : > { %921 = vrot.lane.b32.xlu0 %v910_v16, %s5006_s16 }
 0x153   : > { %v952_v44 = vld [vmem:[#allocation2 + $0x8] sm:$0xff] }
 0x155   : > { %v832_v18 = vld [vmem:[#allocation2] sm:$0xff] }
 0x156   : > { %v913_v19 = vadd.f32 %v910_v16, %v832_v18 }
 0x158   : > { %v3976_v20 = vmul.f32 -1.442695, %v913_v19  ;;  %v4212_v1 = vpop.f32.mrf.mxu0 }
 0x159   : > { %v771_v3 = vadd.f32 %v4212_v1, %v5312_v10 }
 0x15a   : > { %4639 = vpow2.f32 %v3976_v20  ;;  %v765_v5 = vpop.f32.mrf.mxu0  ;;  %v1165_v20 = vsel %vm1164_vm8, 1, %v5007_v24 }
 0x15b   : > { %818 = vst.msk [vmem:[#allocation2 + $0x18] sm:$0xff] %vm814_vm2, %v771_v3  ;;  %v766_v6 = vadd.f32 %v5312_v10, %v765_v5  ;;  %v1278_v3 = vsel %vm1277_vm10, 1, %v5007_v24  ;;  %vm1842_vm10 = vcmp.gt.s32.totalorder %v5338_v23, 8 }
 0x15d   : > { %817 = vst.msk [vmem:[#allocation2 + $0x10] sm:$0xff] %vm814_vm2, %v766_v6 }
 0x162   : > { %v1178_v5 = vld [vmem:[#allocation2 + $0x18] sm:$0xff] }
 0x164   : > { %v1065_v15 = vld [vmem:[#allocation2 + $0x10] sm:$0xff] }
 0x167   : > { %v4640_v21 = vpop.eup %4639 }
 0x168   : > { %v917_v22 = vadd.f32 1.0, %v4640_v21 }
 0x16a   : > { %4641 = vrcp.f32 %v917_v22 }
 0x177   : > { %v4642_v26 = vpop.eup %4641 }
 0x178   : > { %v931_v33 = vsub.f32 1.0, %v4642_v26  ;;  %v937_v36 = vmul.f32 0.0, %v4642_v26 }
 0x1c2   : > { %v922_v27 = vpop.permute.xlu0 %921 }
 0x1c3   : > { %v924_v28 = vmul.f32 %v4642_v26, %v922_v27 }
 0x1c5   : > { %926 = vrot.lane.b32.xlu0 %v924_v28, %s5006_s16  ;;  %v635_v28 = vld [vmem:[%s5248_s20 + $0x20] sm:$0xff] }
 0x1c6   : > { %4213 = vmatprep.mubr.msk.f32.mxu0 %vm652_vm1, %v635_v28 }
 0x237   : > { %v927_v29 = vpop.permute.xlu0 %926 }
 0x238   : > { %v929_v30 = vadd.f32 %v927_v29, %v832_v18  ;;  %v636_v29 = vld [vmem:[%s5248_s20 + $0x28] sm:$0xff] }
 0x239   : > { %4214 = vmatmul.mubr.msk.f32.gmra.mxu0 %vm652_vm1, %v636_v29 }
 0x23a   : > { %4643 = vtanh.f32 %v929_v30  ;;  %v637_v30 = vld [vmem:[%s5248_s20 + $0x30] sm:$0xff] }
 0x23b   : > { %4216 = vmatprep.mubr.msk.f32.mxu0 %vm652_vm1, %v637_v30 }
 0x247   : > { %v4644_v31 = vpop.eup %4643 }
 0x248   : > { %933 = vrot.lane.b32.xlu1 %v4644_v31, %s5008_s26  ;;  %v638_v31 = vld [vmem:[%s5248_s20 + $0x38] sm:$0xff] }
 0x249   : > { %4217 = vmatmul.mubr.msk.f32.gmra.mxu0 %vm652_vm1, %v638_v31 }
 0x2ba   : > { %v934_v34 = vpop.permute.xlu1 %933 }
 0x2bb   : > { %v936_v35 = vmul.f32 %v934_v34, %v931_v33  ;;  %v639_v33 = vld [vmem:[%s5248_s20 + $0x40] sm:$0xff] }
 0x2bc   : > { %4219 = vmatprep.mubr.msk.f32.mxu0 %vm652_vm1, %v639_v33 }
 0x2bd   : > { %v938_v37 = vadd.f32 %v937_v36, %v936_v35  ;;  %v640_v35 = vld [vmem:[%s5248_s20 + $0x48] sm:$0xff]  ;;  %v641_v36 = vld [vmem:[%s5248_s20 + $0x50] sm:$0xff] }
 0x2be   : > { %4220 = vmatmul.mubr.msk.f32.gmra.mxu0 %vm652_vm1, %v640_v35 }
 0x2bf   : > { %v945_v38 = vsel %vm944_vm4, %v938_v37, 0.0  ;;  %4222 = vmatprep.mubr.msk.f32.mxu0 %vm652_vm1, %v641_v36  ;;  %v642_v37 = vld [vmem:[%s5248_s20 + $0x58] sm:$0xff] }
 0x2c0   : > { %947 = vrot.lane.b32.xlu0 %v945_v38, %s5008_s26 }
 0x2c2   : > { %4223 = vmatmul.mubr.msk.f32.gmra.mxu0 %vm652_vm1, %v642_v37  ;;  %vm1616_vm1 = vcmp.gt.s32.totalorder %v5338_v23, 6 }
 0x2c3   : > { %4266 = vmatprep.mubr.msk.f32.mxu0 %vm5005_vm0, %v5004_v0 }
 0x332   : > { %v948_v39 = vpop.permute.xlu0 %947 }
 0x333   : > { %950 = vst.msk [vmem:[#allocation3] sm:$0xff] %vm839_vm5, %v948_v39  ;;  %4245 = vmatmul.mubr.msk.f32.vlgmr.msra.gmra.mxu1 %vm839_vm5, %v948_v39 }
 0x334   : > { %4248 = vmatpush3.msra.mxu1 %v5269_v2  ;;  %4255 = vmatprep.mubr.msk.f32.mxu1 %vm5005_vm0, %v5004_v0 }
 0x335   : > { %4249 = vmatprep.subr.mxu1 %v5004_v0 }
 0x336   : > { %4250 = vmatpush3.msra.mxu1 %v5272_v4 }
 0x337   : > { %4251 = vmatprep.subr.mxu1 %v5004_v0 }
 0x338   : > { %4252 = vmatpush3.msra.mxu1 %v5278_v7 }
 0x339   : > { %4253 = vmatprep.subr.mxu1 %v5004_v0 }
 0x33a   : > { %4254 = vmatpush3.msra.mxu1 %v5283_v8 }
 0x33b   : > { %4269 = vmatprep.subr.mxu1 %v5004_v0 }
 0x3f3   : > { %v1021_v40 = vpop.f32.mrf.mxu1 }
 0x3f4   : > { %v1022_v41 = vadd.f32 %v5318_v13, %v1021_v40 }
 0x3f5   : > { %v4246_v42 = vpop.f32.mrf.mxu1 }
 0x3f6   : > { %1033 = vrot.lane.b32.xlu1 %v1022_v41, %s5006_s16  ;;  %v1025_v45 = vadd.f32 %v1022_v41, %v952_v44 }
 0x3f8   : > { %v3978_v46 = vmul.f32 -1.442695, %v1025_v45  ;;  %v4215_v45 = vpop.f32.mrf.mxu0 }
 0x3fa   : > { %1054 = vperm.xlu1 %4637, %v1052_v43   ;;  %4645 = vpow2.f32 %v3978_v46  ;;  %v781_v46 = vadd.f32 %v4215_v45, %v5312_v10 }
 0x3fc   : > { %820 = vst.msk [vmem:[#allocation2 + $0x28] sm:$0xff] %vm814_vm2, %v781_v46 }
 0x407   : > { %v4646_v47 = vpop.eup %4645 }
 0x408   : > { %v1029_v48 = vadd.f32 1.0, %v4646_v47  ;;  %v775_v47 = vpop.f32.mrf.mxu0 }
 0x40a   : > { %4647 = vrcp.f32 %v1029_v48  ;;  %v776_v48 = vadd.f32 %v5312_v10, %v775_v47 }
 0x40c   : > { %819 = vst.msk [vmem:[#allocation2 + $0x20] sm:$0xff] %vm814_vm2, %v776_v48 }
 0x413   : > { %v1291_v35 = vld [vmem:[#allocation2 + $0x20] sm:$0xff] }
 0x417   : > { %v4648_v49 = vpop.eup %4647 }
 0x418   : > { %v1043_v57 = vsub.f32 1.0, %v4648_v49  ;;  %v1049_v60 = vmul.f32 %v4648_v49, %v945_v38 }
 0x468   : > { %v1034_v50 = vpop.permute.xlu1 %1033 }
 0x469   : > { %v1036_v51 = vmul.f32 %v4648_v49, %v1034_v50  ;;  %v4218_v49 = vpop.f32.mrf.mxu0 }
 0x46a   : > { %v791_v50 = vadd.f32 %v4218_v49, %v5312_v10 }
 0x46b   : > { %1038 = vrot.lane.b32.xlu0 %v1036_v51, %s5006_s16  ;;  %v785_v51 = vpop.f32.mrf.mxu0 }
 0x46c   : > { %822 = vst.msk [vmem:[#allocation2 + $0x38] sm:$0xff] %vm814_vm2, %v791_v50 }
 0x475   : > { %v5374_v59 = vpop.permute.xlu1 %1054 }
 0x476   : > { %vm1056_vm7 = vcmp.eq.s32.totalorder %v5374_v59, 1 }
 0x4dd   : > { %v1039_v52 = vpop.permute.xlu0 %1038 }
 0x4de   : > { %v1041_v53 = vadd.f32 %v1039_v52, %v952_v44  ;;  %v786_v52 = vadd.f32 %v5312_v10, %v785_v51 }
 0x4e0   : > { %4649 = vtanh.f32 %v1041_v53  ;;  %v4221_v53 = vpop.f32.mrf.mxu0  ;;  %821 = vst.msk [vmem:[#allocation2 + $0x30] sm:$0xff] %vm814_vm2, %v786_v52 }
 0x4e1   : > { %v801_v54 = vadd.f32 %v4221_v53, %v5312_v10 }
 0x4e2   : > { %v795_v55 = vpop.f32.mrf.mxu0 }
 0x4e3   : > { %824 = vst.msk [vmem:[#allocation2 + $0x48] sm:$0xff] %vm814_vm2, %v801_v54 }
 0x4ed   : > { %v4650_v56 = vpop.eup %4649 }
 0x4ee   : > { %1045 = vrot.lane.b32.xlu0 %v4650_v56, %s5008_s26  ;;  %v796_v56 = vadd.f32 %v5312_v10, %v795_v55 }
 0x4f0   : > { %823 = vst.msk [vmem:[#allocation2 + $0x40] sm:$0xff] %vm814_vm2, %v796_v56 }
 0x560   : > { %v1046_v58 = vpop.permute.xlu0 %1045 }
 0x561   : > { %v1048_v61 = vmul.f32 %v1046_v58, %v1043_v57  ;;  %v4224_v57 = vpop.f32.mrf.mxu0 }
 0x562   : > { %v811_v58 = vadd.f32 %v4224_v57, %v5312_v10 }
 0x563   : > { %v1050_v62 = vadd.f32 %v1049_v60, %v1048_v61  ;;  %v805_v60 = vpop.f32.mrf.mxu0 }
 0x564   : > { %826 = vst.msk [vmem:[#allocation2 + $0x58] sm:$0xff] %vm814_vm2, %v811_v58  ;;  %v806_v61 = vadd.f32 %v5312_v10, %v805_v60  ;;  %v1504_v58 = vsel %vm1503_vm14, 1, %v5007_v24  ;;  %v1404_v60 = vld [vmem:[#allocation2 + $0x28] sm:$0xff]  ;;  %vm1955_vm14 = vcmp.gt.s32.totalorder %v5338_v23, 9 }
 0x565   : > { %v5379_v63 = vsel %vm1056_vm7, %v1050_v62, %v945_v38 }
 0x566   : > { %1059 = vrot.lane.b32.xlu1 %v5379_v63, %s5008_s26  ;;  %825 = vst.msk [vmem:[#allocation2 + $0x50] sm:$0xff] %vm814_vm2, %v806_v61 }
 0x5d8   : > { %v1060_v9 = vpop.permute.xlu1 %1059 }
 0x5d9   : > { %1063 = vst.msk [vmem:[#allocation3 + $0x8] sm:$0xff] %vm839_vm5, %v1060_v9  ;;  %4256 = vmatmul.mubr.msk.f32.vlgmr.msra.gmra.mxu1 %vm839_vm5, %v1060_v9 }
 0x5da   : > { %4270 = vmatpush3.msra.mxu1 %v5269_v2  ;;  %4277 = vmatprep.mubr.msk.f32.mxu1 %vm5005_vm0, %v5004_v0 }
 0x5db   : > { %4271 = vmatprep.subr.mxu1 %v5004_v0 }
 0x5dc   : > { %4272 = vmatpush3.msra.mxu1 %v5272_v4 }
 0x5dd   : > { %4273 = vmatprep.subr.mxu1 %v5004_v0 }
 0x5de   : > { %4274 = vmatpush3.msra.mxu1 %v5278_v7 }
 0x5df   : > { %4275 = vmatprep.subr.mxu1 %v5004_v0 }
 0x5e0   : > { %4276 = vmatpush3.msra.mxu1 %v5283_v8 }
 0x5e1   : > { %4291 = vmatprep.subr.mxu1 %v5004_v0 }
 0x699   : > { %v1134_v11 = vpop.f32.mrf.mxu1 }
 0x69a   : > { %v1135_v12 = vadd.f32 %v5318_v13, %v1134_v11 }
 0x69b   : > { %v4257_v14 = vpop.f32.mrf.mxu1 }
 0x69c   : > { %1146 = vrot.lane.b32.xlu0 %v1135_v12, %s5006_s16  ;;  %v1138_v16 = vadd.f32 %v1135_v12, %v1065_v15 }
 0x69e   : > { %v3980_v17 = vmul.f32 -1.442695, %v1138_v16 }
 0x6a0   : > { %4651 = vpow2.f32 %v3980_v17  ;;  %1167 = vperm.xlu0 %4638, %v1165_v20  }
 0x6ad   : > { %v4652_v18 = vpop.eup %4651 }
 0x6ae   : > { %v1142_v19 = vadd.f32 1.0, %v4652_v18 }
 0x6b0   : > { %4653 = vrcp.f32 %v1142_v19 }
 0x6bd   : > { %v4654_v21 = vpop.eup %4653 }
 0x6be   : > { %v1156_v38 = vsub.f32 1.0, %v4654_v21  ;;  %v1162_v41 = vmul.f32 %v4654_v21, %v5379_v63 }
 0x70e   : > { %v1147_v22 = vpop.permute.xlu0 %1146 }
 0x70f   : > { %v1149_v25 = vmul.f32 %v4654_v21, %v1147_v22 }
 0x711   : > { %1151 = vrot.lane.b32.xlu1 %v1149_v25, %s5006_s16 }
 0x71b   : > { %v5423_v39 = vpop.permute.xlu0 %1167 }
 0x71c   : > { %vm1169_vm9 = vcmp.eq.s32.totalorder %v5423_v39, 1 }
 0x783   : > { %v1152_v26 = vpop.permute.xlu1 %1151 }
 0x784   : > { %v1154_v27 = vadd.f32 %v1152_v26, %v1065_v15 }
 0x786   : > { %4655 = vtanh.f32 %v1154_v27 }
 0x793   : > { %v4656_v34 = vpop.eup %4655 }
 0x794   : > { %1158 = vrot.lane.b32.xlu1 %v4656_v34, %s5008_s26  ;;  %v1391_v34 = vsel %vm1390_vm12, 1, %v5007_v24 }
 0x806   : > { %v1159_v40 = vpop.permute.xlu1 %1158 }
 0x807   : > { %v1161_v42 = vmul.f32 %v1159_v40, %v1156_v38 }
 0x809   : > { %v1163_v43 = vadd.f32 %v1162_v41, %v1161_v42 }
 0x80b   : > { %v5430_v44 = vsel %vm1169_vm9, %v1163_v43, %v5379_v63 }
 0x80c   : > { %1172 = vrot.lane.b32.xlu1 %v5430_v44, %s5008_s26 }
 0x87e   : > { %v1173_v62 = vpop.permute.xlu1 %1172 }
 0x87f   : > { %1176 = vst.msk [vmem:[#allocation3 + $0x10] sm:$0xff] %vm839_vm5, %v1173_v62  ;;  %4267 = vmatmul.mubr.msk.f32.vlgmr.msra.gmra.mxu0 %vm839_vm5, %v1173_v62 }
 0x880   : > { %4281 = vmatpush3.msra.mxu0 %v5269_v2  ;;  %4288 = vmatprep.mubr.msk.f32.mxu0 %vm5005_vm0, %v5004_v0 }
 0x881   : > { %4282 = vmatprep.subr.mxu0 %v5004_v0 }
 0x882   : > { %4283 = vmatpush3.msra.mxu0 %v5272_v4 }
 0x883   : > { %4284 = vmatprep.subr.mxu0 %v5004_v0 }
 0x884   : > { %4285 = vmatpush3.msra.mxu0 %v5278_v7 }
 0x885   : > { %4286 = vmatprep.subr.mxu0 %v5004_v0 }
 0x886   : > { %4287 = vmatpush3.msra.mxu0 %v5283_v8 }
 0x887   : > { %4302 = vmatprep.subr.mxu0 %v5004_v0 }
 0x93f   : > { %v1247_v10 = vpop.f32.mrf.mxu0 }
 0x940   : > { %v1248_v63 = vadd.f32 %v5318_v13, %v1247_v10 }
 0x941   : > { %v4268_v1 = vpop.f32.mrf.mxu0 }
 0x942   : > { %1259 = vrot.lane.b32.xlu0 %v1248_v63, %s5006_s16  ;;  %v1251_v6 = vadd.f32 %v1248_v63, %v1178_v5 }
 0x944   : > { %v3982_v9 = vmul.f32 -1.442695, %v1251_v6 }
 0x946   : > { %1280 = vperm.xlu0 %4638, %v1278_v3   ;;  %4657 = vpow2.f32 %v3982_v9 }
 0x953   : > { %v4658_v11 = vpop.eup %4657 }
 0x954   : > { %v1255_v12 = vadd.f32 1.0, %v4658_v11 }
 0x956   : > { %4659 = vrcp.f32 %v1255_v12 }
 0x963   : > { %v4660_v14 = vpop.eup %4659 }
 0x964   : > { %v1269_v20 = vsub.f32 1.0, %v4660_v14  ;;  %v1275_v25 = vmul.f32 %v4660_v14, %v5430_v44 }
 0x9b4   : > { %v1260_v15 = vpop.permute.xlu0 %1259 }
 0x9b5   : > { %v1262_v16 = vmul.f32 %v4660_v14, %v1260_v15 }
 0x9b7   : > { %1264 = vrot.lane.b32.xlu1 %v1262_v16, %s5006_s16 }
 0x9c1   : > { %v5468_v22 = vpop.permute.xlu0 %1280 }
 0x9c2   : > { %vm1282_vm11 = vcmp.eq.s32.totalorder %v5468_v22, 1 }
 0xa29   : > { %v1265_v17 = vpop.permute.xlu1 %1264 }
 0xa2a   : > { %v1267_v18 = vadd.f32 %v1265_v17, %v1178_v5 }
 0xa2c   : > { %4661 = vtanh.f32 %v1267_v18 }
 0xa39   : > { %v4662_v19 = vpop.eup %4661 }
 0xa3a   : > { %1271 = vrot.lane.b32.xlu1 %v4662_v19, %s5008_s26 }
 0xaac   : > { %v1272_v21 = vpop.permute.xlu1 %1271 }
 0xaad   : > { %v1274_v26 = vmul.f32 %v1272_v21, %v1269_v20 }
 0xaaf   : > { %v1276_v27 = vadd.f32 %v1275_v25, %v1274_v26 }
 0xab1   : > { %v1283_v28 = vsel %vm1282_vm11, %v1276_v27, %v5430_v44  ;;  %v1617_v27 = vsel %vm1616_vm1, 1, %v5007_v24 }
 0xab2   : > { %1285 = vrot.lane.b32.xlu0 %v1283_v28, %s5008_s26 }
 0xb24   : > { %v1286_v29 = vpop.permute.xlu0 %1285 }
 0xb25   : > { %1289 = vst.msk [vmem:[#allocation3 + $0x18] sm:$0xff] %vm839_vm5, %v1286_v29  ;;  %4278 = vmatmul.mubr.msk.f32.vlgmr.msra.gmra.mxu1 %vm839_vm5, %v1286_v29 }
 0xb26   : > { %4292 = vmatpush3.msra.mxu1 %v5269_v2  ;;  %4299 = vmatprep.mubr.msk.f32.mxu1 %vm5005_vm0, %v5004_v0 }
 0xb27   : > { %4293 = vmatprep.subr.mxu1 %v5004_v0 }
 0xb28   : > { %4294 = vmatpush3.msra.mxu1 %v5272_v4 }
 0xb29   : > { %4295 = vmatprep.subr.mxu1 %v5004_v0 }
 0xb2a   : > { %4296 = vmatpush3.msra.mxu1 %v5278_v7 }
 0xb2b   : > { %4297 = vmatprep.subr.mxu1 %v5004_v0 }
 0xb2c   : > { %4298 = vmatpush3.msra.mxu1 %v5283_v8 }
 0xb2d   : > { %4313 = vmatprep.subr.mxu1 %v5004_v0 }
 0xbe5   : > { %v1360_v30 = vpop.f32.mrf.mxu1 }
 0xbe6   : > { %v1361_v31 = vadd.f32 %v5318_v13, %v1360_v30 }
 0xbe7   : > { %v4279_v33 = vpop.f32.mrf.mxu1 }
 0xbe8   : > { %1372 = vrot.lane.b32.xlu1 %v1361_v31, %s5006_s16  ;;  %v1364_v36 = vadd.f32 %v1361_v31, %v1291_v35 }
 0xbea   : > { %v3984_v37 = vmul.f32 -1.442695, %v1364_v36 }
 0xbec   : > { %1393 = vperm.xlu1 %4637, %v1391_v34   ;;  %4663 = vpow2.f32 %v3984_v37 }
 0xbf9   : > { %v4664_v38 = vpop.eup %4663 }
 0xbfa   : > { %v1368_v40 = vadd.f32 1.0, %v4664_v38 }
 0xbfc   : > { %4665 = vrcp.f32 %v1368_v40 }
 0xc09   : > { %v4666_v41 = vpop.eup %4665 }
 0xc0a   : > { %v1382_v47 = vsub.f32 1.0, %v4666_v41  ;;  %v1388_v50 = vmul.f32 %v4666_v41, %v1283_v28 }
 0xc5a   : > { %v1373_v42 = vpop.permute.xlu1 %1372 }
 0xc5b   : > { %v1375_v43 = vmul.f32 %v4666_v41, %v1373_v42 }
 0xc5d   : > { %1377 = vrot.lane.b32.xlu0 %v1375_v43, %s5006_s16 }
 0xc67   : > { %v5494_v49 = vpop.permute.xlu1 %1393 }
 0xc68   : > { %vm1395_vm13 = vcmp.eq.s32.totalorder %v5494_v49, 1 }
 0xccf   : > { %v1378_v44 = vpop.permute.xlu0 %1377 }
 0xcd0   : > { %v1380_v45 = vadd.f32 %v1378_v44, %v1291_v35 }
 0xcd2   : > { %4667 = vtanh.f32 %v1380_v45 }
 0xcdf   : > { %v4668_v46 = vpop.eup %4667 }
 0xce0   : > { %1384 = vrot.lane.b32.xlu0 %v4668_v46, %s5008_s26 }
 0xd52   : > { %v1385_v48 = vpop.permute.xlu0 %1384 }
 0xd53   : > { %v1387_v51 = vmul.f32 %v1385_v48, %v1382_v47 }
 0xd55   : > { %v1389_v52 = vadd.f32 %v1388_v50, %v1387_v51 }
 0xd57   : > { %v1396_v53 = vsel %vm1395_vm13, %v1389_v52, %v1283_v28  ;;  %v1517_v28 = vld [vmem:[#allocation2 + $0x30] sm:$0xff] }
 0xd58   : > { %1398 = vrot.lane.b32.xlu1 %v1396_v53, %s5008_s26 }
 0xdca   : > { %v1399_v54 = vpop.permute.xlu1 %1398 }
 0xdcb   : > { %1402 = vst.msk [vmem:[#allocation3 + $0x20] sm:$0xff] %vm839_vm5, %v1399_v54  ;;  %4289 = vmatmul.mubr.msk.f32.vlgmr.msra.gmra.mxu0 %vm839_vm5, %v1399_v54  ;;  %v1630_v54 = vld [vmem:[#allocation2 + $0x38] sm:$0xff] }
 0xdcc   : > { %4303 = vmatpush3.msra.mxu0 %v5269_v2  ;;  %4310 = vmatprep.mubr.msk.f32.mxu0 %vm5005_vm0, %v5004_v0 }
 0xdcd   : > { %4304 = vmatprep.subr.mxu0 %v5004_v0 }
 0xdce   : > { %4305 = vmatpush3.msra.mxu0 %v5272_v4 }
 0xdcf   : > { %4306 = vmatprep.subr.mxu0 %v5004_v0 }
 0xdd0   : > { %4307 = vmatpush3.msra.mxu0 %v5278_v7 }
 0xdd1   : > { %4308 = vmatprep.subr.mxu0 %v5004_v0 }
 0xdd2   : > { %4309 = vmatpush3.msra.mxu0 %v5283_v8 }
 0xdd3   : > { %4324 = vmatprep.subr.mxu0 %v5004_v0 }
 0xe8b   : > { %v1473_v55 = vpop.f32.mrf.mxu0 }
 0xe8c   : > { %v1474_v56 = vadd.f32 %v5318_v13, %v1473_v55 }
 0xe8d   : > { %v4290_v57 = vpop.f32.mrf.mxu0 }
 0xe8e   : > { %1485 = vrot.lane.b32.xlu0 %v1474_v56, %s5006_s16  ;;  %v1477_v61 = vadd.f32 %v1474_v56, %v1404_v60 }
 0xe90   : > { %v3986_v62 = vmul.f32 -1.442695, %v1477_v61 }
 0xe92   : > { %1506 = vperm.xlu0 %4638, %v1504_v58   ;;  %4669 = vpow2.f32 %v3986_v62 }
 0xe9f   : > { %v4670_v10 = vpop.eup %4669 }
 0xea0   : > { %v1481_v63 = vadd.f32 1.0, %v4670_v10 }
 0xea2   : > { %4671 = vrcp.f32 %v1481_v63 }
 0xeaf   : > { %v4672_v1 = vpop.eup %4671 }
 0xeb0   : > { %v1495_v12 = vsub.f32 1.0, %v4672_v1  ;;  %v1501_v16 = vmul.f32 %v4672_v1, %v1396_v53 }
 0xf00   : > { %v1486_v3 = vpop.permute.xlu0 %1485 }
 0xf01   : > { %v1488_v5 = vmul.f32 %v4672_v1, %v1486_v3 }
 0xf03   : > { %1490 = vrot.lane.b32.xlu1 %v1488_v5, %s5006_s16 }
 0xf0d   : > { %v5518_v15 = vpop.permute.xlu0 %1506 }
 0xf0e   : > { %vm1508_vm15 = vcmp.eq.s32.totalorder %v5518_v15, 1 }
 0xf75   : > { %v1491_v6 = vpop.permute.xlu1 %1490 }
 0xf76   : > { %v1493_v9 = vadd.f32 %v1491_v6, %v1404_v60 }
 0xf78   : > { %4673 = vtanh.f32 %v1493_v9 }
 0xf85   : > { %v4674_v11 = vpop.eup %4673 }
 0xf86   : > { %1497 = vrot.lane.b32.xlu1 %v4674_v11, %s5008_s26 }
 0xff8   : > { %v1498_v14 = vpop.permute.xlu1 %1497 }
 0xff9   : > { %v1500_v17 = vmul.f32 %v1498_v14, %v1495_v12 }
 0xffb   : > { %v1502_v18 = vadd.f32 %v1501_v16, %v1500_v17 }
 0xffd   : > { %v1509_v19 = vsel %vm1508_vm15, %v1502_v18, %v1396_v53  ;;  %v1730_v53 = vsel %vm1729_vm6, 1, %v5007_v24  ;;  %vm2068_vm6 = vcmp.gt.s32.totalorder %v5338_v23, 10 }
 0xffe   : > { %1511 = vrot.lane.b32.xlu0 %v1509_v19, %s5008_s26 }
0x1070   : > { %v1512_v20 = vpop.permute.xlu0 %1511 }
0x1071   : > { %1515 = vst.msk [vmem:[#allocation3 + $0x28] sm:$0xff] %vm839_vm5, %v1512_v20  ;;  %4300 = vmatmul.mubr.msk.f32.vlgmr.msra.gmra.mxu1 %vm839_vm5, %v1512_v20  ;;  %v1843_v20 = vsel %vm1842_vm10, 1, %v5007_v24 }
0x1072   : > { %4314 = vmatpush3.msra.mxu1 %v5269_v2  ;;  %4321 = vmatprep.mubr.msk.f32.mxu1 %vm5005_vm0, %v5004_v0 }
0x1073   : > { %4315 = vmatprep.subr.mxu1 %v5004_v0 }
0x1074   : > { %4316 = vmatpush3.msra.mxu1 %v5272_v4 }
0x1075   : > { %4317 = vmatprep.subr.mxu1 %v5004_v0 }
0x1076   : > { %4318 = vmatpush3.msra.mxu1 %v5278_v7 }
0x1077   : > { %4319 = vmatprep.subr.mxu1 %v5004_v0 }
0x1078   : > { %4320 = vmatpush3.msra.mxu1 %v5283_v8 }
0x1079   : > { %4335 = vmatprep.subr.mxu1 %v5004_v0 }
0x1131   : > { %v1586_v21 = vpop.f32.mrf.mxu1 }
0x1132   : > { %v1587_v25 = vadd.f32 %v5318_v13, %v1586_v21  ;;  %v1743_v21 = vld [vmem:[#allocation2 + $0x40] sm:$0xff] }
0x1133   : > { %v4301_v26 = vpop.f32.mrf.mxu1 }
0x1134   : > { %1598 = vrot.lane.b32.xlu1 %v1587_v25, %s5006_s16  ;;  %v1590_v29 = vadd.f32 %v1587_v25, %v1517_v28 }
0x1136   : > { %v3988_v30 = vmul.f32 -1.442695, %v1590_v29 }
0x1138   : > { %1619 = vperm.xlu1 %4637, %v1617_v27   ;;  %4675 = vpow2.f32 %v3988_v30 }
0x1145   : > { %v4676_v31 = vpop.eup %4675 }
0x1146   : > { %v1594_v33 = vadd.f32 1.0, %v4676_v31 }
0x1148   : > { %4677 = vrcp.f32 %v1594_v33 }
0x1155   : > { %v4678_v34 = vpop.eup %4677 }
0x1156   : > { %v1608_v41 = vsub.f32 1.0, %v4678_v34  ;;  %v1614_v44 = vmul.f32 %v4678_v34, %v1509_v19 }
0x11a6   : > { %v1599_v35 = vpop.permute.xlu1 %1598 }
0x11a7   : > { %v1601_v36 = vmul.f32 %v4678_v34, %v1599_v35 }
0x11a9   : > { %1603 = vrot.lane.b32.xlu0 %v1601_v36, %s5006_s16 }
0x11b3   : > { %v5542_v43 = vpop.permute.xlu1 %1619 }
0x11b4   : > { %vm1621_vm3 = vcmp.eq.s32.totalorder %v5542_v43, 1 }
0x121b   : > { %v1604_v37 = vpop.permute.xlu0 %1603 }
0x121c   : > { %v1606_v38 = vadd.f32 %v1604_v37, %v1517_v28 }
0x121e   : > { %4679 = vtanh.f32 %v1606_v38 }
0x122b   : > { %v4680_v40 = vpop.eup %4679 }
0x122c   : > { %1610 = vrot.lane.b32.xlu0 %v4680_v40, %s5008_s26 }
0x129e   : > { %v1611_v42 = vpop.permute.xlu0 %1610 }
0x129f   : > { %v1613_v45 = vmul.f32 %v1611_v42, %v1608_v41 }
0x12a1   : > { %v1615_v46 = vadd.f32 %v1614_v44, %v1613_v45 }
0x12a3   : > { %v1622_v47 = vsel %vm1621_vm3, %v1615_v46, %v1509_v19 }
0x12a4   : > { %1624 = vrot.lane.b32.xlu1 %v1622_v47, %s5008_s26 }
0x1316   : > { %v1625_v48 = vpop.permute.xlu1 %1624 }
0x1317   : > { %1628 = vst.msk [vmem:[#allocation3 + $0x30] sm:$0xff] %vm839_vm5, %v1625_v48  ;;  %4311 = vmatmul.mubr.msk.f32.vlgmr.msra.gmra.mxu0 %vm839_vm5, %v1625_v48  ;;  %v1856_v48 = vld [vmem:[#allocation2 + $0x48] sm:$0xff] }
0x1318   : > { %4325 = vmatpush3.msra.mxu0 %v5269_v2  ;;  %4332 = vmatprep.mubr.msk.f32.mxu0 %vm5005_vm0, %v5004_v0 }
0x1319   : > { %4326 = vmatprep.subr.mxu0 %v5004_v0 }
0x131a   : > { %4327 = vmatpush3.msra.mxu0 %v5272_v4 }
0x131b   : > { %4328 = vmatprep.subr.mxu0 %v5004_v0 }
0x131c   : > { %4329 = vmatpush3.msra.mxu0 %v5278_v7 }
0x131d   : > { %4330 = vmatprep.subr.mxu0 %v5004_v0 }
0x131e   : > { %4331 = vmatpush3.msra.mxu0 %v5283_v8 }
0x131f   : > { %4346 = vmatprep.subr.mxu0 %v5004_v0 }
0x13d7   : > { %v1699_v50 = vpop.f32.mrf.mxu0 }
0x13d8   : > { %v1700_v51 = vadd.f32 %v5318_v13, %v1699_v50 }
0x13d9   : > { %v4312_v52 = vpop.f32.mrf.mxu0 }
0x13da   : > { %1711 = vrot.lane.b32.xlu0 %v1700_v51, %s5006_s16  ;;  %v1703_v55 = vadd.f32 %v1700_v51, %v1630_v54 }
0x13dc   : > { %v3990_v56 = vmul.f32 -1.442695, %v1703_v55 }
0x13de   : > { %1732 = vperm.xlu0 %4638, %v1730_v53   ;;  %4681 = vpow2.f32 %v3990_v56  ;;  %v2209_v56 = vld [vmem:[#allocation10 + $0x18] sm:$0xff] }
0x13eb   : > { %v4682_v57 = vpop.eup %4681 }
0x13ec   : > { %v1707_v58 = vadd.f32 1.0, %v4682_v57 }
0x13ee   : > { %4683 = vrcp.f32 %v1707_v58 }
0x13fb   : > { %v4684_v60 = vpop.eup %4683 }
0x13fc   : > { %v1721_v3 = vsub.f32 1.0, %v4684_v60  ;;  %v1727_v9 = vmul.f32 %v4684_v60, %v1622_v47 }
0x144c   : > { %v1712_v61 = vpop.permute.xlu0 %1711 }
0x144d   : > { %v1714_v62 = vmul.f32 %v4684_v60, %v1712_v61 }
0x144f   : > { %1716 = vrot.lane.b32.xlu1 %v1714_v62, %s5006_s16 }
0x1459   : > { %v5566_v6 = vpop.permute.xlu0 %1732 }
0x145a   : > { %vm1734_vm8 = vcmp.eq.s32.totalorder %v5566_v6, 1 }
0x14c1   : > { %v1717_v10 = vpop.permute.xlu1 %1716 }
0x14c2   : > { %v1719_v63 = vadd.f32 %v1717_v10, %v1630_v54 }
0x14c4   : > { %4685 = vtanh.f32 %v1719_v63 }
0x14d1   : > { %v4686_v1 = vpop.eup %4685 }
0x14d2   : > { %1723 = vrot.lane.b32.xlu1 %v4686_v1, %s5008_s26 }
0x1544   : > { %v1724_v5 = vpop.permute.xlu1 %1723 }
0x1545   : > { %v1726_v11 = vmul.f32 %v1724_v5, %v1721_v3  ;;  %v2208_v5 = vld [vmem:[#allocation10 + $0x10] sm:$0xff] }
0x1547   : > { %v1728_v12 = vadd.f32 %v1727_v9, %v1726_v11  ;;  %v2194_v9 = vld [vmem:[#allocation3] sm:$0xff]  ;;  %v2207_v11 = vld [vmem:[#allocation10 + $0x8] sm:$0xff] }
0x1549   : > { %v1735_v14 = vsel %vm1734_vm8, %v1728_v12, %v1622_v47  ;;  %v2206_v12 = vld [vmem:[#allocation10] sm:$0xff] }
0x154a   : > { %1737 = vrot.lane.b32.xlu0 %v1735_v14, %s5008_s26 }
0x15bc   : > { %v1738_v16 = vpop.permute.xlu0 %1737 }
0x15bd   : > { %1741 = vst.msk [vmem:[#allocation3 + $0x38] sm:$0xff] %vm839_vm5, %v1738_v16  ;;  %4322 = vmatmul.mubr.msk.f32.vlgmr.msra.gmra.mxu1 %vm839_vm5, %v1738_v16  ;;  %v2196_v16 = vld [vmem:[#allocation3 + $0x10] sm:$0xff] }
0x15be   : > { %4336 = vmatpush3.msra.mxu1 %v5269_v2  ;;  %4343 = vmatprep.mubr.msk.f32.mxu1 %vm5005_vm0, %v5004_v0 }
0x15bf   : > { %4337 = vmatprep.subr.mxu1 %v5004_v0 }
0x15c0   : > { %4338 = vmatpush3.msra.mxu1 %v5272_v4 }
0x15c1   : > { %4339 = vmatprep.subr.mxu1 %v5004_v0 }
0x15c2   : > { %4340 = vmatpush3.msra.mxu1 %v5278_v7 }
0x15c3   : > { %4341 = vmatprep.subr.mxu1 %v5004_v0 }
0x15c4   : > { %4342 = vmatpush3.msra.mxu1 %v5283_v8 }
0x15c5   : > { %4357 = vmatprep.subr.mxu1 %v2209_v56 }
0x167d   : > { %v1812_v17 = vpop.f32.mrf.mxu1 }
0x167e   : > { %v1813_v18 = vadd.f32 %v5318_v13, %v1812_v17  ;;  %v2197_v17 = vld [vmem:[#allocation3 + $0x18] sm:$0xff] }
0x167f   : > { %v4323_v19 = vpop.f32.mrf.mxu1 }
0x1680   : > { %1824 = vrot.lane.b32.xlu1 %v1813_v18, %s5006_s16  ;;  %v1816_v25 = vadd.f32 %v1813_v18, %v1743_v21  ;;  %v2198_v18 = vld [vmem:[#allocation3 + $0x20] sm:$0xff]  ;;  %v2199_v19 = vld [vmem:[#allocation3 + $0x28] sm:$0xff] }
0x1682   : > { %v3992_v26 = vmul.f32 -1.442695, %v1816_v25 }
0x1684   : > { %1845 = vperm.xlu1 %4637, %v1843_v20   ;;  %4687 = vpow2.f32 %v3992_v26  ;;  %v2200_v20 = vld [vmem:[#allocation3 + $0x30] sm:$0xff] }
0x1691   : > { %v4688_v27 = vpop.eup %4687 }
0x1692   : > { %v1820_v28 = vadd.f32 1.0, %v4688_v27 }
0x1694   : > { %4689 = vrcp.f32 %v1820_v28  ;;  %v5638_v28 = vld [vmem:[%s5996_s5] ss:$0 sm:$0xff] }
0x16a1   : > { %v4690_v29 = vpop.eup %4689 }
0x16a2   : > { %v1834_v36 = vsub.f32 1.0, %v4690_v29  ;;  %v1840_v40 = vmul.f32 %v4690_v29, %v1735_v14 }
0x16f2   : > { %v1825_v30 = vpop.permute.xlu1 %1824 }
0x16f3   : > { %v1827_v31 = vmul.f32 %v4690_v29, %v1825_v30 }
0x16f5   : > { %1829 = vrot.lane.b32.xlu0 %v1827_v31, %s5006_s16  ;;  %v2069_v31 = vsel %vm2068_vm6, 1, %v5007_v24 }
0x16ff   : > { %v5589_v38 = vpop.permute.xlu1 %1845 }
0x1700   : > { %vm1847_vm12 = vcmp.eq.s32.totalorder %v5589_v38, 1 }
0x1767   : > { %v1830_v33 = vpop.permute.xlu0 %1829 }
0x1768   : > { %v1832_v34 = vadd.f32 %v1830_v33, %v1743_v21  ;;  %v2201_v21 = vld [vmem:[#allocation3 + $0x38] sm:$0xff]  ;;  %v5647_v33 = vld [vmem:[%s5999_s8] ss:$0 sm:$0xff] }
0x176a   : > { %4691 = vtanh.f32 %v1832_v34 }
0x1777   : > { %v4692_v35 = vpop.eup %4691 }
0x1778   : > { %1836 = vrot.lane.b32.xlu0 %v4692_v35, %s5008_s26 }
0x17ea   : > { %v1837_v37 = vpop.permute.xlu0 %1836 }
0x17eb   : > { %v1839_v41 = vmul.f32 %v1837_v37, %v1834_v36 }
0x17ed   : > { %v1841_v42 = vadd.f32 %v1840_v40, %v1839_v41 }
0x17ef   : > { %v1848_v44 = vsel %vm1847_vm12, %v1841_v42, %v1735_v14  ;;  %v2195_v14 = vld [vmem:[#allocation3 + $0x8] sm:$0xff] }
0x17f0   : > { %1850 = vrot.lane.b32.xlu1 %v1848_v44, %s5008_s26 }
0x1862   : > { %v1851_v45 = vpop.permute.xlu1 %1850 }
0x1863   : > { %1854 = vst.msk [vmem:[#allocation3 + $0x40] sm:$0xff] %vm839_vm5, %v1851_v45  ;;  %4333 = vmatmul.mubr.msk.f32.vlgmr.msra.gmra.mxu0 %vm839_vm5, %v1851_v45 }
0x1864   : > { %4347 = vmatpush3.msra.mxu0 %v5269_v2  ;;  %4354 = vmatprep.mubr.msk.f32.mxu0 %vm5005_vm0, %v5004_v0 }
0x1865   : > { %4348 = vmatprep.subr.mxu0 %v5004_v0 }
0x1866   : > { %4349 = vmatpush3.msra.mxu0 %v5272_v4  ;;  %v1956_v4 = vsel %vm1955_vm14, 1, %v5007_v24 }
0x1867   : > { %4350 = vmatprep.subr.mxu0 %v5004_v0 }
0x1868   : > { %4351 = vmatpush3.msra.mxu0 %v5278_v7 }
0x1869   : > { %4352 = vmatprep.subr.mxu0 %v5004_v0 }
0x186a   : > { %4353 = vmatpush3.msra.mxu0 %v5283_v8  ;;  %v2202_v25 = vld [vmem:[#allocation3 + $0x40] sm:$0xff] }
0x186b   : > { %4383 = vmatprep.subr.mxu0 %v5004_v0 }
0x1923   : > { %v1925_v46 = vpop.f32.mrf.mxu0 }
0x1924   : > { %v1926_v2 = vadd.f32 %v5318_v13, %v1925_v46 }
0x1925   : > { %v4334_v47 = vpop.f32.mrf.mxu0 }
0x1926   : > { %1937 = vrot.lane.b32.xlu0 %v1926_v2, %s5006_s16  ;;  %v1929_v50 = vadd.f32 %v1926_v2, %v1856_v48 }
0x1928   : > { %v3994_v7 = vmul.f32 -1.442695, %v1929_v50 }
0x192a   : > { %1958 = vperm.xlu0 %4638, %v1956_v4   ;;  %4693 = vpow2.f32 %v3994_v7 }
0x1937   : > { %v4694_v51 = vpop.eup %4693 }
0x1938   : > { %v1933_v52 = vadd.f32 1.0, %v4694_v51 }
0x193a   : > { %4695 = vrcp.f32 %v1933_v52 }
0x1947   : > { %v4696_v8 = vpop.eup %4695 }
0x1948   : > { %v1947_v58 = vsub.f32 1.0, %v4696_v8  ;;  %v1953_v62 = vmul.f32 %v4696_v8, %v1848_v44 }
0x1998   : > { %v1938_v53 = vpop.permute.xlu0 %1937 }
0x1999   : > { %v1940_v54 = vmul.f32 %v4696_v8, %v1938_v53  ;;  %v1969_v53 = vld [vmem:[#allocation2 + $0x50] sm:$0xff] }
0x199b   : > { %1942 = vrot.lane.b32.xlu1 %v1940_v54, %s5006_s16 }
0x19a5   : > { %v5613_v61 = vpop.permute.xlu0 %1958 }
0x19a6   : > { %vm1960_vm1 = vcmp.eq.s32.totalorder %v5613_v61, 1 }
0x1a0d   : > { %v1943_v13 = vpop.permute.xlu1 %1942 }
0x1a0e   : > { %v1945_v55 = vadd.f32 %v1943_v13, %v1856_v48 }
0x1a10   : > { %4697 = vtanh.f32 %v1945_v55 }
0x1a1d   : > { %v4698_v57 = vpop.eup %4697 }
0x1a1e   : > { %1949 = vrot.lane.b32.xlu1 %v4698_v57, %s5008_s26 }
0x1a90   : > { %v1950_v60 = vpop.permute.xlu1 %1949 }
0x1a91   : > { %v1952_v10 = vmul.f32 %v1950_v60, %v1947_v58 }
0x1a93   : > { %v1954_v63 = vadd.f32 %v1953_v62, %v1952_v10 }
0x1a95   : > { %v5618_v1 = vsel %vm1960_vm1, %v1954_v63, %v1848_v44 }
0x1a96   : > { %1963 = vrot.lane.b32.xlu0 %v5618_v1, %s5008_s26 }
0x1b08   : > { %v1964_v3 = vpop.permute.xlu0 %1963 }
0x1b09   : > { %1967 = vst.msk [vmem:[#allocation3 + $0x48] sm:$0xff] %vm839_vm5, %v1964_v3  ;;  %4344 = vmatmul.mubr.msk.f32.vlgmr.msra.gmra.mxu1 %vm839_vm5, %v1964_v3  ;;  %v5671_v3 = vld [vmem:[#allocation12 + $0x18] sm:$0xff] }
0x1b0a   : > { %4358 = vmatpush3.msra.mxu1 %v2209_v56  ;;  %4365 = vmatprep.mubr.msk.f32.mxu1 %vm839_vm5, %v2194_v9  ;;  %v5678_v9 = vld [vmem:[#allocation12 + $0x8] sm:$0xff] }
0x1b0b   : > { %4359 = vmatprep.subr.mxu1 %v2208_v5 }
0x1b0c   : > { %4360 = vmatpush3.msra.mxu1 %v2208_v5  ;;  %v5674_v5 = vld [vmem:[#allocation12 + $0x10] sm:$0xff] }
0x1b0d   : > { %4361 = vmatprep.subr.mxu1 %v2207_v11 }
0x1b0e   : > { %4362 = vmatpush3.msra.mxu1 %v2207_v11 }
0x1b0f   : > { %4363 = vmatprep.subr.mxu1 %v2206_v12 }
0x1b10   : > { %4364 = vmatpush3.msra.mxu1 %v2206_v12  ;;  %v2203_v26 = vld [vmem:[#allocation3 + $0x48] sm:$0xff]  ;;  %v5682_v12 = vld [vmem:[#allocation12] sm:$0xff] }
0x1b11   : > { %4366 = vmatmul.mubr.msk.f32.vlgmr.msra.gmra.mxu1 %vm839_vm5, %v2195_v14  ;;  %4416 = vmatprep.subr.mxu1 %v5004_v0 }
0x1b12   : > { %4368 = vmatprep.mubr.msk.f32.mxu1 %vm839_vm5, %v2196_v16  ;;  %4417 = vmatpush3.msra.mxu1 %v5671_v3 }
0x1b13   : > { %4418 = vmatprep.subr.mxu1 %v5004_v0 }
0x1b14   : > { %4419 = vmatpush3.msra.mxu1 %v5674_v5 }
0x1b15   : > { %4369 = vmatmul.mubr.msk.f32.gmra.mxu1 %vm839_vm5, %v2197_v17  ;;  %4420 = vmatprep.subr.mxu1 %v5004_v0 }
0x1b16   : > { %4371 = vmatprep.mubr.msk.f32.mxu1 %vm839_vm5, %v2198_v18  ;;  %4421 = vmatpush3.msra.mxu1 %v5678_v9 }
0x1b17   : > { %4422 = vmatprep.subr.mxu1 %v5004_v0 }
0x1b18   : > { %4423 = vmatpush3.msra.mxu1 %v5682_v12 }
0x1b19   : > { %4372 = vmatmul.mubr.msk.f32.gmra.mxu1 %vm839_vm5, %v2199_v19  ;;  %4438 = vmatprep.subr.mxu1 %v5004_v0 }
0x1b1a   : > { %4374 = vmatprep.mubr.msk.f32.mxu1 %vm839_vm5, %v2200_v20 }
0x1b1d   : > { %4375 = vmatmul.mubr.msk.f32.gmra.mxu1 %vm839_vm5, %v2201_v21 }
0x1b1e   : > { %4377 = vmatprep.mubr.msk.f32.mxu1 %vm839_vm5, %v2202_v25 }
0x1b21   : > { %4378 = vmatmul.mubr.msk.f32.gmra.mxu1 %vm839_vm5, %v2203_v26 }
0x1bc9   : > { %v2038_v27 = vpop.f32.mrf.mxu1 }
0x1bca   : > { %v2039_v29 = vadd.f32 %v5638_v28, %v2038_v27  ;;  %v5725_v27 = vld [vmem:[%s6000_s9] ss:$0 sm:$0xff] }
0x1bcb   : > { %v4345_v30 = vpop.f32.mrf.mxu1 }
0x1bcc   : > { %2050 = vrot.lane.b32.xlu1 %v2039_v29, %s5006_s16  ;;  %v2042_v54 = vadd.f32 %v2039_v29, %v1969_v53 }
0x1bce   : > { %v3996_v13 = vmul.f32 -1.442695, %v2042_v54 }
0x1bd0   : > { %2071 = vperm.xlu1 %4637, %v2069_v31   ;;  %4699 = vpow2.f32 %v3996_v13 }
0x1bd1   : > { %v4367_v34 = vpop.f32.mrf.mxu1 }
0x1bd2   : > { %v2325_v35 = vadd.f32 %v4367_v34, %v5647_v33 }
0x1bd3   : > { %v2319_v36 = vpop.f32.mrf.mxu1 }
0x1bd4   : > { %2379 = vst.msk [vmem:[#allocation2 + $0x8] sm:$0xff] %vm814_vm2, %v2325_v35  ;;  %v2320_v37 = vadd.f32 %v5647_v33, %v2319_v36 }
0x1bd5   : > { %v4370_v23 = vpop.f32.mrf.mxu1 }
0x1bd6   : > { %2378 = vst.msk [vmem:[#allocation2] sm:$0xff] %vm814_vm2, %v2320_v37  ;;  %v2335_v40 = vadd.f32 %v4370_v23, %v5647_v33 }
0x1bd7   : > { %v2329_v41 = vpop.f32.mrf.mxu1 }
0x1bd8   : > { %2381 = vst.msk [vmem:[#allocation2 + $0x18] sm:$0xff] %vm814_vm2, %v2335_v40  ;;  %v2330_v42 = vadd.f32 %v5647_v33, %v2329_v41 }
0x1bd9   : > { %v4373_v44 = vpop.f32.mrf.mxu1 }
0x1bda   : > { %2380 = vst.msk [vmem:[#allocation2 + $0x10] sm:$0xff] %vm814_vm2, %v2330_v42  ;;  %v2345_v45 = vadd.f32 %v4373_v44, %v5647_v33 }
0x1bdb   : > { %v2339_v46 = vpop.f32.mrf.mxu1 }
0x1bdc   : > { %2383 = vst.msk [vmem:[#allocation2 + $0x28] sm:$0xff] %vm814_vm2, %v2345_v45  ;;  %v2340_v2 = vadd.f32 %v5647_v33, %v2339_v46 }
0x1bdd   : > { %v4376_v47 = vpop.f32.mrf.mxu1  ;;  %v4700_v55 = vpop.eup %4699  ;;  %v2395_v34 = vld [vmem:[#allocation2] sm:$0xff] }
0x1bde   : > { %2382 = vst.msk [vmem:[#allocation2 + $0x20] sm:$0xff] %vm814_vm2, %v2340_v2  ;;  %v2355_v4 = vadd.f32 %v4376_v47, %v5647_v33  ;;  %v2046_v56 = vadd.f32 1.0, %v4700_v55 }
0x1bdf   : > { %v2349_v48 = vpop.f32.mrf.mxu1 }
0x1be0   : > { %2385 = vst.msk [vmem:[#allocation2 + $0x38] sm:$0xff] %vm814_vm2, %v2355_v4  ;;  %v2350_v50 = vadd.f32 %v5647_v33, %v2349_v48  ;;  %4701 = vrcp.f32 %v2046_v56 }
0x1be1   : > { %v4379_v7 = vpop.f32.mrf.mxu1 }
0x1be2   : > { %2384 = vst.msk [vmem:[#allocation2 + $0x30] sm:$0xff] %vm814_vm2, %v2350_v50  ;;  %v2365_v51 = vadd.f32 %v4379_v7, %v5647_v33 }
0x1be3   : > { %v2359_v52 = vpop.f32.mrf.mxu1 }
0x1be4   : > { %2387 = vst.msk [vmem:[#allocation2 + $0x48] sm:$0xff] %vm814_vm2, %v2365_v51  ;;  %v2360_v8 = vadd.f32 %v5647_v33, %v2359_v52 }
0x1be6   : > { %2386 = vst.msk [vmem:[#allocation2 + $0x40] sm:$0xff] %vm814_vm2, %v2360_v8 }
0x1bed   : > { %v4702_v57 = vpop.eup %4701 }
0x1bee   : > { %v2060_v11 = vsub.f32 1.0, %v4702_v57  ;;  %v2066_v17 = vmul.f32 %v4702_v57, %v5618_v1 }
0x1c3e   : > { %v2051_v58 = vpop.permute.xlu1 %2050 }
0x1c3f   : > { %v2053_v60 = vmul.f32 %v4702_v57, %v2051_v58 }
0x1c41   : > { %2055 = vrot.lane.b32.xlu0 %v2053_v60, %s5006_s16 }
0x1c4b   : > { %v5686_v16 = vpop.permute.xlu1 %2071 }
0x1c4c   : > { %vm2073_vm10 = vcmp.eq.s32.totalorder %v5686_v16, 1 }
0x1cb3   : > { %v2056_v62 = vpop.permute.xlu0 %2055 }
0x1cb4   : > { %v2058_v10 = vadd.f32 %v2056_v62, %v1969_v53  ;;  %v2499_v53 = vld [vmem:[#allocation2 + $0x8] sm:$0xff] }
0x1cb6   : > { %4703 = vtanh.f32 %v2058_v10 }
0x1cc3   : > { %v4704_v63 = vpop.eup %4703 }
0x1cc4   : > { %2062 = vrot.lane.b32.xlu0 %v4704_v63, %s5008_s26 }
0x1d36   : > { %v2063_v14 = vpop.permute.xlu0 %2062 }
0x1d37   : > { %v2065_v18 = vmul.f32 %v2063_v14, %v2060_v11  ;;  %v2082_v14 = vld [vmem:[#allocation2 + $0x58] sm:$0xff] }
0x1d39   : > { %v2067_v19 = vadd.f32 %v2066_v17, %v2065_v18 }
0x1d3b   : > { %v5694_v20 = vsel %vm2073_vm10, %v2067_v19, %v5618_v1 }
0x1d3c   : > { %2076 = vrot.lane.b32.xlu1 %v5694_v20, %s5008_s26 }
0x1dae   : > { %v2077_v21 = vpop.permute.xlu1 %2076 }
0x1daf   : > { %2080 = vst.msk [vmem:[#allocation3 + $0x50] sm:$0xff] %vm839_vm5, %v2077_v21  ;;  %4355 = vmatmul.mubr.msk.f32.vlgmr.msra.gmra.mxu0 %vm839_vm5, %v2077_v21 }
0x1db0   : > { %4384 = vmatpush3.msra.mxu0 %v5671_v3  ;;  %4391 = vmatprep.mubr.msk.f32.mxu0 %vm5005_vm0, %v5004_v0 }
0x1db1   : > { %4385 = vmatprep.subr.mxu0 %v5004_v0 }
0x1db2   : > { %4386 = vmatpush3.msra.mxu0 %v5674_v5 }
0x1db3   : > { %4387 = vmatprep.subr.mxu0 %v5004_v0 }
0x1db4   : > { %4388 = vmatpush3.msra.mxu0 %v5678_v9 }
0x1db5   : > { %4389 = vmatprep.subr.mxu0 %v5004_v0 }
0x1db6   : > { %4390 = vmatpush3.msra.mxu0 %v5682_v12  ;;  %v2204_v1 = vld [vmem:[#allocation3 + $0x50] sm:$0xff] }
0x1db7   : > { %4392 = vmatmul.mubr.f32.vlgmr.msra.gmra.mxu0 %v5004_v0  ;;  %4380 = vmatprep.mubr.msk.f32.mxu1 %vm839_vm5, %v2204_v1 }
0x1db8   : > { %4394 = vmatprep.subr.mxu0 %v5004_v0  ;;  %4402 = vmatprep.mubr.msk.f32.mxu0 %vm5005_vm0, %v5004_v0 }
0x1db9   : > { %4395 = vmatpush3.msra.mxu0 %v5671_v3 }
0x1dba   : > { %4396 = vmatprep.subr.mxu0 %v5004_v0 }
0x1dbb   : > { %4397 = vmatpush3.msra.mxu0 %v5674_v5 }
0x1dbc   : > { %4398 = vmatprep.subr.mxu0 %v5004_v0 }
0x1dbd   : > { %4399 = vmatpush3.msra.mxu0 %v5678_v9 }
0x1dbe   : > { %4400 = vmatprep.subr.mxu0 %v5004_v0 }
0x1dbf   : > { %4401 = vmatpush3.msra.mxu0 %v5682_v12 }
0x1dc0   : > { %4405 = vmatprep.subr.mxu0 %v5004_v0 }
0x1e6f   : > { %v2151_v25 = vpop.f32.mrf.mxu0 }
0x1e70   : > { %v2152_v11 = vadd.f32 %v5638_v28, %v2151_v25  ;;  %v4788_v25 = vld [vmem:[%s5335_s6] sm:$0xff]  ;;  %s629_s6 = scalar_lea.vmem %s6040_s3, %s3960_s18 }
0x1e71   : > { %v4356_v26 = vpop.f32.mrf.mxu0 }
0x1e72   : > { %v2155_v17 = vadd.f32 %v2152_v11, %v2082_v14 }
0x1e74   : > { %v3998_v18 = vmul.f32 -1.442695, %v2155_v17 }
0x1e77   : > { %v2468_v29 = vpop.f32.mrf.mxu0 }
0x1e78   : > { %v2469_v30 = vadd.f32 %v5725_v27, %v2468_v29 }
0x1e79   : > { %v4393_v31 = vpop.f32.mrf.mxu0 }
0x1e7a   : > { %2480 = vrot.lane.b32.xlu0 %v2469_v30, %s5006_s16  ;;  %v2472_v35 = vadd.f32 %v2469_v30, %v2395_v34 }
0x1e7c   : > { %v4013_v36 = vmul.f32 -1.442695, %v2472_v35 }
0x1e7e   : > { %4705 = vpow2.f32 %v4013_v36 }
0x1e8b   : > { %v4706_v37 = vpop.eup %4705 }
0x1e8c   : > { %v2476_v23 = vadd.f32 1.0, %v4706_v37 }
0x1e8e   : > { %4707 = vrcp.f32 %v2476_v23 }
0x1e9b   : > { %v4708_v40 = vpop.eup %4707 }
0x1e9c   : > { %v2490_v2 = vsub.f32 1.0, %v4708_v40  ;;  %v2496_v4 = vmul.f32 0.0, %v4708_v40 }
0x1eec   : > { %v2481_v41 = vpop.permute.xlu0 %2480 }
0x1eed   : > { %v2483_v42 = vmul.f32 %v4708_v40, %v2481_v41  ;;  %v2602_v41 = vld [vmem:[#allocation2 + $0x10] sm:$0xff] }
0x1eef   : > { %2485 = vrot.lane.b32.xlu1 %v2483_v42, %s5006_s16 }
0x1f61   : > { %v2486_v44 = vpop.permute.xlu1 %2485 }
0x1f62   : > { %v2488_v45 = vadd.f32 %v2486_v44, %v2395_v34 }
0x1f64   : > { %4709 = vtanh.f32 %v2488_v45 }
0x1f71   : > { %v4710_v46 = vpop.eup %4709 }
0x1f72   : > { %2492 = vrot.lane.b32.xlu0 %v4710_v46, %s5008_s26 }
0x1fe4   : > { %v2493_v47 = vpop.permute.xlu0 %2492 }
0x1fe5   : > { %v2495_v48 = vmul.f32 %v2493_v47, %v2490_v2 }
0x1fe7   : > { %v2497_v50 = vadd.f32 %v2496_v4, %v2495_v48 }
0x1fe9   : > { %v2498_v7 = vsel %vm944_vm4, %v2497_v50, 0.0  ;;  %vm2181_vm4 = vcmp.gt.s32.totalorder %v4788_v25, 11 }
0x1fea   : > { %2501 = vrot.lane.b32.xlu1 %v2498_v7, %s5008_s26  ;;  %v2182_v37 = vsel %vm2181_vm4, 1, %v5007_v24 }
0x205c   : > { %v2502_v51 = vpop.permute.xlu1 %2501 }
0x205d   : > { %4403 = vmatmul.mubr.msk.f32.vlgmr.msra.gmra.mxu0 %vm839_vm5, %v2502_v51 }
0x205e   : > { %4406 = vmatpush3.msra.mxu0 %v5671_v3  ;;  %4413 = vmatprep.mubr.msk.f32.mxu0 %vm5005_vm0, %v5004_v0 }
0x205f   : > { %4407 = vmatprep.subr.mxu0 %v5004_v0 }
0x2060   : > { %4408 = vmatpush3.msra.mxu0 %v5674_v5 }
0x2061   : > { %4409 = vmatprep.subr.mxu0 %v5004_v0 }
0x2062   : > { %4410 = vmatpush3.msra.mxu0 %v5678_v9 }
0x2063   : > { %4411 = vmatprep.subr.mxu0 %v5004_v0 }
0x2064   : > { %4412 = vmatpush3.msra.mxu0 %v5682_v12 }
0x2065   : > { %4427 = vmatprep.subr.mxu0 %v5004_v0 }
0x211d   : > { %v2571_v32 = vpop.f32.mrf.mxu0 }
0x211e   : > { %v2572_v52 = vadd.f32 %v5725_v27, %v2571_v32 }
0x211f   : > { %v4404_v8 = vpop.f32.mrf.mxu0 }
0x2120   : > { %2583 = vrot.lane.b32.xlu0 %v2572_v52, %s5006_s16  ;;  %v2575_v54 = vadd.f32 %v2572_v52, %v2499_v53 }
0x2122   : > { %v4015_v13 = vmul.f32 -1.442695, %v2575_v54 }
0x2124   : > { %4711 = vpow2.f32 %v4015_v13 }
0x2131   : > { %v4712_v55 = vpop.eup %4711 }
0x2132   : > { %v2579_v56 = vadd.f32 1.0, %v4712_v55 }
0x2134   : > { %4713 = vrcp.f32 %v2579_v56 }
0x2141   : > { %v4714_v57 = vpop.eup %4713 }
0x2142   : > { %v2593_v1 = vsub.f32 1.0, %v4714_v57  ;;  %v2599_v29 = vmul.f32 %v4714_v57, %v2498_v7 }
0x2192   : > { %v2584_v58 = vpop.permute.xlu0 %2583 }
0x2193   : > { %v2586_v60 = vmul.f32 %v4714_v57, %v2584_v58 }
0x2195   : > { %2588 = vrot.lane.b32.xlu1 %v2586_v60, %s5006_s16 }
0x2207   : > { %v2589_v62 = vpop.permute.xlu1 %2588 }
0x2208   : > { %v2591_v10 = vadd.f32 %v2589_v62, %v2499_v53 }
0x220a   : > { %4715 = vtanh.f32 %v2591_v10 }
0x220b   : > { %4717 = vpow2.f32 %v3998_v18 }
0x2217   : > { %v4716_v63 = vpop.eup %4715 }
0x2218   : > { %2595 = vrot.lane.b32.xlu0 %v4716_v63, %s5008_s26  ;;  %v4718_v19 = vpop.eup %4717 }
0x2219   : > { %v2159_v21 = vadd.f32 1.0, %v4718_v19 }
0x221b   : > { %4719 = vrcp.f32 %v2159_v21 }
0x221c   : > { %2163 = vrot.lane.b32.xlu0 %v2152_v11, %s5006_s16 }
0x2228   : > { %v4720_v34 = vpop.eup %4719 }
0x2229   : > { %v2173_v52 = vsub.f32 1.0, %v4720_v34  ;;  %v2179_v54 = vmul.f32 %v4720_v34, %v5694_v20 }
0x228a   : > { %v2596_v26 = vpop.permute.xlu0 %2595 }
0x228b   : > { %v2598_v30 = vmul.f32 %v2596_v26, %v2593_v1 }
0x228d   : > { %v2600_v31 = vadd.f32 %v2599_v29, %v2598_v30  ;;  %v2705_v30 = vld [vmem:[#allocation2 + $0x18] sm:$0xff] }
0x228e   : > { %v2164_v35 = vpop.permute.xlu0 %2163 }
0x228f   : > { %v2166_v36 = vmul.f32 %v4720_v34, %v2164_v35  ;;  %v5753_v28 = vsel %vm1056_vm7, %v2600_v31, %v2498_v7 }
0x2290   : > { %2604 = vrot.lane.b32.xlu1 %v5753_v28, %s5008_s26 }
0x2291   : > { %2168 = vrot.lane.b32.xlu0 %v2166_v36, %s5006_s16 }
0x2295   : > { %2184 = vperm.xlu0 %4638, %v2182_v37  }
0x2302   : > { %v2605_v23 = vpop.permute.xlu1 %2604 }
0x2303   : > { %4414 = vmatmul.mubr.msk.f32.vlgmr.msra.gmra.mxu0 %vm839_vm5, %v2605_v23  ;;  %v2169_v2 = vpop.permute.xlu0 %2168 }
0x2304   : > { %4428 = vmatpush3.msra.mxu0 %v5671_v3  ;;  %4435 = vmatprep.mubr.msk.f32.mxu0 %vm5005_vm0, %v5004_v0  ;;  %v2171_v47 = vadd.f32 %v2169_v2, %v2082_v14 }
0x2305   : > { %4429 = vmatprep.subr.mxu0 %v5004_v0 }
0x2306   : > { %4430 = vmatpush3.msra.mxu0 %v5674_v5 }
0x2307   : > { %4431 = vmatprep.subr.mxu0 %v5004_v0 }
0x2308   : > { %4432 = vmatpush3.msra.mxu0 %v5678_v9 }
0x2309   : > { %4433 = vmatprep.subr.mxu0 %v5004_v0 }
0x230a   : > { %4434 = vmatpush3.msra.mxu0 %v5682_v12 }
0x230b   : > { %4449 = vmatprep.subr.mxu0 %v5004_v0 }
0x2310   : > { %v5775_v53 = vpop.permute.xlu0 %2184 }
0x2311   : > { %vm2186_vm7 = vcmp.eq.s32.totalorder %v5775_v53, 1  ;;  %v4036_v53 = vld [vmem:[%s6002_s11] ss:$0 sm:$0xff] }
0x23c3   : > { %v2674_v24 = vpop.f32.mrf.mxu0 }
0x23c4   : > { %v2675_v59 = vadd.f32 %v5725_v27, %v2674_v24 }
0x23c5   : > { %v4415_v40 = vpop.f32.mrf.mxu0 }
0x23c6   : > { %2686 = vrot.lane.b32.xlu1 %v2675_v59, %s5006_s16  ;;  %v2678_v42 = vadd.f32 %v2675_v59, %v2602_v41 }
0x23c8   : > { %v4017_v44 = vmul.f32 -1.442695, %v2678_v42 }
0x23ca   : > { %4721 = vpow2.f32 %v4017_v44 }
0x23d7   : > { %v4722_v45 = vpop.eup %4721 }
0x23d8   : > { %v2682_v46 = vadd.f32 1.0, %v4722_v45 }
0x23da   : > { %4723 = vrcp.f32 %v2682_v46 }
0x23db   : > { %4725 = vtanh.f32 %v2171_v47 }
0x23e7   : > { %v4724_v4 = vpop.eup %4723 }
0x23e8   : > { %v4726_v7 = vpop.eup %4725  ;;  %v2696_v60 = vsub.f32 1.0, %v4724_v4  ;;  %v2702_v10 = vmul.f32 %v4724_v4, %v5753_v28 }
0x2438   : > { %v2687_v48 = vpop.permute.xlu1 %2686 }
0x2439   : > { %v2689_v50 = vmul.f32 %v4724_v4, %v2687_v48  ;;  %v2808_v4 = vld [vmem:[#allocation2 + $0x20] sm:$0xff] }
0x243b   : > { %2691 = vrot.lane.b32.xlu1 %v2689_v50, %s5006_s16 }
0x243f   : > { %2175 = vrot.lane.b32.xlu1 %v4726_v7, %s5008_s26 }
0x24ad   : > { %v2692_v51 = vpop.permute.xlu1 %2691 }
0x24ae   : > { %v2694_v32 = vadd.f32 %v2692_v51, %v2602_v41 }
0x24b0   : > { %4727 = vtanh.f32 %v2694_v32 }
0x24b1   : > { %v2176_v8 = vpop.permute.xlu1 %2175 }
0x24b2   : > { %v2178_v13 = vmul.f32 %v2176_v8, %v2173_v52 }
0x24b4   : > { %v2180_v55 = vadd.f32 %v2179_v54, %v2178_v13 }
0x24b6   : > { %v2187_v56 = vsel %vm2186_vm7, %v2180_v55, %v5694_v20 }
0x24b7   : > { %2189 = vrot.lane.b32.xlu1 %v2187_v56, %s5008_s26 }
0x24bd   : > { %v4728_v57 = vpop.eup %4727 }
0x24be   : > { %2698 = vrot.lane.b32.xlu0 %v4728_v57, %s5008_s26 }
0x2529   : > { %v2190_v58 = vpop.permute.xlu1 %2189 }
0x252a   : > { %2193 = vst.msk [vmem:[#allocation3 + $0x58] sm:$0xff] %vm839_vm5, %v2190_v58 }
0x2530   : > { %v2699_v62 = vpop.permute.xlu0 %2698 }
0x2531   : > { %v2701_v63 = vmul.f32 %v2699_v62, %v2696_v60  ;;  %v2205_v11 = vld [vmem:[#allocation3 + $0x58] sm:$0xff] }
0x2532   : > { %4381 = vmatmul.mubr.msk.f32.gmra.mxu1 %vm839_vm5, %v2205_v11 }
0x2533   : > { %v2703_v14 = vadd.f32 %v2702_v10, %v2701_v63  ;;  %4424 = vmatprep.mubr.msk.f32.mxu1 %vm5005_vm0, %v5004_v0 }
0x2535   : > { %v2704_v20 = vsel %vm1169_vm9, %v2703_v14, %v5753_v28 }
0x2536   : > { %2707 = vrot.lane.b32.xlu0 %v2704_v20, %s5008_s26 }
0x25a8   : > { %v2708_v17 = vpop.permute.xlu0 %2707 }
0x25a9   : > { %4425 = vmatmul.mubr.msk.f32.vlgmr.msra.gmra.mxu1 %vm839_vm5, %v2708_v17 }
0x25aa   : > { %4439 = vmatpush3.msra.mxu1 %v5671_v3  ;;  %4446 = vmatprep.mubr.msk.f32.mxu1 %vm5005_vm0, %v5004_v0 }
0x25ab   : > { %4440 = vmatprep.subr.mxu1 %v5004_v0 }
0x25ac   : > { %4441 = vmatpush3.msra.mxu1 %v5674_v5 }
0x25ad   : > { %4442 = vmatprep.subr.mxu1 %v5004_v0 }
0x25ae   : > { %4443 = vmatpush3.msra.mxu1 %v5678_v9 }
0x25af   : > { %4444 = vmatprep.subr.mxu1 %v5004_v0 }
0x25b0   : > { %4445 = vmatpush3.msra.mxu1 %v5682_v12 }
0x25b1   : > { %4460 = vmatprep.subr.mxu1 %v5004_v0 }
0x25f2   : > { %v4382_v39 = vpop.f32.mrf.mxu1 }
0x25f3   : > { %v2375_v18 = vadd.f32 %v4382_v39, %v5647_v33 }
0x25f4   : > { %v2369_v19 = vpop.f32.mrf.mxu1 }
0x25f5   : > { %2389 = vst.msk [vmem:[#allocation2 + $0x58] sm:$0xff] %vm814_vm2, %v2375_v18  ;;  %v2370_v21 = vadd.f32 %v5647_v33, %v2369_v19 }
0x25f7   : > { %2388 = vst.msk [vmem:[#allocation2 + $0x50] sm:$0xff] %vm814_vm2, %v2370_v21 }
0x2669   : > { %v2777_v1 = vpop.f32.mrf.mxu1 }
0x266a   : > { %v2778_v26 = vadd.f32 %v5725_v27, %v2777_v1 }
0x266b   : > { %v4426_v29 = vpop.f32.mrf.mxu1 }
0x266c   : > { %2789 = vrot.lane.b32.xlu1 %v2778_v26, %s5006_s16  ;;  %v2781_v31 = vadd.f32 %v2778_v26, %v2705_v30 }
0x266e   : > { %v4019_v34 = vmul.f32 -1.442695, %v2781_v31 }
0x2670   : > { %4729 = vpow2.f32 %v4019_v34 }
0x267d   : > { %v4730_v35 = vpop.eup %4729 }
0x267e   : > { %v2785_v36 = vadd.f32 1.0, %v4730_v35 }
0x2680   : > { %4731 = vrcp.f32 %v2785_v36 }
0x268d   : > { %v4732_v28 = vpop.eup %4731 }
0x268e   : > { %v2799_v59 = vsub.f32 1.0, %v4732_v28  ;;  %v2805_v41 = vmul.f32 %v4732_v28, %v2704_v20 }
0x26de   : > { %v2790_v25 = vpop.permute.xlu1 %2789 }
0x26df   : > { %v2792_v37 = vmul.f32 %v4732_v28, %v2790_v25 }
0x26e1   : > { %2794 = vrot.lane.b32.xlu0 %v2792_v37, %s5006_s16 }
0x2753   : > { %v2795_v33 = vpop.permute.xlu0 %2794 }
0x2754   : > { %v2797_v23 = vadd.f32 %v2795_v33, %v2705_v30 }
0x2756   : > { %4733 = vtanh.f32 %v2797_v23 }
0x2763   : > { %v4734_v24 = vpop.eup %4733 }
0x2764   : > { %2801 = vrot.lane.b32.xlu1 %v4734_v24, %s5008_s26 }
0x27d6   : > { %v2802_v40 = vpop.permute.xlu1 %2801 }
0x27d7   : > { %v2804_v42 = vmul.f32 %v2802_v40, %v2799_v59  ;;  %v3014_v59 = vld [vmem:[#allocation2 + $0x30] sm:$0xff] }
0x27d9   : > { %v2806_v44 = vadd.f32 %v2805_v41, %v2804_v42 }
0x27db   : > { %v2807_v45 = vsel %vm1282_vm11, %v2806_v44, %v2704_v20  ;;  %v2911_v20 = vld [vmem:[#allocation2 + $0x28] sm:$0xff] }
0x27dc   : > { %2810 = vrot.lane.b32.xlu0 %v2807_v45, %s5008_s26 }
0x284e   : > { %v2811_v46 = vpop.permute.xlu0 %2810 }
0x284f   : > { %4436 = vmatmul.mubr.msk.f32.vlgmr.msra.gmra.mxu0 %vm839_vm5, %v2811_v46 }
0x2850   : > { %4450 = vmatpush3.msra.mxu0 %v5671_v3  ;;  %4457 = vmatprep.mubr.msk.f32.mxu0 %vm5005_vm0, %v5004_v0 }
0x2851   : > { %4451 = vmatprep.subr.mxu0 %v5004_v0 }
0x2852   : > { %4452 = vmatpush3.msra.mxu0 %v5674_v5 }
0x2853   : > { %4453 = vmatprep.subr.mxu0 %v5004_v0 }
0x2854   : > { %4454 = vmatpush3.msra.mxu0 %v5678_v9 }
0x2855   : > { %4455 = vmatprep.subr.mxu0 %v5004_v0 }
0x2856   : > { %4456 = vmatpush3.msra.mxu0 %v5682_v12 }
0x2857   : > { %4471 = vmatprep.subr.mxu0 %v5004_v0 }
0x290f   : > { %v2880_v22 = vpop.f32.mrf.mxu0 }
0x2910   : > { %v2881_v2 = vadd.f32 %v5725_v27, %v2880_v22 }
0x2911   : > { %v4437_v47 = vpop.f32.mrf.mxu0 }
0x2912   : > { %2892 = vrot.lane.b32.xlu1 %v2881_v2, %s5006_s16  ;;  %v2884_v48 = vadd.f32 %v2881_v2, %v2808_v4 }
0x2914   : > { %v4021_v50 = vmul.f32 -1.442695, %v2884_v48 }
0x2916   : > { %4735 = vpow2.f32 %v4021_v50 }
0x2923   : > { %v4736_v7 = vpop.eup %4735 }
0x2924   : > { %v2888_v51 = vadd.f32 1.0, %v4736_v7 }
0x2926   : > { %4737 = vrcp.f32 %v2888_v51 }
0x2933   : > { %v4738_v32 = vpop.eup %4737 }
0x2934   : > { %v2902_v56 = vsub.f32 1.0, %v4738_v32  ;;  %v2908_v58 = vmul.f32 %v4738_v32, %v2807_v45 }
0x2984   : > { %v2893_v52 = vpop.permute.xlu1 %2892 }
0x2985   : > { %v2895_v8 = vmul.f32 %v4738_v32, %v2893_v52 }
0x2987   : > { %2897 = vrot.lane.b32.xlu0 %v2895_v8, %s5006_s16 }
0x29f9   : > { %v2898_v54 = vpop.permute.xlu0 %2897 }
0x29fa   : > { %v2900_v13 = vadd.f32 %v2898_v54, %v2808_v4 }
0x29fc   : > { %4739 = vtanh.f32 %v2900_v13 }
0x2a09   : > { %v4740_v55 = vpop.eup %4739 }
0x2a0a   : > { %2904 = vrot.lane.b32.xlu1 %v4740_v55, %s5008_s26  ;;  %v3117_v55 = vld [vmem:[#allocation2 + $0x38] sm:$0xff] }
0x2a7c   : > { %v2905_v57 = vpop.permute.xlu1 %2904 }
0x2a7d   : > { %v2907_v60 = vmul.f32 %v2905_v57, %v2902_v56 }
0x2a7f   : > { %v2909_v62 = vadd.f32 %v2908_v58, %v2907_v60 }
0x2a81   : > { %v2910_v10 = vsel %vm1395_vm13, %v2909_v62, %v2807_v45 }
0x2a82   : > { %2913 = vrot.lane.b32.xlu0 %v2910_v10, %s5008_s26 }
0x2af4   : > { %v2914_v63 = vpop.permute.xlu0 %2913 }
0x2af5   : > { %4447 = vmatmul.mubr.msk.f32.vlgmr.msra.gmra.mxu1 %vm839_vm5, %v2914_v63 }
0x2af6   : > { %4461 = vmatpush3.msra.mxu1 %v5671_v3  ;;  %4468 = vmatprep.mubr.msk.f32.mxu1 %vm5005_vm0, %v5004_v0 }
0x2af7   : > { %4462 = vmatprep.subr.mxu1 %v5004_v0 }
0x2af8   : > { %4463 = vmatpush3.msra.mxu1 %v5674_v5 }
0x2af9   : > { %4464 = vmatprep.subr.mxu1 %v5004_v0 }
0x2afa   : > { %4465 = vmatpush3.msra.mxu1 %v5678_v9 }
0x2afb   : > { %4466 = vmatprep.subr.mxu1 %v5004_v0 }
0x2afc   : > { %4467 = vmatpush3.msra.mxu1 %v5682_v12 }
0x2afd   : > { %4482 = vmatprep.subr.mxu1 %v5004_v0 }
0x2bb5   : > { %v2983_v49 = vpop.f32.mrf.mxu1 }
0x2bb6   : > { %v2984_v11 = vadd.f32 %v5725_v27, %v2983_v49 }
0x2bb7   : > { %v4448_v14 = vpop.f32.mrf.mxu1 }
0x2bb8   : > { %2995 = vrot.lane.b32.xlu1 %v2984_v11, %s5006_s16  ;;  %v2987_v17 = vadd.f32 %v2984_v11, %v2911_v20 }
0x2bba   : > { %v4023_v39 = vmul.f32 -1.442695, %v2987_v17 }
0x2bbc   : > { %4741 = vpow2.f32 %v4023_v39 }
0x2bc9   : > { %v4742_v18 = vpop.eup %4741 }
0x2bca   : > { %v2991_v19 = vadd.f32 1.0, %v4742_v18 }
0x2bcc   : > { %4743 = vrcp.f32 %v2991_v19 }
0x2bd9   : > { %v4744_v21 = vpop.eup %4743 }
0x2bda   : > { %v3005_v34 = vsub.f32 1.0, %v4744_v21  ;;  %v3011_v36 = vmul.f32 %v4744_v21, %v2910_v10 }
0x2c2a   : > { %v2996_v1 = vpop.permute.xlu1 %2995 }
0x2c2b   : > { %v2998_v26 = vmul.f32 %v4744_v21, %v2996_v1 }
0x2c2d   : > { %3000 = vrot.lane.b32.xlu0 %v2998_v26, %s5006_s16 }
0x2c9f   : > { %v3001_v29 = vpop.permute.xlu0 %3000 }
0x2ca0   : > { %v3003_v30 = vadd.f32 %v3001_v29, %v2911_v20 }
0x2ca2   : > { %4745 = vtanh.f32 %v3003_v30  ;;  %v3220_v30 = vld [vmem:[#allocation2 + $0x40] sm:$0xff] }
0x2caf   : > { %v4746_v31 = vpop.eup %4745 }
0x2cb0   : > { %3007 = vrot.lane.b32.xlu1 %v4746_v31, %s5008_s26 }
0x2d22   : > { %v3008_v35 = vpop.permute.xlu1 %3007 }
0x2d23   : > { %v3010_v28 = vmul.f32 %v3008_v35, %v3005_v34 }
0x2d25   : > { %v3012_v25 = vadd.f32 %v3011_v36, %v3010_v28 }
0x2d27   : > { %v3013_v37 = vsel %vm1508_vm15, %v3012_v25, %v2910_v10 }
0x2d28   : > { %3016 = vrot.lane.b32.xlu0 %v3013_v37, %s5008_s26 }
0x2d9a   : > { %v3017_v33 = vpop.permute.xlu0 %3016 }
0x2d9b   : > { %4458 = vmatmul.mubr.msk.f32.vlgmr.msra.gmra.mxu0 %vm839_vm5, %v3017_v33 }
0x2d9c   : > { %4472 = vmatpush3.msra.mxu0 %v5671_v3  ;;  %4479 = vmatprep.mubr.msk.f32.mxu0 %vm5005_vm0, %v5004_v0 }
0x2d9d   : > { %4473 = vmatprep.subr.mxu0 %v5004_v0 }
0x2d9e   : > { %4474 = vmatpush3.msra.mxu0 %v5674_v5 }
0x2d9f   : > { %4475 = vmatprep.subr.mxu0 %v5004_v0 }
0x2da0   : > { %4476 = vmatpush3.msra.mxu0 %v5678_v9 }
0x2da1   : > { %4477 = vmatprep.subr.mxu0 %v5004_v0 }
0x2da2   : > { %4478 = vmatpush3.msra.mxu0 %v5682_v12 }
0x2da3   : > { %4493 = vmatprep.subr.mxu0 %v5004_v0 }
0x2e5b   : > { %v3086_v15 = vpop.f32.mrf.mxu0 }
0x2e5c   : > { %v3087_v23 = vadd.f32 %v5725_v27, %v3086_v15 }
0x2e5d   : > { %v4459_v24 = vpop.f32.mrf.mxu0 }
0x2e5e   : > { %3098 = vrot.lane.b32.xlu1 %v3087_v23, %s5006_s16  ;;  %v3090_v40 = vadd.f32 %v3087_v23, %v3014_v59 }
0x2e60   : > { %v4025_v41 = vmul.f32 -1.442695, %v3090_v40 }
0x2e62   : > { %4747 = vpow2.f32 %v4025_v41 }
0x2e6f   : > { %v4748_v42 = vpop.eup %4747 }
0x2e70   : > { %v3094_v44 = vadd.f32 1.0, %v4748_v42 }
0x2e72   : > { %4749 = vrcp.f32 %v3094_v44 }
0x2e7f   : > { %v4750_v45 = vpop.eup %4749 }
0x2e80   : > { %v3108_v48 = vsub.f32 1.0, %v4750_v45  ;;  %v3114_v7 = vmul.f32 %v4750_v45, %v3013_v37 }
0x2ed0   : > { %v3099_v46 = vpop.permute.xlu1 %3098 }
0x2ed1   : > { %v3101_v22 = vmul.f32 %v4750_v45, %v3099_v46 }
0x2ed3   : > { %3103 = vrot.lane.b32.xlu0 %v3101_v22, %s5006_s16  ;;  %v3323_v22 = vld [vmem:[#allocation2 + $0x48] sm:$0xff] }
0x2f45   : > { %v3104_v2 = vpop.permute.xlu0 %3103 }
0x2f46   : > { %v3106_v47 = vadd.f32 %v3104_v2, %v3014_v59 }
0x2f48   : > { %4751 = vtanh.f32 %v3106_v47 }
0x2f55   : > { %v4752_v4 = vpop.eup %4751 }
0x2f56   : > { %3110 = vrot.lane.b32.xlu1 %v4752_v4, %s5008_s26 }
0x2fc8   : > { %v3111_v50 = vpop.permute.xlu1 %3110 }
0x2fc9   : > { %v3113_v51 = vmul.f32 %v3111_v50, %v3108_v48 }
0x2fcb   : > { %v3115_v32 = vadd.f32 %v3114_v7, %v3113_v51 }
0x2fcd   : > { %v3116_v52 = vsel %vm1621_vm3, %v3115_v32, %v3013_v37 }
0x2fce   : > { %3119 = vrot.lane.b32.xlu0 %v3116_v52, %s5008_s26 }
0x3040   : > { %v3120_v8 = vpop.permute.xlu0 %3119 }
0x3041   : > { %4469 = vmatmul.mubr.msk.f32.vlgmr.msra.gmra.mxu1 %vm839_vm5, %v3120_v8 }
0x3042   : > { %4483 = vmatpush3.msra.mxu1 %v5671_v3  ;;  %4490 = vmatprep.mubr.msk.f32.mxu1 %vm5005_vm0, %v5004_v0 }
0x3043   : > { %4484 = vmatprep.subr.mxu1 %v5004_v0 }
0x3044   : > { %4485 = vmatpush3.msra.mxu1 %v5674_v5 }
0x3045   : > { %4486 = vmatprep.subr.mxu1 %v5004_v0 }
0x3046   : > { %4487 = vmatpush3.msra.mxu1 %v5678_v9 }
0x3047   : > { %4488 = vmatprep.subr.mxu1 %v5004_v0 }
0x3048   : > { %4489 = vmatpush3.msra.mxu1 %v5682_v12 }
0x3049   : > { %4504 = vmatprep.subr.mxu1 %v5004_v0 }
0x3101   : > { %v3189_v43 = vpop.f32.mrf.mxu1 }
0x3102   : > { %v3190_v54 = vadd.f32 %v5725_v27, %v3189_v43 }
0x3103   : > { %v4470_v13 = vpop.f32.mrf.mxu1 }
0x3104   : > { %3201 = vrot.lane.b32.xlu1 %v3190_v54, %s5006_s16  ;;  %v3193_v56 = vadd.f32 %v3190_v54, %v3117_v55 }
0x3106   : > { %v4027_v57 = vmul.f32 -1.442695, %v3193_v56 }
0x3108   : > { %4753 = vpow2.f32 %v4027_v57 }
0x3115   : > { %v4754_v58 = vpop.eup %4753 }
0x3116   : > { %v3197_v60 = vadd.f32 1.0, %v4754_v58 }
0x3118   : > { %4755 = vrcp.f32 %v3197_v60  ;;  %v3426_v60 = vld [vmem:[#allocation2 + $0x50] sm:$0xff] }
0x3125   : > { %v4756_v62 = vpop.eup %4755 }
0x3126   : > { %v3211_v20 = vsub.f32 1.0, %v4756_v62  ;;  %v3217_v39 = vmul.f32 %v4756_v62, %v3116_v52 }
0x3176   : > { %v3202_v10 = vpop.permute.xlu1 %3201 }
0x3177   : > { %v3204_v63 = vmul.f32 %v4756_v62, %v3202_v10 }
0x3179   : > { %3206 = vrot.lane.b32.xlu0 %v3204_v63, %s5006_s16 }
0x31eb   : > { %v3207_v49 = vpop.permute.xlu0 %3206 }
0x31ec   : > { %v3209_v11 = vadd.f32 %v3207_v49, %v3117_v55 }
0x31ee   : > { %4757 = vtanh.f32 %v3209_v11 }
0x31fb   : > { %v4758_v14 = vpop.eup %4757 }
0x31fc   : > { %3213 = vrot.lane.b32.xlu1 %v4758_v14, %s5008_s26 }
0x326e   : > { %v3214_v17 = vpop.permute.xlu1 %3213 }
0x326f   : > { %v3216_v18 = vmul.f32 %v3214_v17, %v3211_v20 }
0x3271   : > { %v3218_v19 = vadd.f32 %v3217_v39, %v3216_v18 }
0x3273   : > { %v3219_v21 = vsel %vm1734_vm8, %v3218_v19, %v3116_v52 }
0x3274   : > { %3222 = vrot.lane.b32.xlu0 %v3219_v21, %s5008_s26 }
0x32e6   : > { %v3223_v1 = vpop.permute.xlu0 %3222 }
0x32e7   : > { %4480 = vmatmul.mubr.msk.f32.vlgmr.msra.gmra.mxu0 %vm839_vm5, %v3223_v1 }
0x32e8   : > { %4494 = vmatpush3.msra.mxu0 %v5671_v3  ;;  %4501 = vmatprep.mubr.msk.f32.mxu0 %vm5005_vm0, %v5004_v0 }
0x32e9   : > { %4495 = vmatprep.subr.mxu0 %v5004_v0 }
0x32ea   : > { %4496 = vmatpush3.msra.mxu0 %v5674_v5 }
0x32eb   : > { %4497 = vmatprep.subr.mxu0 %v5004_v0 }
0x32ec   : > { %4498 = vmatpush3.msra.mxu0 %v5678_v9 }
0x32ed   : > { %4499 = vmatprep.subr.mxu0 %v5004_v0 }
0x32ee   : > { %4500 = vmatpush3.msra.mxu0 %v5682_v12 }
0x32ef   : > { %4515 = vmatprep.subr.mxu0 %v5004_v0 }
0x33a7   : > { %v3292_v6 = vpop.f32.mrf.mxu0 }
0x33a8   : > { %v3293_v26 = vadd.f32 %v5725_v27, %v3292_v6 }
0x33a9   : > { %v4481_v29 = vpop.f32.mrf.mxu0 }
0x33aa   : > { %3304 = vrot.lane.b32.xlu1 %v3293_v26, %s5006_s16  ;;  %v3296_v31 = vadd.f32 %v3293_v26, %v3220_v30 }
0x33ac   : > { %v4029_v34 = vmul.f32 -1.442695, %v3296_v31 }
0x33ae   : > { %4759 = vpow2.f32 %v4029_v34 }
0x33bb   : > { %v4760_v35 = vpop.eup %4759 }
0x33bc   : > { %v3300_v36 = vadd.f32 1.0, %v4760_v35  ;;  %v3529_v35 = vld [vmem:[#allocation2 + $0x58] sm:$0xff] }
0x33be   : > { %4761 = vrcp.f32 %v3300_v36 }
0x33cb   : > { %v4762_v28 = vpop.eup %4761 }
0x33cc   : > { %v3314_v24 = vsub.f32 1.0, %v4762_v28  ;;  %v3320_v40 = vmul.f32 %v4762_v28, %v3219_v21 }
0x341c   : > { %v3305_v25 = vpop.permute.xlu1 %3304 }
0x341d   : > { %v3307_v37 = vmul.f32 %v4762_v28, %v3305_v25 }
0x341f   : > { %3309 = vrot.lane.b32.xlu0 %v3307_v37, %s5006_s16 }
0x3491   : > { %v3310_v33 = vpop.permute.xlu0 %3309 }
0x3492   : > { %v3312_v15 = vadd.f32 %v3310_v33, %v3220_v30 }
0x3494   : > { %4763 = vtanh.f32 %v3312_v15 }
0x34a1   : > { %v4764_v23 = vpop.eup %4763 }
0x34a2   : > { %3316 = vrot.lane.b32.xlu1 %v4764_v23, %s5008_s26 }
0x3514   : > { %v3317_v59 = vpop.permute.xlu1 %3316 }
0x3515   : > { %v3319_v41 = vmul.f32 %v3317_v59, %v3314_v24  ;;  %v3634_v59 = vld [vmem:[%s6001_s10 + $0x10] sm:$0xff] }
0x3517   : > { %v3321_v42 = vadd.f32 %v3320_v40, %v3319_v41  ;;  %v3633_v40 = vld [vmem:[%s6001_s10 + $0x8] sm:$0xff]  ;;  %v3632_v41 = vld [vmem:[%s6001_s10] sm:$0xff] }
0x3519   : > { %v3322_v44 = vsel %vm1847_vm12, %v3321_v42, %v3219_v21 }
0x351a   : > { %3325 = vrot.lane.b32.xlu0 %v3322_v44, %s5008_s26 }
0x358c   : > { %v3326_v45 = vpop.permute.xlu0 %3325 }
0x358d   : > { %4491 = vmatmul.mubr.msk.f32.vlgmr.msra.gmra.mxu1 %vm839_vm5, %v3326_v45 }
0x358e   : > { %4505 = vmatpush3.msra.mxu1 %v5671_v3  ;;  %4512 = vmatprep.mubr.msk.f32.mxu1 %vm5005_vm0, %v5004_v0 }
0x358f   : > { %4506 = vmatprep.subr.mxu1 %v5004_v0 }
0x3590   : > { %4507 = vmatpush3.msra.mxu1 %v5674_v5 }
0x3591   : > { %4508 = vmatprep.subr.mxu1 %v5004_v0 }
0x3592   : > { %4509 = vmatpush3.msra.mxu1 %v5678_v9 }
0x3593   : > { %4510 = vmatprep.subr.mxu1 %v5004_v0 }
0x3594   : > { %4511 = vmatpush3.msra.mxu1 %v5682_v12 }
0x3595   : > { %4526 = vmatprep.subr.mxu1 %v5004_v0 }
0x364d   : > { %v3395_v38 = vpop.f32.mrf.mxu1 }
0x364e   : > { %v3396_v3 = vadd.f32 %v5725_v27, %v3395_v38 }
0x364f   : > { %v4492_v46 = vpop.f32.mrf.mxu1 }
0x3650   : > { %3407 = vrot.lane.b32.xlu1 %v3396_v3, %s5006_s16  ;;  %v3399_v2 = vadd.f32 %v3396_v3, %v3323_v22 }
0x3652   : > { %v4031_v47 = vmul.f32 -1.442695, %v3399_v2 }
0x3654   : > { %4765 = vpow2.f32 %v4031_v47  ;;  %v3722_v47 = vld [vmem:[#allocation13 + $0x18] sm:$0xff] }
0x3661   : > { %v4766_v5 = vpop.eup %4765 }
0x3662   : > { %v3403_v4 = vadd.f32 1.0, %v4766_v5  ;;  %v3721_v5 = vld [vmem:[#allocation13 + $0x10] sm:$0xff] }
0x3664   : > { %4767 = vrcp.f32 %v3403_v4  ;;  %v3720_v4 = vld [vmem:[#allocation13 + $0x8] sm:$0xff] }
0x3671   : > { %v4768_v9 = vpop.eup %4767 }
0x3672   : > { %v3417_v32 = vsub.f32 1.0, %v4768_v9  ;;  %v3423_v8 = vmul.f32 %v4768_v9, %v3322_v44 }
0x36c2   : > { %v3408_v48 = vpop.permute.xlu1 %3407 }
0x36c3   : > { %v3410_v50 = vmul.f32 %v4768_v9, %v3408_v48  ;;  %v3719_v9 = vld [vmem:[#allocation13] sm:$0xff] }
0x36c5   : > { %3412 = vrot.lane.b32.xlu0 %v3410_v50, %s5006_s16 }
0x3737   : > { %v3413_v12 = vpop.permute.xlu0 %3412 }
0x3738   : > { %v3415_v7 = vadd.f32 %v3413_v12, %v3323_v22 }
0x373a   : > { %4769 = vtanh.f32 %v3415_v7 }
0x3747   : > { %v4770_v51 = vpop.eup %4769 }
0x3748   : > { %3419 = vrot.lane.b32.xlu1 %v4770_v51, %s5008_s26  ;;  %v4038_v51 = vld [vmem:[%s6004_s13] ss:$0 sm:$0xff] }
0x37ba   : > { %v3420_v52 = vpop.permute.xlu1 %3419 }
0x37bb   : > { %v3422_v43 = vmul.f32 %v3420_v52, %v3417_v32 }
0x37bd   : > { %v3424_v54 = vadd.f32 %v3423_v8, %v3422_v43  ;;  %v4040_v8 = vld [vmem:[%s6039_s28] ss:$0 sm:$0xff] }
0x37bf   : > { %v3425_v13 = vsel %vm1960_vm1, %v3424_v54, %v3322_v44 }
0x37c0   : > { %3428 = vrot.lane.b32.xlu0 %v3425_v13, %s5008_s26 }
0x3832   : > { %v3429_v55 = vpop.permute.xlu0 %3428 }
0x3833   : > { %4502 = vmatmul.mubr.msk.f32.vlgmr.msra.gmra.mxu0 %vm839_vm5, %v3429_v55  ;;  %v3816_v55 = vstv %s3815_s23 }
0x3834   : > { %4523 = vmatprep.mubr.msk.f32.mxu0 %vm5005_vm0, %v5004_v0 }
0x38f3   : > { %v3498_v56 = vpop.f32.mrf.mxu0 }
0x38f4   : > { %v3499_v57 = vadd.f32 %v5725_v27, %v3498_v56 }
0x38f5   : > { %v4503_v58 = vpop.f32.mrf.mxu0 }
0x38f6   : > { %3510 = vrot.lane.b32.xlu1 %v3499_v57, %s5006_s16  ;;  %v3502_v62 = vadd.f32 %v3499_v57, %v3426_v60 }
0x38f8   : > { %v4033_v10 = vmul.f32 -1.442695, %v3502_v62 }
0x38fa   : > { %4771 = vpow2.f32 %v4033_v10 }
0x3907   : > { %v4772_v61 = vpop.eup %4771 }
0x3908   : > { %v3506_v63 = vadd.f32 1.0, %v4772_v61 }
0x390a   : > { %4773 = vrcp.f32 %v3506_v63 }
0x3917   : > { %v4774_v49 = vpop.eup %4773 }
0x3918   : > { %v3520_v18 = vsub.f32 1.0, %v4774_v49  ;;  %v3526_v21 = vmul.f32 %v4774_v49, %v3425_v13 }
0x3968   : > { %v3511_v11 = vpop.permute.xlu1 %3510 }
0x3969   : > { %v3513_v14 = vmul.f32 %v4774_v49, %v3511_v11 }
0x396b   : > { %3515 = vrot.lane.b32.xlu0 %v3513_v14, %s5006_s16 }
0x39dd   : > { %v3516_v20 = vpop.permute.xlu0 %3515 }
0x39de   : > { %v3518_v17 = vadd.f32 %v3516_v20, %v3426_v60 }
0x39e0   : > { %4775 = vtanh.f32 %v3518_v17 }
0x39ed   : > { %v4776_v39 = vpop.eup %4775 }
0x39ee   : > { %3522 = vrot.lane.b32.xlu1 %v4776_v39, %s5008_s26 }
0x3a60   : > { %v3523_v19 = vpop.permute.xlu1 %3522 }
0x3a61   : > { %v3525_v1 = vmul.f32 %v3523_v19, %v3520_v18 }
0x3a63   : > { %v3527_v6 = vadd.f32 %v3526_v21, %v3525_v1 }
0x3a65   : > { %v3528_v26 = vsel %vm2073_vm10, %v3527_v6, %v3425_v13 }
0x3a66   : > { %3531 = vrot.lane.b32.xlu0 %v3528_v26, %s5008_s26 }
0x3ad8   : > { %v3532_v29 = vpop.permute.xlu0 %3531 }
0x3ad9   : > { %4513 = vmatmul.mubr.msk.f32.vlgmr.msra.gmra.mxu1 %vm839_vm5, %v3532_v29 }
0x3ada   : > { %4534 = vmatprep.mubr.msk.f32.mxu1 %vm5005_vm0, %v5004_v0  ;;  %4527 = vmatpush3.msra.mxu1 %v3722_v47  ;;  %vm3818_vm0 = vcmask 7168  }
0x3adb   : > { %4528 = vmatprep.subr.mxu1 %v5004_v0 }
0x3adc   : > { %4529 = vmatpush3.msra.mxu1 %v3721_v5 }
0x3add   : > { %4530 = vmatprep.subr.mxu1 %v5004_v0 }
0x3ade   : > { %4531 = vmatpush3.msra.mxu1 %v3720_v4 }
0x3adf   : > { %4532 = vmatprep.subr.mxu1 %v5004_v0 }
0x3ae0   : > { %4533 = vmatpush3.msra.mxu1 %v3719_v9 }
0x3b99   : > { %v3601_v30 = vpop.f32.mrf.mxu1 }
0x3b9a   : > { %v3602_v31 = vadd.f32 %v5725_v27, %v3601_v30  ;;  %v3635_v27 = vld [vmem:[%s6001_s10 + $0x18] sm:$0xff] }
0x3b9b   : > { %v4514_v34 = vpop.f32.mrf.mxu1  ;;  %4516 = vmatpush3.msra.mxu0 %v3635_v27 }
0x3b9c   : > { %3613 = vrot.lane.b32.xlu1 %v3602_v31, %s5006_s16  ;;  %v3605_v36 = vadd.f32 %v3602_v31, %v3529_v35  ;;  %4517 = vmatprep.subr.mxu0 %v5004_v0 }
0x3b9d   : > { %4518 = vmatpush3.msra.mxu0 %v3634_v59 }
0x3b9e   : > { %v4035_v28 = vmul.f32 -1.442695, %v3605_v36  ;;  %4519 = vmatprep.subr.mxu0 %v5004_v0 }
0x3b9f   : > { %4520 = vmatpush3.msra.mxu0 %v3633_v40 }
0x3ba0   : > { %4777 = vpow2.f32 %v4035_v28  ;;  %4521 = vmatprep.subr.mxu0 %v5004_v0 }
0x3ba1   : > { %4522 = vmatpush3.msra.mxu0 %v3632_v41 }
0x3bad   : > { %v4778_v16 = vpop.eup %4777 }
0x3bae   : > { %v3609_v25 = vadd.f32 1.0, %v4778_v16 }
0x3bb0   : > { %4779 = vrcp.f32 %v3609_v25 }
0x3bbd   : > { %v4780_v37 = vpop.eup %4779 }
0x3bbe   : > { %v3623_v44 = vsub.f32 1.0, %v4780_v37  ;;  %v3629_v38 = vmul.f32 %v4780_v37, %v3528_v26 }
0x3c0e   : > { %v3614_v33 = vpop.permute.xlu1 %3613 }
0x3c0f   : > { %v3616_v15 = vmul.f32 %v4780_v37, %v3614_v33 }
0x3c11   : > { %3618 = vrot.lane.b32.xlu0 %v3616_v15, %s5006_s16 }
0x3c83   : > { %v3619_v23 = vpop.permute.xlu0 %3618 }
0x3c84   : > { %v3621_v24 = vadd.f32 %v3619_v23, %v3529_v35 }
0x3c86   : > { %4781 = vtanh.f32 %v3621_v24 }
0x3c93   : > { %v4782_v42 = vpop.eup %4781 }
0x3c94   : > { %3625 = vrot.lane.b32.xlu1 %v4782_v42, %s5008_s26 }
0x3d06   : > { %v3626_v45 = vpop.permute.xlu1 %3625 }
0x3d07   : > { %v3628_v3 = vmul.f32 %v3626_v45, %v3623_v44 }
0x3d09   : > { %v3630_v46 = vadd.f32 %v3629_v38, %v3628_v3 }
0x3d0b   : > { %v3631_v22 = vsel %vm2186_vm7, %v3630_v46, %v3528_v26 }
0x3d0c   : > { %3644 = vrot.lane.b32.xlu0 %v3631_v22, %s5008_s26 }
0x3d7e   : > { %v3645_v2 = vpop.permute.xlu0 %3644 }
0x3d7f   : > { %4524 = vmatmul.mubr.msk.f32.vlgmr.msra.gmra.mxu0 %vm839_vm5, %v3645_v2 }
0x3e3f   : > { %v3714_v48 = vpop.f32.mrf.mxu0 }
0x3e40   : > { %v3715_v50 = vadd.f32 %v4036_v53, %v3714_v48 }
0x3e41   : > { %v4525_v12 = vpop.f32.mrf.mxu0 }
0x3e42   : > { %4783 = vtanh.f32 %v3715_v50 }
0x3e4f   : > { %v4784_v7 = vpop.eup %4783 }
0x3e50   : > { %4535 = vmatmul.mubr.msk.f32.vlgmr.msra.gmra.mxu1 %vm839_vm5, %v4784_v7 }
0x3f10   : > { %v3799_v32 = vpop.f32.mrf.mxu1 }
0x3f11   : > { %v3800_v52 = vadd.f32 %v4038_v51, %v3799_v32 }
0x3f12   : > { %v4536_v0 = vpop.f32.mrf.mxu1 }
0x3f13   : > { %4785 = vtanh.f32 %v3800_v52 }
0x3f20   : > { %v4786_v43 = vpop.eup %4785 }
0x3f21   : > { %v3811_v54 = vmul.f32 %v4786_v43, %v4040_v8 }
0x3f23   : > { %v3812_v13 = vsel %vm839_vm5, %v3811_v54, 0.0 }
0x3f24   : > { %3813 = vadd.xlane.f32.xlu1 %v3812_v13 }
0x3fad   : > { %v3814_v56 = vpop.xlane.xlu1 %3813 }
0x3fae   : > { %v3817_v57 = vadd.f32 %v3816_v55, %v3814_v56 }
0x3fb0   : > { %3819 = vst.msk [vmem:[%s629_s6] sm:$0xff] %vm3818_vm0, %v3817_v57 }
0x3fb1 PF: > { %p30_p10 = scmp.ge.s32.totalorder %s5197_s21, 4   ;;  %s6041_s23 = smov %s4985_s24 }
0x3fb2   : > { %s6042_s24 = smov %s4989_s25  ;;  %s6043_s25 = smov %s5207_s17 }
0x3fb3   : > { %s6044_s26 = smov %s5197_s21  ;;  %32 = sbr.rel (!%p30_p10) target bundleno = 14 (0xe), region = 169 }
0x3fb8   :  { %3839 = vsyncpa [#allocation6], 1 }
0x3fb9   :  { %3841 = vsyncpa [#allocation6 + $0x1], 1 }
0x3fba   :  { %3842 = vsyncpa [#allocation8], 1 }
0x3fbb   :  { %3843 = vsyncpa [#allocation11], 1 }
0x3fbc   :  { %3844 = vsyncpa [#allocation14], 1 }

</bundles_post_ra>
